<compile_context>
chip_gen: v7x
topology: tpu7x:2x2x1
jax: 0.10.0
libtpu: 0.0.40
codegen_flags: <defaults>
</compile_context>

<pallas_src>
import functools

import jax
import jax.numpy as jnp
import numpy as np
from jax.experimental import pallas as pl
from jax.experimental.pallas import tpu as pltpu


# ------------------------------ Pallas kernel ------------------------------ #

def _encoder_kernel(xaug_ref, keep_ref, *refs,
                    seq_len, hidden, ndir, nlayers, mm_dtype):
    """Whole encoder (all layers, both directions) in a single invocation.

    xaug_ref : (T*B, ndir*Din0) layer-0 augmented input, row block s is
               [x[s] | x[T-1-s]] (just x[s] if unidirectional).
    keep_ref : (T, B, ndir*H) float validity mask per *step*; fwd columns hold
               valid(t=s), bwd columns hold valid(t=T-1-s).
    refs     : per layer (wih_aug (Kin, 4S), bias (1, 4S), whh_blk (S, 4S)),
               then per layer (out (T, B, S), hlast (B, S)).  S = ndir*H,
               gate order (i, f, o, g), directions adjacent inside each gate.
    """
    T, H, D = seq_len, hidden, ndir
    S = D * H
    B = keep_ref.shape[1]
    mm = jnp.dtype(mm_dtype)
    f32 = jnp.dtype(jnp.float32)

    def mmcast(a):
        return a if mm == f32 else a.astype(mm)

    w_refs = refs[:3 * nlayers]
    o_refs = refs[3 * nlayers:]

    # Per-step masks: one load + one compare each, reused across layers and for
    # all three selects per step (no per-step broadcast re-emission).
    keep = [keep_ref[s] > 0.0 for s in range(T)]            # T x (B, S) bool

    xin2d = xaug_ref[...]                                    # (T*B, Kin0)

    for l in range(nlayers):
        wih_ref, b_ref, whh_ref = w_refs[3 * l], w_refs[3 * l + 1], w_refs[3 * l + 2]
        out_ref, hlast_ref = o_refs[2 * l], o_refs[2 * l + 1]

        # Input projection for ALL timesteps and both directions: ONE MXU
        # matmul, off the serial recurrence chain. The column layout is the
        # packed gate layout and the bwd half already sees time-reversed input.
        xg2d = jnp.dot(mmcast(xin2d), mmcast(wih_ref[...]),
                       preferred_element_type=jnp.float32) + b_ref[...]
        # Pre-slice per-step gate inputs (hoisted, not on the serial chain).
        xg_steps = [xg2d[s * B:(s + 1) * B, :] for s in range(T)]

        whh = mmcast(whh_ref[...])                           # (S, 4S) block-diag

        # Serial recurrence: ONE (B,S)x(S,4S) matmul per step for both dirs.
        h = jnp.zeros((B, S), jnp.float32)
        c = jnp.zeros((B, S), jnp.float32)
        step_rows = []            # masked packed h per step: [fwd@t=s | bwd@t=T-1-s]
        # TODO(synk): for large T, switch to lax.fori_loop(..., unroll=k) with
        #             pl.ds time indexing instead of full unrolling.
        for s in range(T):
            gates = xg_steps[s] + jnp.dot(mmcast(h), whh,
                                          preferred_element_type=jnp.float32)
            sg = jax.nn.sigmoid(gates[:, :3 * S])            # i | f | o (64-aligned)
            gg = jnp.tanh(gates[:, 3 * S:])                  # g
            c_new = sg[:, S:2 * S] * c + sg[:, :S] * gg
            h_new = sg[:, 2 * S:3 * S] * jnp.tanh(c_new)
            k = keep[s]
            h = jnp.where(k, h_new, h)                       # freeze past length
            c = jnp.where(k, c_new, c)
            step_rows.append(jnp.where(k, h_new, 0.0))       # zero padded outputs

        # Outputs: de-interleave step rows into time order and store one full
        # (B, S) lane-dense row per timestep (no 32-lane masked sub-stores).
        if D == 2:
            out_rows = [jnp.concatenate([step_rows[t][:, :H],
                                         step_rows[T - 1 - t][:, H:]], axis=-1)
                        for t in range(T)]
        else:
            out_rows = step_rows
        for t in range(T):
            out_ref[t] = out_rows[t]
        hlast_ref[...] = h                                    # written exactly once

        # Next layer's augmented 2-D input, built from values still in VMEM /
        # registers (no HBM round-trip, no XLA op between layers).
        if l + 1 < nlayers:
            x_fwd = jnp.concatenate(out_rows, axis=0)                 # (T*B, S)
            if D == 2:
                x_bwd = jnp.concatenate(out_rows[::-1], axis=0)       # time-reversed
                xin2d = jnp.concatenate([x_fwd, x_bwd], axis=-1)      # (T*B, 2S)
            else:
                xin2d = x_fwd


# --------------------------- parameter handling ----------------------------- #

def init_encoder_params(key, input_size, num_units, nlayers, bidir):
    """Canonical params: per layer, per direction, (W_ih (Din,4H), W_hh (H,4H),
    bias (4H,)) in PyTorch gate order (i, f, g, o). Weights ~ N(0, 0.1) as in
    reset_parameters(); small nonzero biases to exercise the bias path."""
    ndir = 2 if bidir else 1
    params = []
    for i in range(nlayers):
        din = input_size if i == 0 else num_units * ndir
        layer = []
        for _ in range(ndir):
            key, k1, k2, k3 = jax.random.split(key, 4)
            wih = 0.1 * jax.random.normal(k1, (din, 4 * num_units), jnp.float32)
            whh = 0.1 * jax.random.normal(k2, (num_units, 4 * num_units), jnp.float32)
            bias = 0.1 * jax.random.normal(k3, (4 * num_units,), jnp.float32)  # b_ih+b_hh
            layer.append((wih, whh, bias))
        params.append(layer)
    return params


def _pack_layer(layer, hidden):
    """Pack one layer's per-direction weights for the fused kernel.

    Packed gate order is (i, f, o, g); inside each gate block of width S=ndir*H
    direction d occupies columns [d*H:(d+1)*H].  wih_aug row block d maps the
    augmented-input block d (x[s] for fwd, x[T-1-s] for bwd); whh_blk row block
    d maps h_d.  Cross-direction entries are zero (block-diagonal)."""
    ndir = len(layer)
    H = hidden
    S = ndir * H
    G = 4 * S
    din = layer[0][0].shape[0]
    src = (0, 1, 3, 2)   # packed gate block k <- PyTorch gate block src[k]
    wih_aug = jnp.zeros((ndir * din, G), jnp.float32)
    whh_blk = jnp.zeros((S, G), jnp.float32)
    bias = jnp.zeros((1, G), jnp.float32)
    for d, (wih_d, whh_d, b_d) in enumerate(layer):
        for k in range(4):
            p = src[k]
            cols = slice(k * S + d * H, k * S + (d + 1) * H)
            wih_aug = wih_aug.at[d * din:(d + 1) * din, cols].set(wih_d[:, p * H:(p + 1) * H])
            whh_blk = whh_blk.at[d * H:(d + 1) * H, cols].set(whh_d[:, p * H:(p + 1) * H])
            bias = bias.at[0, cols].set(b_d[p * H:(p + 1) * H])
    return wih_aug, bias, whh_blk


# --------------------------------- forward ---------------------------------- #

def encoder_entity_forward(x, input_lengths, params, *, return_last,
                           matmul_dtype=jnp.float32):
    """Eval-mode forward of EncoderEntity (single fused Pallas TPU kernel).

    x: (B, T, input_size), batch-first. Returns one entry per layer:
      (B, T, ndir*H) if not return_last else (B, ndir*H).
    """
    B, T, Din0 = x.shape
    nlayers = len(params)
    ndir = len(params[0])
    H = params[0][0][1].shape[0]
    S = ndir * H

    lens = jnp.maximum(jnp.asarray(input_lengths, jnp.int32), 1)   # lens[lens==0]=1
    valid = (jnp.arange(T, dtype=jnp.int32)[:, None] < lens[None, :]).astype(jnp.float32)
    vexp = jnp.broadcast_to(valid[:, :, None], (T, B, H))
    keep = jnp.concatenate([vexp, vexp[::-1]], axis=-1) if ndir == 2 else vexp

    # TODO(synk): training-mode LockedDropout not implemented (eval: identity).
    x_tb = jnp.transpose(x, (1, 0, 2))                              # (T, B, Din)
    x_aug = jnp.concatenate([x_tb, x_tb[::-1]], axis=-1) if ndir == 2 else x_tb
    x_aug2d = x_aug.reshape(T * B, ndir * Din0)

    flat_w = []
    for layer in params:
        wih_aug, bias, whh_blk = _pack_layer(layer, H)
        flat_w += [wih_aug, bias, whh_blk]

    out_shape = []
    for _ in range(nlayers):
        out_shape += [jax.ShapeDtypeStruct((T, B, S), jnp.float32),
                      jax.ShapeDtypeStruct((B, S), jnp.float32)]

    kernel = functools.partial(_encoder_kernel, seq_len=T, hidden=H, ndir=ndir,
                               nlayers=nlayers, mm_dtype=matmul_dtype)
    # TODO(synk): at larger T*B*H, stream over time with a grid / BlockSpecs and
    #             set pltpu.CompilerParams(vmem_limit_bytes=...) (v7x has only
    #             64 MiB VMEM); the whole-array-resident design is sized for
    #             small shapes. Splitting directions across v7x's two cores is
    #             left out (conflicts with the block-diagonal fusion).
    results = pl.pallas_call(
        kernel,
        out_shape=tuple(out_shape),
        in_specs=[pl.BlockSpec(memory_space=pltpu.MemorySpace.VMEM)] * (2 + 3 * nlayers),
        out_specs=tuple([pl.BlockSpec(memory_space=pltpu.MemorySpace.VMEM)] * (2 * nlayers)),
    )(x_aug2d, keep, *flat_w)

    outputs = []
    for l in range(nlayers):
        out_l, hlast_l = results[2 * l], results[2 * l + 1]
        outputs.append(hlast_l if return_last else jnp.transpose(out_l, (1, 0, 2)))
    return outputs


# --------------------------- pure-JAX reference ----------------------------- #

def _lstm_direction_ref(x, lens, wih, whh, bias, reverse):
    B, T, _ = x.shape
    H = whh.shape[0]

    def step(carry, s):
        h, c = carry
        tt = (T - 1 - s) if reverse else s
        xt = jax.lax.dynamic_index_in_dim(x, tt, axis=1, keepdims=False)
        gates = (jnp.dot(xt, wih, precision=jax.lax.Precision.HIGHEST)
                 + jnp.dot(h, whh, precision=jax.lax.Precision.HIGHEST) + bias)
        i = jax.nn.sigmoid(gates[:, :H])
        f = jax.nn.sigmoid(gates[:, H:2 * H])
        g = jnp.tanh(gates[:, 2 * H:3 * H])
        o = jax.nn.sigmoid(gates[:, 3 * H:])
        c_new = f * c + i * g
        h_new = o * jnp.tanh(c_new)
        vld = (tt < lens)[:, None].astype(x.dtype)
        h2 = vld * h_new + (1 - vld) * h
        c2 = vld * c_new + (1 - vld) * c
        return (h2, c2), vld * h_new

    init = (jnp.zeros((B, H), x.dtype), jnp.zeros((B, H), x.dtype))
    (h_fin, _), outs = jax.lax.scan(step, init, jnp.arange(T))
    outs = jnp.transpose(outs, (1, 0, 2))
    if reverse:
        outs = outs[:, ::-1, :]
    return outs, h_fin


def encoder_entity_forward_ref(x, input_lengths, params, *, return_last):
    lens = jnp.maximum(jnp.asarray(input_lengths, jnp.int32), 1)
    output = x
    outputs = []
    for layer in params:
        outs_dir, hlast_dir = [], []
        for d, (wih, whh, bias) in enumerate(layer):
            o, hl = _lstm_direction_ref(output, lens, wih, whh, bias, reverse=(d == 1))
            outs_dir.append(o)
            hlast_dir.append(hl)
        output = (jnp.concatenate(outs_dir, axis=-1)
                  if len(outs_dir) > 1 else outs_dir[0])
        if return_last:
            outputs.append(jnp.concatenate(hlast_dir, axis=-1)
                           if len(hlast_dir) > 1 else hlast_dir[0])
        else:
            outputs.append(output)
    return outputs


# ----------------------------------- main ----------------------------------- #

if __name__ == "__main__":
    # Module config: EncoderEntity(input_size=32, num_units=32, nlayers=2,
    #                              concat=True, bidir=True, dropout=0.1,
    #                              return_last=False), eval mode.
    input_size, num_units, nlayers, bidir = 32, 32, 2, True
    B, T = 2, 8

    key = jax.random.PRNGKey(0)
    kx, kp = jax.random.split(key)
    x = jax.random.normal(kx, (B, T, input_size), jnp.float32)
    input_lengths = jnp.array([8, 5], dtype=jnp.int32)

    params = init_encoder_params(kp, input_size, num_units, nlayers, bidir)

    for return_last in (False, True):
        refs = encoder_entity_forward_ref(x, input_lengths, params,
                                          return_last=return_last)

        # f32 MXU path (default): tight tolerance vs. the f32 HIGHEST reference.
        outs = encoder_entity_forward(x, input_lengths, params,
                                      return_last=return_last)
        outs = [jax.block_until_ready(o) for o in outs]
        for o, r in zip(outs, refs):
            assert o.shape == r.shape, (o.shape, r.shape)
            np.testing.assert_allclose(np.asarray(o), np.asarray(r),
                                       rtol=1e-4, atol=1e-4)

        # bf16 MXU-input path (perf option from the review): loosened tolerance
        # since inputs to the MXU are bf16 (accumulation stays f32).
        outs_bf = encoder_entity_forward(x, input_lengths, params,
                                         return_last=return_last,
                                         matmul_dtype=jnp.bfloat16)
        outs_bf = [jax.block_until_ready(o) for o in outs_bf]
        for o, r in zip(outs_bf, refs):
            assert o.shape == r.shape, (o.shape, r.shape)
            np.testing.assert_allclose(np.asarray(o), np.asarray(r),
                                       rtol=5e-2, atol=5e-2)

    print("KERNEL_OK")
</pallas_src>

<mosaic_0001>
module attributes {stable_mosaic.version = 11 : i64} {
  func.func @_encoder_kernel(%arg0: memref<16x64xf32, #tpu.memory_space<vmem>>, %arg1: memref<8x2x64xf32, #tpu.memory_space<vmem>>, %arg2: memref<64x256xf32, #tpu.memory_space<vmem>>, %arg3: memref<1x256xf32, #tpu.memory_space<vmem>>, %arg4: memref<64x256xf32, #tpu.memory_space<vmem>>, %arg5: memref<128x256xf32, #tpu.memory_space<vmem>>, %arg6: memref<1x256xf32, #tpu.memory_space<vmem>>, %arg7: memref<64x256xf32, #tpu.memory_space<vmem>>, %arg8: memref<8x2x64xf32, #tpu.memory_space<vmem>>, %arg9: memref<2x64xf32, #tpu.memory_space<vmem>>, %arg10: memref<8x2x64xf32, #tpu.memory_space<vmem>>, %arg11: memref<2x64xf32, #tpu.memory_space<vmem>>) attributes {dimension_semantics = [], scalar_prefetch = 0 : i64, scratch_operands = 0 : i64, tpu.core_type = #tpu.core_type<tc>} {
    %c0 = arith.constant 0 : index
    %c0_0 = arith.constant 0 : index
    %c0_1 = arith.constant 0 : index
    %0 = vector.load %arg1[%c0, %c0_0, %c0_1] : memref<8x2x64xf32, #tpu.memory_space<vmem>>, vector<1x2x64xf32>
    %1 = vector.shape_cast %0 : vector<1x2x64xf32> to vector<2x64xf32>
    %cst = arith.constant 0.000000e+00 : f32
    %2 = vector.broadcast %cst : f32 to vector<2x64xf32>
    %3 = arith.cmpf ogt, %1, %2 : vector<2x64xf32>
    %c1 = arith.constant 1 : index
    %c0_2 = arith.constant 0 : index
    %c0_3 = arith.constant 0 : index
    %4 = vector.load %arg1[%c1, %c0_2, %c0_3] : memref<8x2x64xf32, #tpu.memory_space<vmem>>, vector<1x2x64xf32>
    %5 = vector.shape_cast %4 : vector<1x2x64xf32> to vector<2x64xf32>
    %cst_4 = arith.constant 0.000000e+00 : f32
    %6 = vector.broadcast %cst_4 : f32 to vector<2x64xf32>
    %7 = arith.cmpf ogt, %5, %6 : vector<2x64xf32>
    %c2 = arith.constant 2 : index
    %c0_5 = arith.constant 0 : index
    %c0_6 = arith.constant 0 : index
    %8 = vector.load %arg1[%c2, %c0_5, %c0_6] : memref<8x2x64xf32, #tpu.memory_space<vmem>>, vector<1x2x64xf32>
    %9 = vector.shape_cast %8 : vector<1x2x64xf32> to vector<2x64xf32>
    %cst_7 = arith.constant 0.000000e+00 : f32
    %10 = vector.broadcast %cst_7 : f32 to vector<2x64xf32>
    %11 = arith.cmpf ogt, %9, %10 : vector<2x64xf32>
    %c3 = arith.constant 3 : index
    %c0_8 = arith.constant 0 : index
    %c0_9 = arith.constant 0 : index
    %12 = vector.load %arg1[%c3, %c0_8, %c0_9] : memref<8x2x64xf32, #tpu.memory_space<vmem>>, vector<1x2x64xf32>
    %13 = vector.shape_cast %12 : vector<1x2x64xf32> to vector<2x64xf32>
    %cst_10 = arith.constant 0.000000e+00 : f32
    %14 = vector.broadcast %cst_10 : f32 to vector<2x64xf32>
    %15 = arith.cmpf ogt, %13, %14 : vector<2x64xf32>
    %c4 = arith.constant 4 : index
    %c0_11 = arith.constant 0 : index
    %c0_12 = arith.constant 0 : index
    %16 = vector.load %arg1[%c4, %c0_11, %c0_12] : memref<8x2x64xf32, #tpu.memory_space<vmem>>, vector<1x2x64xf32>
    %17 = vector.shape_cast %16 : vector<1x2x64xf32> to vector<2x64xf32>
    %cst_13 = arith.constant 0.000000e+00 : f32
    %18 = vector.broadcast %cst_13 : f32 to vector<2x64xf32>
    %19 = arith.cmpf ogt, %17, %18 : vector<2x64xf32>
    %c5 = arith.constant 5 : index
    %c0_14 = arith.constant 0 : index
    %c0_15 = arith.constant 0 : index
    %20 = vector.load %arg1[%c5, %c0_14, %c0_15] : memref<8x2x64xf32, #tpu.memory_space<vmem>>, vector<1x2x64xf32>
    %21 = vector.shape_cast %20 : vector<1x2x64xf32> to vector<2x64xf32>
    %cst_16 = arith.constant 0.000000e+00 : f32
    %22 = vector.broadcast %cst_16 : f32 to vector<2x64xf32>
    %23 = arith.cmpf ogt, %21, %22 : vector<2x64xf32>
    %c6 = arith.constant 6 : index
    %c0_17 = arith.constant 0 : index
    %c0_18 = arith.constant 0 : index
    %24 = vector.load %arg1[%c6, %c0_17, %c0_18] : memref<8x2x64xf32, #tpu.memory_space<vmem>>, vector<1x2x64xf32>
    %25 = vector.shape_cast %24 : vector<1x2x64xf32> to vector<2x64xf32>
    %cst_19 = arith.constant 0.000000e+00 : f32
    %26 = vector.broadcast %cst_19 : f32 to vector<2x64xf32>
    %27 = arith.cmpf ogt, %25, %26 : vector<2x64xf32>
    %c7 = arith.constant 7 : index
    %c0_20 = arith.constant 0 : index
    %c0_21 = arith.constant 0 : index
    %28 = vector.load %arg1[%c7, %c0_20, %c0_21] : memref<8x2x64xf32, #tpu.memory_space<vmem>>, vector<1x2x64xf32>
    %29 = vector.shape_cast %28 : vector<1x2x64xf32> to vector<2x64xf32>
    %cst_22 = arith.constant 0.000000e+00 : f32
    %30 = vector.broadcast %cst_22 : f32 to vector<2x64xf32>
    %31 = arith.cmpf ogt, %29, %30 : vector<2x64xf32>
    %c0_23 = arith.constant 0 : index
    %c0_24 = arith.constant 0 : index
    %32 = vector.load %arg0[%c0_23, %c0_24] : memref<16x64xf32, #tpu.memory_space<vmem>>, vector<16x64xf32>
    %c0_25 = arith.constant 0 : index
    %c0_26 = arith.constant 0 : index
    %33 = vector.load %arg2[%c0_25, %c0_26] : memref<64x256xf32, #tpu.memory_space<vmem>>, vector<64x256xf32>
    %cst_27 = arith.constant dense<0.000000e+00> : vector<16x256xf32>
    %34 = tpu.matmul %32, %33, %cst_27 {dimension_numbers = #tpu.dot_dimension_numbers<[1], [0], [0], [1], [0, 0, 1, 1], [], []>} : vector<16x64xf32>, vector<64x256xf32>, vector<16x256xf32> -> vector<16x256xf32>
    %c0_28 = arith.constant 0 : index
    %c0_29 = arith.constant 0 : index
    %35 = vector.load %arg3[%c0_28, %c0_29] : memref<1x256xf32, #tpu.memory_space<vmem>>, vector<1x256xf32>
    %36 = vector.broadcast %35 : vector<1x256xf32> to vector<16x256xf32>
    %37 = arith.addf %34, %36 : vector<16x256xf32>
    %38 = vector.extract_strided_slice %37 {offsets = [0, 0], sizes = [2, 256], strides = [1, 1]} : vector<16x256xf32> to vector<2x256xf32>
    %39 = vector.extract_strided_slice %37 {offsets = [2, 0], sizes = [2, 256], strides = [1, 1]} : vector<16x256xf32> to vector<2x256xf32>
    %40 = vector.extract_strided_slice %37 {offsets = [4, 0], sizes = [2, 256], strides = [1, 1]} : vector<16x256xf32> to vector<2x256xf32>
    %41 = vector.extract_strided_slice %37 {offsets = [6, 0], sizes = [2, 256], strides = [1, 1]} : vector<16x256xf32> to vector<2x256xf32>
    %42 = vector.extract_strided_slice %37 {offsets = [8, 0], sizes = [2, 256], strides = [1, 1]} : vector<16x256xf32> to vector<2x256xf32>
    %43 = vector.extract_strided_slice %37 {offsets = [10, 0], sizes = [2, 256], strides = [1, 1]} : vector<16x256xf32> to vector<2x256xf32>
    %44 = vector.extract_strided_slice %37 {offsets = [12, 0], sizes = [2, 256], strides = [1, 1]} : vector<16x256xf32> to vector<2x256xf32>
    %45 = vector.extract_strided_slice %37 {offsets = [14, 0], sizes = [2, 256], strides = [1, 1]} : vector<16x256xf32> to vector<2x256xf32>
    %c0_30 = arith.constant 0 : index
    %c0_31 = arith.constant 0 : index
    %46 = vector.load %arg4[%c0_30, %c0_31] : memref<64x256xf32, #tpu.memory_space<vmem>>, vector<64x256xf32>
    %cst_32 = arith.constant 0.000000e+00 : f32
    %47 = vector.broadcast %cst_32 : f32 to vector<2x64xf32>
    %cst_33 = arith.constant 0.000000e+00 : f32
    %48 = vector.broadcast %cst_33 : f32 to vector<2x64xf32>
    %cst_34 = arith.constant dense<0.000000e+00> : vector<2x256xf32>
    %49 = tpu.matmul %47, %46, %cst_34 {dimension_numbers = #tpu.dot_dimension_numbers<[1], [0], [0], [1], [0, 0, 1, 1], [], []>} : vector<2x64xf32>, vector<64x256xf32>, vector<2x256xf32> -> vector<2x256xf32>
    %50 = arith.addf %38, %49 : vector<2x256xf32>
    %51 = vector.extract_strided_slice %50 {offsets = [0, 0], sizes = [2, 192], strides = [1, 1]} : vector<2x256xf32> to vector<2x192xf32>
    %52 = arith.negf %51 : vector<2x192xf32>
    %53 = math.exp %52 : vector<2x192xf32>
    %cst_35 = arith.constant 1.000000e+00 : f32
    %54 = vector.broadcast %cst_35 : f32 to vector<2x192xf32>
    %55 = arith.addf %54, %53 : vector<2x192xf32>
    %56 = arith.divf %54, %55 : vector<2x192xf32>
    %57 = vector.extract_strided_slice %50 {offsets = [0, 192], sizes = [2, 64], strides = [1, 1]} : vector<2x256xf32> to vector<2x64xf32>
    %58 = math.tanh %57 : vector<2x64xf32>
    %59 = vector.extract_strided_slice %56 {offsets = [0, 64], sizes = [2, 64], strides = [1, 1]} : vector<2x192xf32> to vector<2x64xf32>
    %60 = arith.mulf %59, %48 : vector<2x64xf32>
    %61 = vector.extract_strided_slice %56 {offsets = [0, 0], sizes = [2, 64], strides = [1, 1]} : vector<2x192xf32> to vector<2x64xf32>
    %62 = arith.mulf %61, %58 : vector<2x64xf32>
    %63 = arith.addf %60, %62 : vector<2x64xf32>
    %64 = vector.extract_strided_slice %56 {offsets = [0, 128], sizes = [2, 64], strides = [1, 1]} : vector<2x192xf32> to vector<2x64xf32>
    %65 = math.tanh %63 : vector<2x64xf32>
    %66 = arith.mulf %64, %65 : vector<2x64xf32>
    %67 = arith.select %3, %66, %47 : vector<2x64xi1>, vector<2x64xf32>
    %68 = arith.select %3, %63, %48 : vector<2x64xi1>, vector<2x64xf32>
    %cst_36 = arith.constant 0.000000e+00 : f32
    %69 = vector.broadcast %cst_36 : f32 to vector<2x64xf32>
    %70 = arith.select %3, %66, %69 : vector<2x64xi1>, vector<2x64xf32>
    %cst_37 = arith.constant dense<0.000000e+00> : vector<2x256xf32>
    %71 = tpu.matmul %67, %46, %cst_37 {dimension_numbers = #tpu.dot_dimension_numbers<[1], [0], [0], [1], [0, 0, 1, 1], [], []>} : vector<2x64xf32>, vector<64x256xf32>, vector<2x256xf32> -> vector<2x256xf32>
    %72 = arith.addf %39, %71 : vector<2x256xf32>
    %73 = vector.extract_strided_slice %72 {offsets = [0, 0], sizes = [2, 192], strides = [1, 1]} : vector<2x256xf32> to vector<2x192xf32>
    %74 = arith.negf %73 : vector<2x192xf32>
    %75 = math.exp %74 : vector<2x192xf32>
    %cst_38 = arith.constant 1.000000e+00 : f32
    %76 = vector.broadcast %cst_38 : f32 to vector<2x192xf32>
    %77 = arith.addf %76, %75 : vector<2x192xf32>
    %78 = arith.divf %76, %77 : vector<2x192xf32>
    %79 = vector.extract_strided_slice %72 {offsets = [0, 192], sizes = [2, 64], strides = [1, 1]} : vector<2x256xf32> to vector<2x64xf32>
    %80 = math.tanh %79 : vector<2x64xf32>
    %81 = vector.extract_strided_slice %78 {offsets = [0, 64], sizes = [2, 64], strides = [1, 1]} : vector<2x192xf32> to vector<2x64xf32>
    %82 = arith.mulf %81, %68 : vector<2x64xf32>
    %83 = vector.extract_strided_slice %78 {offsets = [0, 0], sizes = [2, 64], strides = [1, 1]} : vector<2x192xf32> to vector<2x64xf32>
    %84 = arith.mulf %83, %80 : vector<2x64xf32>
    %85 = arith.addf %82, %84 : vector<2x64xf32>
    %86 = vector.extract_strided_slice %78 {offsets = [0, 128], sizes = [2, 64], strides = [1, 1]} : vector<2x192xf32> to vector<2x64xf32>
    %87 = math.tanh %85 : vector<2x64xf32>
    %88 = arith.mulf %86, %87 : vector<2x64xf32>
    %89 = arith.select %7, %88, %67 : vector<2x64xi1>, vector<2x64xf32>
    %90 = arith.select %7, %85, %68 : vector<2x64xi1>, vector<2x64xf32>
    %cst_39 = arith.constant 0.000000e+00 : f32
    %91 = vector.broadcast %cst_39 : f32 to vector<2x64xf32>
    %92 = arith.select %7, %88, %91 : vector<2x64xi1>, vector<2x64xf32>
    %cst_40 = arith.constant dense<0.000000e+00> : vector<2x256xf32>
    %93 = tpu.matmul %89, %46, %cst_40 {dimension_numbers = #tpu.dot_dimension_numbers<[1], [0], [0], [1], [0, 0, 1, 1], [], []>} : vector<2x64xf32>, vector<64x256xf32>, vector<2x256xf32> -> vector<2x256xf32>
    %94 = arith.addf %40, %93 : vector<2x256xf32>
    %95 = vector.extract_strided_slice %94 {offsets = [0, 0], sizes = [2, 192], strides = [1, 1]} : vector<2x256xf32> to vector<2x192xf32>
    %96 = arith.negf %95 : vector<2x192xf32>
    %97 = math.exp %96 : vector<2x192xf32>
    %cst_41 = arith.constant 1.000000e+00 : f32
    %98 = vector.broadcast %cst_41 : f32 to vector<2x192xf32>
    %99 = arith.addf %98, %97 : vector<2x192xf32>
    %100 = arith.divf %98, %99 : vector<2x192xf32>
    %101 = vector.extract_strided_slice %94 {offsets = [0, 192], sizes = [2, 64], strides = [1, 1]} : vector<2x256xf32> to vector<2x64xf32>
    %102 = math.tanh %101 : vector<2x64xf32>
    %103 = vector.extract_strided_slice %100 {offsets = [0, 64], sizes = [2, 64], strides = [1, 1]} : vector<2x192xf32> to vector<2x64xf32>
    %104 = arith.mulf %103, %90 : vector<2x64xf32>
    %105 = vector.extract_strided_slice %100 {offsets = [0, 0], sizes = [2, 64], strides = [1, 1]} : vector<2x192xf32> to vector<2x64xf32>
    %106 = arith.mulf %105, %102 : vector<2x64xf32>
    %107 = arith.addf %104, %106 : vector<2x64xf32>
    %108 = vector.extract_strided_slice %100 {offsets = [0, 128], sizes = [2, 64], strides = [1, 1]} : vector<2x192xf32> to vector<2x64xf32>
    %109 = math.tanh %107 : vector<2x64xf32>
    %110 = arith.mulf %108, %109 : vector<2x64xf32>
    %111 = arith.select %11, %110, %89 : vector<2x64xi1>, vector<2x64xf32>
    %112 = arith.select %11, %107, %90 : vector<2x64xi1>, vector<2x64xf32>
    %cst_42 = arith.constant 0.000000e+00 : f32
    %113 = vector.broadcast %cst_42 : f32 to vector<2x64xf32>
    %114 = arith.select %11, %110, %113 : vector<2x64xi1>, vector<2x64xf32>
    %cst_43 = arith.constant dense<0.000000e+00> : vector<2x256xf32>
    %115 = tpu.matmul %111, %46, %cst_43 {dimension_numbers = #tpu.dot_dimension_numbers<[1], [0], [0], [1], [0, 0, 1, 1], [], []>} : vector<2x64xf32>, vector<64x256xf32>, vector<2x256xf32> -> vector<2x256xf32>
    %116 = arith.addf %41, %115 : vector<2x256xf32>
    %117 = vector.extract_strided_slice %116 {offsets = [0, 0], sizes = [2, 192], strides = [1, 1]} : vector<2x256xf32> to vector<2x192xf32>
    %118 = arith.negf %117 : vector<2x192xf32>
    %119 = math.exp %118 : vector<2x192xf32>
    %cst_44 = arith.constant 1.000000e+00 : f32
    %120 = vector.broadcast %cst_44 : f32 to vector<2x192xf32>
    %121 = arith.addf %120, %119 : vector<2x192xf32>
    %122 = arith.divf %120, %121 : vector<2x192xf32>
    %123 = vector.extract_strided_slice %116 {offsets = [0, 192], sizes = [2, 64], strides = [1, 1]} : vector<2x256xf32> to vector<2x64xf32>
    %124 = math.tanh %123 : vector<2x64xf32>
    %125 = vector.extract_strided_slice %122 {offsets = [0, 64], sizes = [2, 64], strides = [1, 1]} : vector<2x192xf32> to vector<2x64xf32>
    %126 = arith.mulf %125, %112 : vector<2x64xf32>
    %127 = vector.extract_strided_slice %122 {offsets = [0, 0], sizes = [2, 64], strides = [1, 1]} : vector<2x192xf32> to vector<2x64xf32>
    %128 = arith.mulf %127, %124 : vector<2x64xf32>
    %129 = arith.addf %126, %128 : vector<2x64xf32>
    %130 = vector.extract_strided_slice %122 {offsets = [0, 128], sizes = [2, 64], strides = [1, 1]} : vector<2x192xf32> to vector<2x64xf32>
    %131 = math.tanh %129 : vector<2x64xf32>
    %132 = arith.mulf %130, %131 : vector<2x64xf32>
    %133 = arith.select %15, %132, %111 : vector<2x64xi1>, vector<2x64xf32>
    %134 = arith.select %15, %129, %112 : vector<2x64xi1>, vector<2x64xf32>
    %cst_45 = arith.constant 0.000000e+00 : f32
    %135 = vector.broadcast %cst_45 : f32 to vector<2x64xf32>
    %136 = arith.select %15, %132, %135 : vector<2x64xi1>, vector<2x64xf32>
    %cst_46 = arith.constant dense<0.000000e+00> : vector<2x256xf32>
    %137 = tpu.matmul %133, %46, %cst_46 {dimension_numbers = #tpu.dot_dimension_numbers<[1], [0], [0], [1], [0, 0, 1, 1], [], []>} : vector<2x64xf32>, vector<64x256xf32>, vector<2x256xf32> -> vector<2x256xf32>
    %138 = arith.addf %42, %137 : vector<2x256xf32>
    %139 = vector.extract_strided_slice %138 {offsets = [0, 0], sizes = [2, 192], strides = [1, 1]} : vector<2x256xf32> to vector<2x192xf32>
    %140 = arith.negf %139 : vector<2x192xf32>
    %141 = math.exp %140 : vector<2x192xf32>
    %cst_47 = arith.constant 1.000000e+00 : f32
    %142 = vector.broadcast %cst_47 : f32 to vector<2x192xf32>
    %143 = arith.addf %142, %141 : vector<2x192xf32>
    %144 = arith.divf %142, %143 : vector<2x192xf32>
    %145 = vector.extract_strided_slice %138 {offsets = [0, 192], sizes = [2, 64], strides = [1, 1]} : vector<2x256xf32> to vector<2x64xf32>
    %146 = math.tanh %145 : vector<2x64xf32>
    %147 = vector.extract_strided_slice %144 {offsets = [0, 64], sizes = [2, 64], strides = [1, 1]} : vector<2x192xf32> to vector<2x64xf32>
    %148 = arith.mulf %147, %134 : vector<2x64xf32>
    %149 = vector.extract_strided_slice %144 {offsets = [0, 0], sizes = [2, 64], strides = [1, 1]} : vector<2x192xf32> to vector<2x64xf32>
    %150 = arith.mulf %149, %146 : vector<2x64xf32>
    %151 = arith.addf %148, %150 : vector<2x64xf32>
    %152 = vector.extract_strided_slice %144 {offsets = [0, 128], sizes = [2, 64], strides = [1, 1]} : vector<2x192xf32> to vector<2x64xf32>
    %153 = math.tanh %151 : vector<2x64xf32>
    %154 = arith.mulf %152, %153 : vector<2x64xf32>
    %155 = arith.select %19, %154, %133 : vector<2x64xi1>, vector<2x64xf32>
    %156 = arith.select %19, %151, %134 : vector<2x64xi1>, vector<2x64xf32>
    %cst_48 = arith.constant 0.000000e+00 : f32
    %157 = vector.broadcast %cst_48 : f32 to vector<2x64xf32>
    %158 = arith.select %19, %154, %157 : vector<2x64xi1>, vector<2x64xf32>
    %cst_49 = arith.constant dense<0.000000e+00> : vector<2x256xf32>
    %159 = tpu.matmul %155, %46, %cst_49 {dimension_numbers = #tpu.dot_dimension_numbers<[1], [0], [0], [1], [0, 0, 1, 1], [], []>} : vector<2x64xf32>, vector<64x256xf32>, vector<2x256xf32> -> vector<2x256xf32>
    %160 = arith.addf %43, %159 : vector<2x256xf32>
    %161 = vector.extract_strided_slice %160 {offsets = [0, 0], sizes = [2, 192], strides = [1, 1]} : vector<2x256xf32> to vector<2x192xf32>
    %162 = arith.negf %161 : vector<2x192xf32>
    %163 = math.exp %162 : vector<2x192xf32>
    %cst_50 = arith.constant 1.000000e+00 : f32
    %164 = vector.broadcast %cst_50 : f32 to vector<2x192xf32>
    %165 = arith.addf %164, %163 : vector<2x192xf32>
    %166 = arith.divf %164, %165 : vector<2x192xf32>
    %167 = vector.extract_strided_slice %160 {offsets = [0, 192], sizes = [2, 64], strides = [1, 1]} : vector<2x256xf32> to vector<2x64xf32>
    %168 = math.tanh %167 : vector<2x64xf32>
    %169 = vector.extract_strided_slice %166 {offsets = [0, 64], sizes = [2, 64], strides = [1, 1]} : vector<2x192xf32> to vector<2x64xf32>
    %170 = arith.mulf %169, %156 : vector<2x64xf32>
    %171 = vector.extract_strided_slice %166 {offsets = [0, 0], sizes = [2, 64], strides = [1, 1]} : vector<2x192xf32> to vector<2x64xf32>
    %172 = arith.mulf %171, %168 : vector<2x64xf32>
    %173 = arith.addf %170, %172 : vector<2x64xf32>
    %174 = vector.extract_strided_slice %166 {offsets = [0, 128], sizes = [2, 64], strides = [1, 1]} : vector<2x192xf32> to vector<2x64xf32>
    %175 = math.tanh %173 : vector<2x64xf32>
    %176 = arith.mulf %174, %175 : vector<2x64xf32>
    %177 = arith.select %23, %176, %155 : vector<2x64xi1>, vector<2x64xf32>
    %178 = arith.select %23, %173, %156 : vector<2x64xi1>, vector<2x64xf32>
    %cst_51 = arith.constant 0.000000e+00 : f32
    %179 = vector.broadcast %cst_51 : f32 to vector<2x64xf32>
    %180 = arith.select %23, %176, %179 : vector<2x64xi1>, vector<2x64xf32>
    %cst_52 = arith.constant dense<0.000000e+00> : vector<2x256xf32>
    %181 = tpu.matmul %177, %46, %cst_52 {dimension_numbers = #tpu.dot_dimension_numbers<[1], [0], [0], [1], [0, 0, 1, 1], [], []>} : vector<2x64xf32>, vector<64x256xf32>, vector<2x256xf32> -> vector<2x256xf32>
    %182 = arith.addf %44, %181 : vector<2x256xf32>
    %183 = vector.extract_strided_slice %182 {offsets = [0, 0], sizes = [2, 192], strides = [1, 1]} : vector<2x256xf32> to vector<2x192xf32>
    %184 = arith.negf %183 : vector<2x192xf32>
    %185 = math.exp %184 : vector<2x192xf32>
    %cst_53 = arith.constant 1.000000e+00 : f32
    %186 = vector.broadcast %cst_53 : f32 to vector<2x192xf32>
    %187 = arith.addf %186, %185 : vector<2x192xf32>
    %188 = arith.divf %186, %187 : vector<2x192xf32>
    %189 = vector.extract_strided_slice %182 {offsets = [0, 192], sizes = [2, 64], strides = [1, 1]} : vector<2x256xf32> to vector<2x64xf32>
    %190 = math.tanh %189 : vector<2x64xf32>
    %191 = vector.extract_strided_slice %188 {offsets = [0, 64], sizes = [2, 64], strides = [1, 1]} : vector<2x192xf32> to vector<2x64xf32>
    %192 = arith.mulf %191, %178 : vector<2x64xf32>
    %193 = vector.extract_strided_slice %188 {offsets = [0, 0], sizes = [2, 64], strides = [1, 1]} : vector<2x192xf32> to vector<2x64xf32>
    %194 = arith.mulf %193, %190 : vector<2x64xf32>
    %195 = arith.addf %192, %194 : vector<2x64xf32>
    %196 = vector.extract_strided_slice %188 {offsets = [0, 128], sizes = [2, 64], strides = [1, 1]} : vector<2x192xf32> to vector<2x64xf32>
    %197 = math.tanh %195 : vector<2x64xf32>
    %198 = arith.mulf %196, %197 : vector<2x64xf32>
    %199 = arith.select %27, %198, %177 : vector<2x64xi1>, vector<2x64xf32>
    %200 = arith.select %27, %195, %178 : vector<2x64xi1>, vector<2x64xf32>
    %cst_54 = arith.constant 0.000000e+00 : f32
    %201 = vector.broadcast %cst_54 : f32 to vector<2x64xf32>
    %202 = arith.select %27, %198, %201 : vector<2x64xi1>, vector<2x64xf32>
    %cst_55 = arith.constant dense<0.000000e+00> : vector<2x256xf32>
    %203 = tpu.matmul %199, %46, %cst_55 {dimension_numbers = #tpu.dot_dimension_numbers<[1], [0], [0], [1], [0, 0, 1, 1], [], []>} : vector<2x64xf32>, vector<64x256xf32>, vector<2x256xf32> -> vector<2x256xf32>
    %204 = arith.addf %45, %203 : vector<2x256xf32>
    %205 = vector.extract_strided_slice %204 {offsets = [0, 0], sizes = [2, 192], strides = [1, 1]} : vector<2x256xf32> to vector<2x192xf32>
    %206 = arith.negf %205 : vector<2x192xf32>
    %207 = math.exp %206 : vector<2x192xf32>
    %cst_56 = arith.constant 1.000000e+00 : f32
    %208 = vector.broadcast %cst_56 : f32 to vector<2x192xf32>
    %209 = arith.addf %208, %207 : vector<2x192xf32>
    %210 = arith.divf %208, %209 : vector<2x192xf32>
    %211 = vector.extract_strided_slice %204 {offsets = [0, 192], sizes = [2, 64], strides = [1, 1]} : vector<2x256xf32> to vector<2x64xf32>
    %212 = math.tanh %211 : vector<2x64xf32>
    %213 = vector.extract_strided_slice %210 {offsets = [0, 64], sizes = [2, 64], strides = [1, 1]} : vector<2x192xf32> to vector<2x64xf32>
    %214 = arith.mulf %213, %200 : vector<2x64xf32>
    %215 = vector.extract_strided_slice %210 {offsets = [0, 0], sizes = [2, 64], strides = [1, 1]} : vector<2x192xf32> to vector<2x64xf32>
    %216 = arith.mulf %215, %212 : vector<2x64xf32>
    %217 = arith.addf %214, %216 : vector<2x64xf32>
    %218 = vector.extract_strided_slice %210 {offsets = [0, 128], sizes = [2, 64], strides = [1, 1]} : vector<2x192xf32> to vector<2x64xf32>
    %219 = math.tanh %217 : vector<2x64xf32>
    %220 = arith.mulf %218, %219 : vector<2x64xf32>
    %221 = arith.select %31, %220, %199 : vector<2x64xi1>, vector<2x64xf32>
    %cst_57 = arith.constant 0.000000e+00 : f32
    %222 = vector.broadcast %cst_57 : f32 to vector<2x64xf32>
    %223 = arith.select %31, %220, %222 : vector<2x64xi1>, vector<2x64xf32>
    %224 = vector.extract_strided_slice %70 {offsets = [0, 0], sizes = [2, 32], strides = [1, 1]} : vector<2x64xf32> to vector<2x32xf32>
    %225 = vector.extract_strided_slice %223 {offsets = [0, 32], sizes = [2, 32], strides = [1, 1]} : vector<2x64xf32> to vector<2x32xf32>
    %226 = tpu.concatenate %224, %225 in 1 : vector<2x32xf32>, vector<2x32xf32> -> vector<2x64xf32>
    %227 = vector.extract_strided_slice %92 {offsets = [0, 0], sizes = [2, 32], strides = [1, 1]} : vector<2x64xf32> to vector<2x32xf32>
    %228 = vector.extract_strided_slice %202 {offsets = [0, 32], sizes = [2, 32], strides = [1, 1]} : vector<2x64xf32> to vector<2x32xf32>
    %229 = tpu.concatenate %227, %228 in 1 : vector<2x32xf32>, vector<2x32xf32> -> vector<2x64xf32>
    %230 = vector.extract_strided_slice %114 {offsets = [0, 0], sizes = [2, 32], strides = [1, 1]} : vector<2x64xf32> to vector<2x32xf32>
    %231 = vector.extract_strided_slice %180 {offsets = [0, 32], sizes = [2, 32], strides = [1, 1]} : vector<2x64xf32> to vector<2x32xf32>
    %232 = tpu.concatenate %230, %231 in 1 : vector<2x32xf32>, vector<2x32xf32> -> vector<2x64xf32>
    %233 = vector.extract_strided_slice %136 {offsets = [0, 0], sizes = [2, 32], strides = [1, 1]} : vector<2x64xf32> to vector<2x32xf32>
    %234 = vector.extract_strided_slice %158 {offsets = [0, 32], sizes = [2, 32], strides = [1, 1]} : vector<2x64xf32> to vector<2x32xf32>
    %235 = tpu.concatenate %233, %234 in 1 : vector<2x32xf32>, vector<2x32xf32> -> vector<2x64xf32>
    %236 = vector.extract_strided_slice %158 {offsets = [0, 0], sizes = [2, 32], strides = [1, 1]} : vector<2x64xf32> to vector<2x32xf32>
    %237 = vector.extract_strided_slice %136 {offsets = [0, 32], sizes = [2, 32], strides = [1, 1]} : vector<2x64xf32> to vector<2x32xf32>
    %238 = tpu.concatenate %236, %237 in 1 : vector<2x32xf32>, vector<2x32xf32> -> vector<2x64xf32>
    %239 = vector.extract_strided_slice %180 {offsets = [0, 0], sizes = [2, 32], strides = [1, 1]} : vector<2x64xf32> to vector<2x32xf32>
    %240 = vector.extract_strided_slice %114 {offsets = [0, 32], sizes = [2, 32], strides = [1, 1]} : vector<2x64xf32> to vector<2x32xf32>
    %241 = tpu.concatenate %239, %240 in 1 : vector<2x32xf32>, vector<2x32xf32> -> vector<2x64xf32>
    %242 = vector.extract_strided_slice %202 {offsets = [0, 0], sizes = [2, 32], strides = [1, 1]} : vector<2x64xf32> to vector<2x32xf32>
    %243 = vector.extract_strided_slice %92 {offsets = [0, 32], sizes = [2, 32], strides = [1, 1]} : vector<2x64xf32> to vector<2x32xf32>
    %244 = tpu.concatenate %242, %243 in 1 : vector<2x32xf32>, vector<2x32xf32> -> vector<2x64xf32>
    %245 = vector.extract_strided_slice %223 {offsets = [0, 0], sizes = [2, 32], strides = [1, 1]} : vector<2x64xf32> to vector<2x32xf32>
    %246 = vector.extract_strided_slice %70 {offsets = [0, 32], sizes = [2, 32], strides = [1, 1]} : vector<2x64xf32> to vector<2x32xf32>
    %247 = tpu.concatenate %245, %246 in 1 : vector<2x32xf32>, vector<2x32xf32> -> vector<2x64xf32>
    %c0_58 = arith.constant 0 : index
    %c0_59 = arith.constant 0 : index
    %c0_60 = arith.constant 0 : index
    %248 = vector.load %arg8[%c0_58, %c0_59, %c0_60] : memref<8x2x64xf32, #tpu.memory_space<vmem>>, vector<1x2x64xf32>
    %249 = vector.shape_cast %248 : vector<1x2x64xf32> to vector<2x64xf32>
    %250 = vector.shape_cast %226 : vector<2x64xf32> to vector<1x2x64xf32>
    tpu.vector_store %arg8[%c0_58, %c0_59, %c0_60], %250 {strides = array<i32>} : memref<8x2x64xf32, #tpu.memory_space<vmem>>, vector<1x2x64xf32>,
    %c1_61 = arith.constant 1 : index
    %c0_62 = arith.constant 0 : index
    %c0_63 = arith.constant 0 : index
    %251 = vector.load %arg8[%c1_61, %c0_62, %c0_63] : memref<8x2x64xf32, #tpu.memory_space<vmem>>, vector<1x2x64xf32>
    %252 = vector.shape_cast %251 : vector<1x2x64xf32> to vector<2x64xf32>
    %253 = vector.shape_cast %229 : vector<2x64xf32> to vector<1x2x64xf32>
    tpu.vector_store %arg8[%c1_61, %c0_62, %c0_63], %253 {strides = array<i32>} : memref<8x2x64xf32, #tpu.memory_space<vmem>>, vector<1x2x64xf32>,
    %c2_64 = arith.constant 2 : index
    %c0_65 = arith.constant 0 : index
    %c0_66 = arith.constant 0 : index
    %254 = vector.load %arg8[%c2_64, %c0_65, %c0_66] : memref<8x2x64xf32, #tpu.memory_space<vmem>>, vector<1x2x64xf32>
    %255 = vector.shape_cast %254 : vector<1x2x64xf32> to vector<2x64xf32>
    %256 = vector.shape_cast %232 : vector<2x64xf32> to vector<1x2x64xf32>
    tpu.vector_store %arg8[%c2_64, %c0_65, %c0_66], %256 {strides = array<i32>} : memref<8x2x64xf32, #tpu.memory_space<vmem>>, vector<1x2x64xf32>,
    %c3_67 = arith.constant 3 : index
    %c0_68 = arith.constant 0 : index
    %c0_69 = arith.constant 0 : index
    %257 = vector.load %arg8[%c3_67, %c0_68, %c0_69] : memref<8x2x64xf32, #tpu.memory_space<vmem>>, vector<1x2x64xf32>
    %258 = vector.shape_cast %257 : vector<1x2x64xf32> to vector<2x64xf32>
    %259 = vector.shape_cast %235 : vector<2x64xf32> to vector<1x2x64xf32>
    tpu.vector_store %arg8[%c3_67, %c0_68, %c0_69], %259 {strides = array<i32>} : memref<8x2x64xf32, #tpu.memory_space<vmem>>, vector<1x2x64xf32>,
    %c4_70 = arith.constant 4 : index
    %c0_71 = arith.constant 0 : index
    %c0_72 = arith.constant 0 : index
    %260 = vector.load %arg8[%c4_70, %c0_71, %c0_72] : memref<8x2x64xf32, #tpu.memory_space<vmem>>, vector<1x2x64xf32>
    %261 = vector.shape_cast %260 : vector<1x2x64xf32> to vector<2x64xf32>
    %262 = vector.shape_cast %238 : vector<2x64xf32> to vector<1x2x64xf32>
    tpu.vector_store %arg8[%c4_70, %c0_71, %c0_72], %262 {strides = array<i32>} : memref<8x2x64xf32, #tpu.memory_space<vmem>>, vector<1x2x64xf32>,
    %c5_73 = arith.constant 5 : index
    %c0_74 = arith.constant 0 : index
    %c0_75 = arith.constant 0 : index
    %263 = vector.load %arg8[%c5_73, %c0_74, %c0_75] : memref<8x2x64xf32, #tpu.memory_space<vmem>>, vector<1x2x64xf32>
    %264 = vector.shape_cast %263 : vector<1x2x64xf32> to vector<2x64xf32>
    %265 = vector.shape_cast %241 : vector<2x64xf32> to vector<1x2x64xf32>
    tpu.vector_store %arg8[%c5_73, %c0_74, %c0_75], %265 {strides = array<i32>} : memref<8x2x64xf32, #tpu.memory_space<vmem>>, vector<1x2x64xf32>,
    %c6_76 = arith.constant 6 : index
    %c0_77 = arith.constant 0 : index
    %c0_78 = arith.constant 0 : index
    %266 = vector.load %arg8[%c6_76, %c0_77, %c0_78] : memref<8x2x64xf32, #tpu.memory_space<vmem>>, vector<1x2x64xf32>
    %267 = vector.shape_cast %266 : vector<1x2x64xf32> to vector<2x64xf32>
    %268 = vector.shape_cast %244 : vector<2x64xf32> to vector<1x2x64xf32>
    tpu.vector_store %arg8[%c6_76, %c0_77, %c0_78], %268 {strides = array<i32>} : memref<8x2x64xf32, #tpu.memory_space<vmem>>, vector<1x2x64xf32>,
    %c7_79 = arith.constant 7 : index
    %c0_80 = arith.constant 0 : index
    %c0_81 = arith.constant 0 : index
    %269 = vector.load %arg8[%c7_79, %c0_80, %c0_81] : memref<8x2x64xf32, #tpu.memory_space<vmem>>, vector<1x2x64xf32>
    %270 = vector.shape_cast %269 : vector<1x2x64xf32> to vector<2x64xf32>
    %271 = vector.shape_cast %247 : vector<2x64xf32> to vector<1x2x64xf32>
    tpu.vector_store %arg8[%c7_79, %c0_80, %c0_81], %271 {strides = array<i32>} : memref<8x2x64xf32, #tpu.memory_space<vmem>>, vector<1x2x64xf32>,
    %c0_82 = arith.constant 0 : index
    %c0_83 = arith.constant 0 : index
    %272 = vector.load %arg9[%c0_82, %c0_83] : memref<2x64xf32, #tpu.memory_space<vmem>>, vector<2x64xf32>
    tpu.vector_store %arg9[%c0_82, %c0_83], %221 {strides = array<i32>} : memref<2x64xf32, #tpu.memory_space<vmem>>, vector<2x64xf32>,
    %273 = tpu.concatenate %226, %229, %232, %235, %238, %241, %244, %247 in 0 : vector<2x64xf32>, vector<2x64xf32>, vector<2x64xf32>, vector<2x64xf32>, vector<2x64xf32>, vector<2x64xf32>, vector<2x64xf32>, vector<2x64xf32> -> vector<16x64xf32>
    %274 = tpu.concatenate %247, %244, %241, %238, %235, %232, %229, %226 in 0 : vector<2x64xf32>, vector<2x64xf32>, vector<2x64xf32>, vector<2x64xf32>, vector<2x64xf32>, vector<2x64xf32>, vector<2x64xf32>, vector<2x64xf32> -> vector<16x64xf32>
    %275 = tpu.concatenate %273, %274 in 1 : vector<16x64xf32>, vector<16x64xf32> -> vector<16x128xf32>
    %c0_84 = arith.constant 0 : index
    %c0_85 = arith.constant 0 : index
    %276 = vector.load %arg5[%c0_84, %c0_85] : memref<128x256xf32, #tpu.memory_space<vmem>>, vector<128x256xf32>
    %cst_86 = arith.constant dense<0.000000e+00> : vector<16x256xf32>
    %277 = tpu.matmul %275, %276, %cst_86 {dimension_numbers = #tpu.dot_dimension_numbers<[1], [0], [0], [1], [0, 0, 1, 1], [], []>} : vector<16x128xf32>, vector<128x256xf32>, vector<16x256xf32> -> vector<16x256xf32>
    %c0_87 = arith.constant 0 : index
    %c0_88 = arith.constant 0 : index
    %278 = vector.load %arg6[%c0_87, %c0_88] : memref<1x256xf32, #tpu.memory_space<vmem>>, vector<1x256xf32>
    %279 = vector.broadcast %278 : vector<1x256xf32> to vector<16x256xf32>
    %280 = arith.addf %277, %279 : vector<16x256xf32>
    %281 = vector.extract_strided_slice %280 {offsets = [0, 0], sizes = [2, 256], strides = [1, 1]} : vector<16x256xf32> to vector<2x256xf32>
    %282 = vector.extract_strided_slice %280 {offsets = [2, 0], sizes = [2, 256], strides = [1, 1]} : vector<16x256xf32> to vector<2x256xf32>
    %283 = vector.extract_strided_slice %280 {offsets = [4, 0], sizes = [2, 256], strides = [1, 1]} : vector<16x256xf32> to vector<2x256xf32>
    %284 = vector.extract_strided_slice %280 {offsets = [6, 0], sizes = [2, 256], strides = [1, 1]} : vector<16x256xf32> to vector<2x256xf32>
    %285 = vector.extract_strided_slice %280 {offsets = [8, 0], sizes = [2, 256], strides = [1, 1]} : vector<16x256xf32> to vector<2x256xf32>
    %286 = vector.extract_strided_slice %280 {offsets = [10, 0], sizes = [2, 256], strides = [1, 1]} : vector<16x256xf32> to vector<2x256xf32>
    %287 = vector.extract_strided_slice %280 {offsets = [12, 0], sizes = [2, 256], strides = [1, 1]} : vector<16x256xf32> to vector<2x256xf32>
    %288 = vector.extract_strided_slice %280 {offsets = [14, 0], sizes = [2, 256], strides = [1, 1]} : vector<16x256xf32> to vector<2x256xf32>
    %c0_89 = arith.constant 0 : index
    %c0_90 = arith.constant 0 : index
    %289 = vector.load %arg7[%c0_89, %c0_90] : memref<64x256xf32, #tpu.memory_space<vmem>>, vector<64x256xf32>
    %cst_91 = arith.constant 0.000000e+00 : f32
    %290 = vector.broadcast %cst_91 : f32 to vector<2x64xf32>
    %cst_92 = arith.constant 0.000000e+00 : f32
    %291 = vector.broadcast %cst_92 : f32 to vector<2x64xf32>
    %cst_93 = arith.constant dense<0.000000e+00> : vector<2x256xf32>
    %292 = tpu.matmul %290, %289, %cst_93 {dimension_numbers = #tpu.dot_dimension_numbers<[1], [0], [0], [1], [0, 0, 1, 1], [], []>} : vector<2x64xf32>, vector<64x256xf32>, vector<2x256xf32> -> vector<2x256xf32>
    %293 = arith.addf %281, %292 : vector<2x256xf32>
    %294 = vector.extract_strided_slice %293 {offsets = [0, 0], sizes = [2, 192], strides = [1, 1]} : vector<2x256xf32> to vector<2x192xf32>
    %295 = arith.negf %294 : vector<2x192xf32>
    %296 = math.exp %295 : vector<2x192xf32>
    %cst_94 = arith.constant 1.000000e+00 : f32
    %297 = vector.broadcast %cst_94 : f32 to vector<2x192xf32>
    %298 = arith.addf %297, %296 : vector<2x192xf32>
    %299 = arith.divf %297, %298 : vector<2x192xf32>
    %300 = vector.extract_strided_slice %293 {offsets = [0, 192], sizes = [2, 64], strides = [1, 1]} : vector<2x256xf32> to vector<2x64xf32>
    %301 = math.tanh %300 : vector<2x64xf32>
    %302 = vector.extract_strided_slice %299 {offsets = [0, 64], sizes = [2, 64], strides = [1, 1]} : vector<2x192xf32> to vector<2x64xf32>
    %303 = arith.mulf %302, %291 : vector<2x64xf32>
    %304 = vector.extract_strided_slice %299 {offsets = [0, 0], sizes = [2, 64], strides = [1, 1]} : vector<2x192xf32> to vector<2x64xf32>
    %305 = arith.mulf %304, %301 : vector<2x64xf32>
    %306 = arith.addf %303, %305 : vector<2x64xf32>
    %307 = vector.extract_strided_slice %299 {offsets = [0, 128], sizes = [2, 64], strides = [1, 1]} : vector<2x192xf32> to vector<2x64xf32>
    %308 = math.tanh %306 : vector<2x64xf32>
    %309 = arith.mulf %307, %308 : vector<2x64xf32>
    %310 = arith.select %3, %309, %290 : vector<2x64xi1>, vector<2x64xf32>
    %311 = arith.select %3, %306, %291 : vector<2x64xi1>, vector<2x64xf32>
    %cst_95 = arith.constant 0.000000e+00 : f32
    %312 = vector.broadcast %cst_95 : f32 to vector<2x64xf32>
    %313 = arith.select %3, %309, %312 : vector<2x64xi1>, vector<2x64xf32>
    %cst_96 = arith.constant dense<0.000000e+00> : vector<2x256xf32>
    %314 = tpu.matmul %310, %289, %cst_96 {dimension_numbers = #tpu.dot_dimension_numbers<[1], [0], [0], [1], [0, 0, 1, 1], [], []>} : vector<2x64xf32>, vector<64x256xf32>, vector<2x256xf32> -> vector<2x256xf32>
    %315 = arith.addf %282, %314 : vector<2x256xf32>
    %316 = vector.extract_strided_slice %315 {offsets = [0, 0], sizes = [2, 192], strides = [1, 1]} : vector<2x256xf32> to vector<2x192xf32>
    %317 = arith.negf %316 : vector<2x192xf32>
    %318 = math.exp %317 : vector<2x192xf32>
    %cst_97 = arith.constant 1.000000e+00 : f32
    %319 = vector.broadcast %cst_97 : f32 to vector<2x192xf32>
    %320 = arith.addf %319, %318 : vector<2x192xf32>
    %321 = arith.divf %319, %320 : vector<2x192xf32>
    %322 = vector.extract_strided_slice %315 {offsets = [0, 192], sizes = [2, 64], strides = [1, 1]} : vector<2x256xf32> to vector<2x64xf32>
    %323 = math.tanh %322 : vector<2x64xf32>
    %324 = vector.extract_strided_slice %321 {offsets = [0, 64], sizes = [2, 64], strides = [1, 1]} : vector<2x192xf32> to vector<2x64xf32>
    %325 = arith.mulf %324, %311 : vector<2x64xf32>
    %326 = vector.extract_strided_slice %321 {offsets = [0, 0], sizes = [2, 64], strides = [1, 1]} : vector<2x192xf32> to vector<2x64xf32>
    %327 = arith.mulf %326, %323 : vector<2x64xf32>
    %328 = arith.addf %325, %327 : vector<2x64xf32>
    %329 = vector.extract_strided_slice %321 {offsets = [0, 128], sizes = [2, 64], strides = [1, 1]} : vector<2x192xf32> to vector<2x64xf32>
    %330 = math.tanh %328 : vector<2x64xf32>
    %331 = arith.mulf %329, %330 : vector<2x64xf32>
    %332 = arith.select %7, %331, %310 : vector<2x64xi1>, vector<2x64xf32>
    %333 = arith.select %7, %328, %311 : vector<2x64xi1>, vector<2x64xf32>
    %cst_98 = arith.constant 0.000000e+00 : f32
    %334 = vector.broadcast %cst_98 : f32 to vector<2x64xf32>
    %335 = arith.select %7, %331, %334 : vector<2x64xi1>, vector<2x64xf32>
    %cst_99 = arith.constant dense<0.000000e+00> : vector<2x256xf32>
    %336 = tpu.matmul %332, %289, %cst_99 {dimension_numbers = #tpu.dot_dimension_numbers<[1], [0], [0], [1], [0, 0, 1, 1], [], []>} : vector<2x64xf32>, vector<64x256xf32>, vector<2x256xf32> -> vector<2x256xf32>
    %337 = arith.addf %283, %336 : vector<2x256xf32>
    %338 = vector.extract_strided_slice %337 {offsets = [0, 0], sizes = [2, 192], strides = [1, 1]} : vector<2x256xf32> to vector<2x192xf32>
    %339 = arith.negf %338 : vector<2x192xf32>
    %340 = math.exp %339 : vector<2x192xf32>
    %cst_100 = arith.constant 1.000000e+00 : f32
    %341 = vector.broadcast %cst_100 : f32 to vector<2x192xf32>
    %342 = arith.addf %341, %340 : vector<2x192xf32>
    %343 = arith.divf %341, %342 : vector<2x192xf32>
    %344 = vector.extract_strided_slice %337 {offsets = [0, 192], sizes = [2, 64], strides = [1, 1]} : vector<2x256xf32> to vector<2x64xf32>
    %345 = math.tanh %344 : vector<2x64xf32>
    %346 = vector.extract_strided_slice %343 {offsets = [0, 64], sizes = [2, 64], strides = [1, 1]} : vector<2x192xf32> to vector<2x64xf32>
    %347 = arith.mulf %346, %333 : vector<2x64xf32>
    %348 = vector.extract_strided_slice %343 {offsets = [0, 0], sizes = [2, 64], strides = [1, 1]} : vector<2x192xf32> to vector<2x64xf32>
    %349 = arith.mulf %348, %345 : vector<2x64xf32>
    %350 = arith.addf %347, %349 : vector<2x64xf32>
    %351 = vector.extract_strided_slice %343 {offsets = [0, 128], sizes = [2, 64], strides = [1, 1]} : vector<2x192xf32> to vector<2x64xf32>
    %352 = math.tanh %350 : vector<2x64xf32>
    %353 = arith.mulf %351, %352 : vector<2x64xf32>
    %354 = arith.select %11, %353, %332 : vector<2x64xi1>, vector<2x64xf32>
    %355 = arith.select %11, %350, %333 : vector<2x64xi1>, vector<2x64xf32>
    %cst_101 = arith.constant 0.000000e+00 : f32
    %356 = vector.broadcast %cst_101 : f32 to vector<2x64xf32>
    %357 = arith.select %11, %353, %356 : vector<2x64xi1>, vector<2x64xf32>
    %cst_102 = arith.constant dense<0.000000e+00> : vector<2x256xf32>
    %358 = tpu.matmul %354, %289, %cst_102 {dimension_numbers = #tpu.dot_dimension_numbers<[1], [0], [0], [1], [0, 0, 1, 1], [], []>} : vector<2x64xf32>, vector<64x256xf32>, vector<2x256xf32> -> vector<2x256xf32>
    %359 = arith.addf %284, %358 : vector<2x256xf32>
    %360 = vector.extract_strided_slice %359 {offsets = [0, 0], sizes = [2, 192], strides = [1, 1]} : vector<2x256xf32> to vector<2x192xf32>
    %361 = arith.negf %360 : vector<2x192xf32>
    %362 = math.exp %361 : vector<2x192xf32>
    %cst_103 = arith.constant 1.000000e+00 : f32
    %363 = vector.broadcast %cst_103 : f32 to vector<2x192xf32>
    %364 = arith.addf %363, %362 : vector<2x192xf32>
    %365 = arith.divf %363, %364 : vector<2x192xf32>
    %366 = vector.extract_strided_slice %359 {offsets = [0, 192], sizes = [2, 64], strides = [1, 1]} : vector<2x256xf32> to vector<2x64xf32>
    %367 = math.tanh %366 : vector<2x64xf32>
    %368 = vector.extract_strided_slice %365 {offsets = [0, 64], sizes = [2, 64], strides = [1, 1]} : vector<2x192xf32> to vector<2x64xf32>
    %369 = arith.mulf %368, %355 : vector<2x64xf32>
    %370 = vector.extract_strided_slice %365 {offsets = [0, 0], sizes = [2, 64], strides = [1, 1]} : vector<2x192xf32> to vector<2x64xf32>
    %371 = arith.mulf %370, %367 : vector<2x64xf32>
    %372 = arith.addf %369, %371 : vector<2x64xf32>
    %373 = vector.extract_strided_slice %365 {offsets = [0, 128], sizes = [2, 64], strides = [1, 1]} : vector<2x192xf32> to vector<2x64xf32>
    %374 = math.tanh %372 : vector<2x64xf32>
    %375 = arith.mulf %373, %374 : vector<2x64xf32>
    %376 = arith.select %15, %375, %354 : vector<2x64xi1>, vector<2x64xf32>
    %377 = arith.select %15, %372, %355 : vector<2x64xi1>, vector<2x64xf32>
    %cst_104 = arith.constant 0.000000e+00 : f32
    %378 = vector.broadcast %cst_104 : f32 to vector<2x64xf32>
    %379 = arith.select %15, %375, %378 : vector<2x64xi1>, vector<2x64xf32>
    %cst_105 = arith.constant dense<0.000000e+00> : vector<2x256xf32>
    %380 = tpu.matmul %376, %289, %cst_105 {dimension_numbers = #tpu.dot_dimension_numbers<[1], [0], [0], [1], [0, 0, 1, 1], [], []>} : vector<2x64xf32>, vector<64x256xf32>, vector<2x256xf32> -> vector<2x256xf32>
    %381 = arith.addf %285, %380 : vector<2x256xf32>
    %382 = vector.extract_strided_slice %381 {offsets = [0, 0], sizes = [2, 192], strides = [1, 1]} : vector<2x256xf32> to vector<2x192xf32>
    %383 = arith.negf %382 : vector<2x192xf32>
    %384 = math.exp %383 : vector<2x192xf32>
    %cst_106 = arith.constant 1.000000e+00 : f32
    %385 = vector.broadcast %cst_106 : f32 to vector<2x192xf32>
    %386 = arith.addf %385, %384 : vector<2x192xf32>
    %387 = arith.divf %385, %386 : vector<2x192xf32>
    %388 = vector.extract_strided_slice %381 {offsets = [0, 192], sizes = [2, 64], strides = [1, 1]} : vector<2x256xf32> to vector<2x64xf32>
    %389 = math.tanh %388 : vector<2x64xf32>
    %390 = vector.extract_strided_slice %387 {offsets = [0, 64], sizes = [2, 64], strides = [1, 1]} : vector<2x192xf32> to vector<2x64xf32>
    %391 = arith.mulf %390, %377 : vector<2x64xf32>
    %392 = vector.extract_strided_slice %387 {offsets = [0, 0], sizes = [2, 64], strides = [1, 1]} : vector<2x192xf32> to vector<2x64xf32>
    %393 = arith.mulf %392, %389 : vector<2x64xf32>
    %394 = arith.addf %391, %393 : vector<2x64xf32>
    %395 = vector.extract_strided_slice %387 {offsets = [0, 128], sizes = [2, 64], strides = [1, 1]} : vector<2x192xf32> to vector<2x64xf32>
    %396 = math.tanh %394 : vector<2x64xf32>
    %397 = arith.mulf %395, %396 : vector<2x64xf32>
    %398 = arith.select %19, %397, %376 : vector<2x64xi1>, vector<2x64xf32>
    %399 = arith.select %19, %394, %377 : vector<2x64xi1>, vector<2x64xf32>
    %cst_107 = arith.constant 0.000000e+00 : f32
    %400 = vector.broadcast %cst_107 : f32 to vector<2x64xf32>
    %401 = arith.select %19, %397, %400 : vector<2x64xi1>, vector<2x64xf32>
    %cst_108 = arith.constant dense<0.000000e+00> : vector<2x256xf32>
    %402 = tpu.matmul %398, %289, %cst_108 {dimension_numbers = #tpu.dot_dimension_numbers<[1], [0], [0], [1], [0, 0, 1, 1], [], []>} : vector<2x64xf32>, vector<64x256xf32>, vector<2x256xf32> -> vector<2x256xf32>
    %403 = arith.addf %286, %402 : vector<2x256xf32>
    %404 = vector.extract_strided_slice %403 {offsets = [0, 0], sizes = [2, 192], strides = [1, 1]} : vector<2x256xf32> to vector<2x192xf32>
    %405 = arith.negf %404 : vector<2x192xf32>
    %406 = math.exp %405 : vector<2x192xf32>
    %cst_109 = arith.constant 1.000000e+00 : f32
    %407 = vector.broadcast %cst_109 : f32 to vector<2x192xf32>
    %408 = arith.addf %407, %406 : vector<2x192xf32>
    %409 = arith.divf %407, %408 : vector<2x192xf32>
    %410 = vector.extract_strided_slice %403 {offsets = [0, 192], sizes = [2, 64], strides = [1, 1]} : vector<2x256xf32> to vector<2x64xf32>
    %411 = math.tanh %410 : vector<2x64xf32>
    %412 = vector.extract_strided_slice %409 {offsets = [0, 64], sizes = [2, 64], strides = [1, 1]} : vector<2x192xf32> to vector<2x64xf32>
    %413 = arith.mulf %412, %399 : vector<2x64xf32>
    %414 = vector.extract_strided_slice %409 {offsets = [0, 0], sizes = [2, 64], strides = [1, 1]} : vector<2x192xf32> to vector<2x64xf32>
    %415 = arith.mulf %414, %411 : vector<2x64xf32>
    %416 = arith.addf %413, %415 : vector<2x64xf32>
    %417 = vector.extract_strided_slice %409 {offsets = [0, 128], sizes = [2, 64], strides = [1, 1]} : vector<2x192xf32> to vector<2x64xf32>
    %418 = math.tanh %416 : vector<2x64xf32>
    %419 = arith.mulf %417, %418 : vector<2x64xf32>
    %420 = arith.select %23, %419, %398 : vector<2x64xi1>, vector<2x64xf32>
    %421 = arith.select %23, %416, %399 : vector<2x64xi1>, vector<2x64xf32>
    %cst_110 = arith.constant 0.000000e+00 : f32
    %422 = vector.broadcast %cst_110 : f32 to vector<2x64xf32>
    %423 = arith.select %23, %419, %422 : vector<2x64xi1>, vector<2x64xf32>
    %cst_111 = arith.constant dense<0.000000e+00> : vector<2x256xf32>
    %424 = tpu.matmul %420, %289, %cst_111 {dimension_numbers = #tpu.dot_dimension_numbers<[1], [0], [0], [1], [0, 0, 1, 1], [], []>} : vector<2x64xf32>, vector<64x256xf32>, vector<2x256xf32> -> vector<2x256xf32>
    %425 = arith.addf %287, %424 : vector<2x256xf32>
    %426 = vector.extract_strided_slice %425 {offsets = [0, 0], sizes = [2, 192], strides = [1, 1]} : vector<2x256xf32> to vector<2x192xf32>
    %427 = arith.negf %426 : vector<2x192xf32>
    %428 = math.exp %427 : vector<2x192xf32>
    %cst_112 = arith.constant 1.000000e+00 : f32
    %429 = vector.broadcast %cst_112 : f32 to vector<2x192xf32>
    %430 = arith.addf %429, %428 : vector<2x192xf32>
    %431 = arith.divf %429, %430 : vector<2x192xf32>
    %432 = vector.extract_strided_slice %425 {offsets = [0, 192], sizes = [2, 64], strides = [1, 1]} : vector<2x256xf32> to vector<2x64xf32>
    %433 = math.tanh %432 : vector<2x64xf32>
    %434 = vector.extract_strided_slice %431 {offsets = [0, 64], sizes = [2, 64], strides = [1, 1]} : vector<2x192xf32> to vector<2x64xf32>
    %435 = arith.mulf %434, %421 : vector<2x64xf32>
    %436 = vector.extract_strided_slice %431 {offsets = [0, 0], sizes = [2, 64], strides = [1, 1]} : vector<2x192xf32> to vector<2x64xf32>
    %437 = arith.mulf %436, %433 : vector<2x64xf32>
    %438 = arith.addf %435, %437 : vector<2x64xf32>
    %439 = vector.extract_strided_slice %431 {offsets = [0, 128], sizes = [2, 64], strides = [1, 1]} : vector<2x192xf32> to vector<2x64xf32>
    %440 = math.tanh %438 : vector<2x64xf32>
    %441 = arith.mulf %439, %440 : vector<2x64xf32>
    %442 = arith.select %27, %441, %420 : vector<2x64xi1>, vector<2x64xf32>
    %443 = arith.select %27, %438, %421 : vector<2x64xi1>, vector<2x64xf32>
    %cst_113 = arith.constant 0.000000e+00 : f32
    %444 = vector.broadcast %cst_113 : f32 to vector<2x64xf32>
    %445 = arith.select %27, %441, %444 : vector<2x64xi1>, vector<2x64xf32>
    %cst_114 = arith.constant dense<0.000000e+00> : vector<2x256xf32>
    %446 = tpu.matmul %442, %289, %cst_114 {dimension_numbers = #tpu.dot_dimension_numbers<[1], [0], [0], [1], [0, 0, 1, 1], [], []>} : vector<2x64xf32>, vector<64x256xf32>, vector<2x256xf32> -> vector<2x256xf32>
    %447 = arith.addf %288, %446 : vector<2x256xf32>
    %448 = vector.extract_strided_slice %447 {offsets = [0, 0], sizes = [2, 192], strides = [1, 1]} : vector<2x256xf32> to vector<2x192xf32>
    %449 = arith.negf %448 : vector<2x192xf32>
    %450 = math.exp %449 : vector<2x192xf32>
    %cst_115 = arith.constant 1.000000e+00 : f32
    %451 = vector.broadcast %cst_115 : f32 to vector<2x192xf32>
    %452 = arith.addf %451, %450 : vector<2x192xf32>
    %453 = arith.divf %451, %452 : vector<2x192xf32>
    %454 = vector.extract_strided_slice %447 {offsets = [0, 192], sizes = [2, 64], strides = [1, 1]} : vector<2x256xf32> to vector<2x64xf32>
    %455 = math.tanh %454 : vector<2x64xf32>
    %456 = vector.extract_strided_slice %453 {offsets = [0, 64], sizes = [2, 64], strides = [1, 1]} : vector<2x192xf32> to vector<2x64xf32>
    %457 = arith.mulf %456, %443 : vector<2x64xf32>
    %458 = vector.extract_strided_slice %453 {offsets = [0, 0], sizes = [2, 64], strides = [1, 1]} : vector<2x192xf32> to vector<2x64xf32>
    %459 = arith.mulf %458, %455 : vector<2x64xf32>
    %460 = arith.addf %457, %459 : vector<2x64xf32>
    %461 = vector.extract_strided_slice %453 {offsets = [0, 128], sizes = [2, 64], strides = [1, 1]} : vector<2x192xf32> to vector<2x64xf32>
    %462 = math.tanh %460 : vector<2x64xf32>
    %463 = arith.mulf %461, %462 : vector<2x64xf32>
    %464 = arith.select %31, %463, %442 : vector<2x64xi1>, vector<2x64xf32>
    %cst_116 = arith.constant 0.000000e+00 : f32
    %465 = vector.broadcast %cst_116 : f32 to vector<2x64xf32>
    %466 = arith.select %31, %463, %465 : vector<2x64xi1>, vector<2x64xf32>
    %467 = vector.extract_strided_slice %313 {offsets = [0, 0], sizes = [2, 32], strides = [1, 1]} : vector<2x64xf32> to vector<2x32xf32>
    %468 = vector.extract_strided_slice %466 {offsets = [0, 32], sizes = [2, 32], strides = [1, 1]} : vector<2x64xf32> to vector<2x32xf32>
    %469 = tpu.concatenate %467, %468 in 1 : vector<2x32xf32>, vector<2x32xf32> -> vector<2x64xf32>
    %470 = vector.extract_strided_slice %335 {offsets = [0, 0], sizes = [2, 32], strides = [1, 1]} : vector<2x64xf32> to vector<2x32xf32>
    %471 = vector.extract_strided_slice %445 {offsets = [0, 32], sizes = [2, 32], strides = [1, 1]} : vector<2x64xf32> to vector<2x32xf32>
    %472 = tpu.concatenate %470, %471 in 1 : vector<2x32xf32>, vector<2x32xf32> -> vector<2x64xf32>
    %473 = vector.extract_strided_slice %357 {offsets = [0, 0], sizes = [2, 32], strides = [1, 1]} : vector<2x64xf32> to vector<2x32xf32>
    %474 = vector.extract_strided_slice %423 {offsets = [0, 32], sizes = [2, 32], strides = [1, 1]} : vector<2x64xf32> to vector<2x32xf32>
    %475 = tpu.concatenate %473, %474 in 1 : vector<2x32xf32>, vector<2x32xf32> -> vector<2x64xf32>
    %476 = vector.extract_strided_slice %379 {offsets = [0, 0], sizes = [2, 32], strides = [1, 1]} : vector<2x64xf32> to vector<2x32xf32>
    %477 = vector.extract_strided_slice %401 {offsets = [0, 32], sizes = [2, 32], strides = [1, 1]} : vector<2x64xf32> to vector<2x32xf32>
    %478 = tpu.concatenate %476, %477 in 1 : vector<2x32xf32>, vector<2x32xf32> -> vector<2x64xf32>
    %479 = vector.extract_strided_slice %401 {offsets = [0, 0], sizes = [2, 32], strides = [1, 1]} : vector<2x64xf32> to vector<2x32xf32>
    %480 = vector.extract_strided_slice %379 {offsets = [0, 32], sizes = [2, 32], strides = [1, 1]} : vector<2x64xf32> to vector<2x32xf32>
    %481 = tpu.concatenate %479, %480 in 1 : vector<2x32xf32>, vector<2x32xf32> -> vector<2x64xf32>
    %482 = vector.extract_strided_slice %423 {offsets = [0, 0], sizes = [2, 32], strides = [1, 1]} : vector<2x64xf32> to vector<2x32xf32>
    %483 = vector.extract_strided_slice %357 {offsets = [0, 32], sizes = [2, 32], strides = [1, 1]} : vector<2x64xf32> to vector<2x32xf32>
    %484 = tpu.concatenate %482, %483 in 1 : vector<2x32xf32>, vector<2x32xf32> -> vector<2x64xf32>
    %485 = vector.extract_strided_slice %445 {offsets = [0, 0], sizes = [2, 32], strides = [1, 1]} : vector<2x64xf32> to vector<2x32xf32>
    %486 = vector.extract_strided_slice %335 {offsets = [0, 32], sizes = [2, 32], strides = [1, 1]} : vector<2x64xf32> to vector<2x32xf32>
    %487 = tpu.concatenate %485, %486 in 1 : vector<2x32xf32>, vector<2x32xf32> -> vector<2x64xf32>
    %488 = vector.extract_strided_slice %466 {offsets = [0, 0], sizes = [2, 32], strides = [1, 1]} : vector<2x64xf32> to vector<2x32xf32>
    %489 = vector.extract_strided_slice %313 {offsets = [0, 32], sizes = [2, 32], strides = [1, 1]} : vector<2x64xf32> to vector<2x32xf32>
    %490 = tpu.concatenate %488, %489 in 1 : vector<2x32xf32>, vector<2x32xf32> -> vector<2x64xf32>
    %c0_117 = arith.constant 0 : index
    %c0_118 = arith.constant 0 : index
    %c0_119 = arith.constant 0 : index
    %491 = vector.load %arg10[%c0_117, %c0_118, %c0_119] : memref<8x2x64xf32, #tpu.memory_space<vmem>>, vector<1x2x64xf32>
    %492 = vector.shape_cast %491 : vector<1x2x64xf32> to vector<2x64xf32>
    %493 = vector.shape_cast %469 : vector<2x64xf32> to vector<1x2x64xf32>
    tpu.vector_store %arg10[%c0_117, %c0_118, %c0_119], %493 {strides = array<i32>} : memref<8x2x64xf32, #tpu.memory_space<vmem>>, vector<1x2x64xf32>,
    %c1_120 = arith.constant 1 : index
    %c0_121 = arith.constant 0 : index
    %c0_122 = arith.constant 0 : index
    %494 = vector.load %arg10[%c1_120, %c0_121, %c0_122] : memref<8x2x64xf32, #tpu.memory_space<vmem>>, vector<1x2x64xf32>
    %495 = vector.shape_cast %494 : vector<1x2x64xf32> to vector<2x64xf32>
    %496 = vector.shape_cast %472 : vector<2x64xf32> to vector<1x2x64xf32>
    tpu.vector_store %arg10[%c1_120, %c0_121, %c0_122], %496 {strides = array<i32>} : memref<8x2x64xf32, #tpu.memory_space<vmem>>, vector<1x2x64xf32>,
    %c2_123 = arith.constant 2 : index
    %c0_124 = arith.constant 0 : index
    %c0_125 = arith.constant 0 : index
    %497 = vector.load %arg10[%c2_123, %c0_124, %c0_125] : memref<8x2x64xf32, #tpu.memory_space<vmem>>, vector<1x2x64xf32>
    %498 = vector.shape_cast %497 : vector<1x2x64xf32> to vector<2x64xf32>
    %499 = vector.shape_cast %475 : vector<2x64xf32> to vector<1x2x64xf32>
    tpu.vector_store %arg10[%c2_123, %c0_124, %c0_125], %499 {strides = array<i32>} : memref<8x2x64xf32, #tpu.memory_space<vmem>>, vector<1x2x64xf32>,
    %c3_126 = arith.constant 3 : index
    %c0_127 = arith.constant 0 : index
    %c0_128 = arith.constant 0 : index
    %500 = vector.load %arg10[%c3_126, %c0_127, %c0_128] : memref<8x2x64xf32, #tpu.memory_space<vmem>>, vector<1x2x64xf32>
    %501 = vector.shape_cast %500 : vector<1x2x64xf32> to vector<2x64xf32>
    %502 = vector.shape_cast %478 : vector<2x64xf32> to vector<1x2x64xf32>
    tpu.vector_store %arg10[%c3_126, %c0_127, %c0_128], %502 {strides = array<i32>} : memref<8x2x64xf32, #tpu.memory_space<vmem>>, vector<1x2x64xf32>,
    %c4_129 = arith.constant 4 : index
    %c0_130 = arith.constant 0 : index
    %c0_131 = arith.constant 0 : index
    %503 = vector.load %arg10[%c4_129, %c0_130, %c0_131] : memref<8x2x64xf32, #tpu.memory_space<vmem>>, vector<1x2x64xf32>
    %504 = vector.shape_cast %503 : vector<1x2x64xf32> to vector<2x64xf32>
    %505 = vector.shape_cast %481 : vector<2x64xf32> to vector<1x2x64xf32>
    tpu.vector_store %arg10[%c4_129, %c0_130, %c0_131], %505 {strides = array<i32>} : memref<8x2x64xf32, #tpu.memory_space<vmem>>, vector<1x2x64xf32>,
    %c5_132 = arith.constant 5 : index
    %c0_133 = arith.constant 0 : index
    %c0_134 = arith.constant 0 : index
    %506 = vector.load %arg10[%c5_132, %c0_133, %c0_134] : memref<8x2x64xf32, #tpu.memory_space<vmem>>, vector<1x2x64xf32>
    %507 = vector.shape_cast %506 : vector<1x2x64xf32> to vector<2x64xf32>
    %508 = vector.shape_cast %484 : vector<2x64xf32> to vector<1x2x64xf32>
    tpu.vector_store %arg10[%c5_132, %c0_133, %c0_134], %508 {strides = array<i32>} : memref<8x2x64xf32, #tpu.memory_space<vmem>>, vector<1x2x64xf32>,
    %c6_135 = arith.constant 6 : index
    %c0_136 = arith.constant 0 : index
    %c0_137 = arith.constant 0 : index
    %509 = vector.load %arg10[%c6_135, %c0_136, %c0_137] : memref<8x2x64xf32, #tpu.memory_space<vmem>>, vector<1x2x64xf32>
    %510 = vector.shape_cast %509 : vector<1x2x64xf32> to vector<2x64xf32>
    %511 = vector.shape_cast %487 : vector<2x64xf32> to vector<1x2x64xf32>
    tpu.vector_store %arg10[%c6_135, %c0_136, %c0_137], %511 {strides = array<i32>} : memref<8x2x64xf32, #tpu.memory_space<vmem>>, vector<1x2x64xf32>,
    %c7_138 = arith.constant 7 : index
    %c0_139 = arith.constant 0 : index
    %c0_140 = arith.constant 0 : index
    %512 = vector.load %arg10[%c7_138, %c0_139, %c0_140] : memref<8x2x64xf32, #tpu.memory_space<vmem>>, vector<1x2x64xf32>
    %513 = vector.shape_cast %512 : vector<1x2x64xf32> to vector<2x64xf32>
    %514 = vector.shape_cast %490 : vector<2x64xf32> to vector<1x2x64xf32>
    tpu.vector_store %arg10[%c7_138, %c0_139, %c0_140], %514 {strides = array<i32>} : memref<8x2x64xf32, #tpu.memory_space<vmem>>, vector<1x2x64xf32>,
    %c0_141 = arith.constant 0 : index
    %c0_142 = arith.constant 0 : index
    %515 = vector.load %arg11[%c0_141, %c0_142] : memref<2x64xf32, #tpu.memory_space<vmem>>, vector<2x64xf32>
    tpu.vector_store %arg11[%c0_141, %c0_142], %464 {strides = array<i32>} : memref<2x64xf32, #tpu.memory_space<vmem>>, vector<2x64xf32>,
    return
  }
}

</mosaic_0001>

<bundles_post_ra>
// kernel: tpu_custom_call.1
= control target key start
LH: loop header
LB: loop body
LE: loop exit
PB: predicated region body
PF: predicated region fallthrough
CT: control target
= control target key end

     0   :  { %17 = vsyncpa [#allocation3], 0  ;;  %s4196_s0 = inlined_call_operand.hbm [shape: f32[16,64], index: 0, kind: input, shape index: {}]   ;;  %s4197_s1 = inlined_call_operand.hbm [shape: f32[8,2,64], index: 1, kind: input, shape index: {}]   ;;  %s4198_s2 = inlined_call_operand.hbm [shape: f32[64,256], index: 2, kind: input, shape index: {}]   ;;  %s4199_s3 = inlined_call_operand.vmem [shape: f32[1,256], index: 3, kind: input, shape index: {}]   ;;  %s4200_s4 = inlined_call_operand.hbm [shape: f32[64,256], index: 4, kind: input, shape index: {}]   ;;  %s4201_s5 = inlined_call_operand.hbm [shape: f32[128,256], index: 5, kind: input, shape index: {}]   ;;  %s4202_s6 = inlined_call_operand.vmem [shape: f32[1,256], index: 6, kind: input, shape index: {}]   ;;  %s4203_s7 = inlined_call_operand.hbm [shape: f32[64,256], index: 7, kind: input, shape index: {}]   ;;  %s4204_s8 = inlined_call_operand.hbm [shape: f32[8,2,64], index: 8, kind: output, shape index: {0}]   ;;  %s4205_s9 = inlined_call_operand.hbm [shape: f32[2,64], index: 9, kind: output, shape index: {1}]   ;;  %s4206_s10 = inlined_call_operand.hbm [shape: f32[8,2,64], index: 10, kind: output, shape index: {2}]   ;;  %s4207_s11 = inlined_call_operand.hbm [shape: f32[2,64], index: 11, kind: output, shape index: {3}]  }
   0x1   :  { %18 = vsyncpa [#allocation6], 0 }
   0x2   :  { %19 = vsyncpa [#allocation9], 0 }
   0x3   :  { %20 = vsyncpa [#allocation12], 0 }
   0x4   :  { %21 = vsyncpa [#allocation4], 0 }
   0x5   :  { %22 = vsyncpa [#allocation15], 0 }
   0x6   :  { %23 = vsyncpa [#allocation18], 0  ;;  %s3353_s17 = smov [#allocation5]   ;;  %s3119_s21 = scalar_lea.hbm %s4197_s1, 256 }
   0x7   :  { %s41_s18 = sshll.u32 %s3353_s17, 4  ;;  %p3120_p0 = scmp.ne.s32.totalorder %s4197_s1, %s3119_s21  ;;  %s42_s18 = int_to_ptr.vmem [resolvable:$true] %s41_s18 }
   0x8   :  { %p3123_p1 = scmp.lt.u32.totalorder %s3119_s21, %s4197_s1 }
   0xa   :  { %p3125_p2 = pnand %p3123_p1, %p3120_p0 }
   0xc   :  { %3128 = shalt.err (!%p3125_p2)
}
   0xd   :  { %s3129_s26 = scalar_lea.vmem %s42_s18, 256  ;;  %p3134_p4 = scmp.lt.s32.totalorder %s42_s18, %s42_s18 }
   0xe   :  { %p3130_p3 = scmp.ne.s32.totalorder %s42_s18, %s3129_s26  ;;  %p3135_p5 = scmp.lt.s32.totalorder %s3129_s26, %s3129_s26 }
  0x10   :  { %p3136_p6 = por %p3135_p5, %p3134_p4 }
  0x12   :  { %p3137_p7 = pnand %p3136_p6, %p3130_p3 }
  0x14   :  { %3140 = shalt.err (!%p3137_p7)
}
  0x15   :  { %s3354_s27 = smov 32   ;;  %s3355_s28 = smov 2  }
  0x16   :  { %47 = dma.hbm_to_vmem [thread:$0]  %s4197_s1, 256, %s42_s18, [#allocation6], %s3354_s27, %s3354_s27, %s3355_s28  }
  0x17   :  { %s3356_s12 = smov [#allocation8]   ;;  %s3357_s14 = smov [#allocation2]  }
  0x18   :  { %s67_s13 = sshll.u32 %s3356_s12, 4  ;;  %s29_s15 = sshll.u32 %s3357_s14, 4  ;;  %s68_s13 = int_to_ptr.vmem [resolvable:$true] %s67_s13  ;;  %s30_s15 = int_to_ptr.vmem [resolvable:$true] %s29_s15 }
  0x19   :  { %s3141_s19 = scalar_lea.hbm %s4200_s4, 2048 }
  0x1a   :  { %p3142_p8 = scmp.ne.s32.totalorder %s4200_s4, %s3141_s19  ;;  %p3145_p9 = scmp.lt.u32.totalorder %s3141_s19, %s4200_s4 }
  0x1c   :  { %p3147_p10 = pnand %p3145_p9, %p3142_p8 }
  0x1e   :  { %3150 = shalt.err (!%p3147_p10)
}
  0x1f   :  { %s3151_s1 = scalar_lea.vmem %s68_s13, 2048  ;;  %p3156_p12 = scmp.lt.s32.totalorder %s68_s13, %s68_s13 }
  0x20   :  { %p3152_p11 = scmp.ne.s32.totalorder %s68_s13, %s3151_s1  ;;  %p3157_p13 = scmp.lt.s32.totalorder %s3151_s1, %s3151_s1 }
  0x22   :  { %p3158_p0 = por %p3157_p13, %p3156_p12 }
  0x24   :  { %p3159_p1 = pnand %p3158_p0, %p3152_p11 }
  0x26   :  { %3162 = shalt.err (!%p3159_p1)
}
  0x27   :  { %s3358_s18 = smov 256   ;;  %s3359_s24 = smov 16  }
  0x28   :  { %73 = dma.hbm_to_vmem [thread:$0]  %s4200_s4, 2048, %s68_s13, [#allocation9], %s3358_s18, %s3358_s18, %s3359_s24  }
  0x29   :  { %s3163_s12 = scalar_lea.hbm %s4196_s0, 256 }
  0x2a   :  { %p3164_p2 = scmp.ne.s32.totalorder %s4196_s0, %s3163_s12  ;;  %p3167_p3 = scmp.lt.u32.totalorder %s3163_s12, %s4196_s0 }
  0x2c   :  { %p3169_p4 = pnand %p3167_p3, %p3164_p2 }
  0x2e   :  { %3172 = shalt.err (!%p3169_p4)
}
  0x2f   :  { %s3173_s20 = scalar_lea.vmem %s30_s15, 256  ;;  %p3178_p6 = scmp.lt.s32.totalorder %s30_s15, %s30_s15 }
  0x30   :  { %p3174_p5 = scmp.ne.s32.totalorder %s30_s15, %s3173_s20  ;;  %p3179_p7 = scmp.lt.s32.totalorder %s3173_s20, %s3173_s20 }
  0x32   :  { %p3180_p8 = por %p3179_p7, %p3178_p6 }
  0x34   :  { %p3181_p9 = pnand %p3180_p8, %p3174_p5 }
  0x36   :  { %3184 = shalt.err (!%p3181_p9)
}
  0x37   :  { %s3360_s4 = smov 128   ;;  %s3361_s13 = smov 8  }
  0x38   :  { %35 = dma.hbm_to_vmem [thread:$0]  %s4196_s0, 256, %s30_s15, [#allocation3], %s3360_s4, %s3360_s4, %s3361_s13  }
  0x39   :  { %s3362_s23 = smov [#allocation7]   ;;  %s3363_s25 = smov [#allocation10]  }
  0x3a   :  { %s53_s1 = sshll.u32 %s3362_s23, 4  ;;  %s79_s26 = sshll.u32 %s3363_s25, 4  ;;  %s54_s1 = int_to_ptr.vmem [resolvable:$true] %s53_s1  ;;  %s80_s26 = int_to_ptr.vmem [resolvable:$true] %s79_s26 }
  0x3b   :  { %s3185_s12 = scalar_lea.hbm %s4198_s2, 2048 }
  0x3c   :  { %p3186_p10 = scmp.ne.s32.totalorder %s4198_s2, %s3185_s12  ;;  %p3189_p11 = scmp.lt.u32.totalorder %s3185_s12, %s4198_s2 }
  0x3e   :  { %p3191_p12 = pnand %p3189_p11, %p3186_p10 }
  0x40   :  { %3194 = shalt.err (!%p3191_p12)
}
  0x41   :  { %s3195_s0 = scalar_lea.vmem %s54_s1, 2048  ;;  %p3200_p0 = scmp.lt.s32.totalorder %s54_s1, %s54_s1 }
  0x42   :  { %p3196_p13 = scmp.ne.s32.totalorder %s54_s1, %s3195_s0  ;;  %p3201_p1 = scmp.lt.s32.totalorder %s3195_s0, %s3195_s0 }
  0x44   :  { %p3202_p2 = por %p3201_p1, %p3200_p0 }
  0x46   :  { %p3203_p3 = pnand %p3202_p2, %p3196_p13 }
  0x48   :  { %3206 = shalt.err (!%p3203_p3)
}
  0x49   :  { %59 = dma.hbm_to_vmem [thread:$0]  %s4198_s2, 2048, %s54_s1, [#allocation6], %s3358_s18, %s3358_s18, %s3359_s24  }
  0x4a   :  { %s3207_s21 = scalar_lea.hbm %s4201_s5, 4096 }
  0x4b   :  { %p3208_p4 = scmp.ne.s32.totalorder %s4201_s5, %s3207_s21  ;;  %p3211_p5 = scmp.lt.u32.totalorder %s3207_s21, %s4201_s5 }
  0x4d   :  { %p3213_p6 = pnand %p3211_p5, %p3208_p4 }
  0x4f   :  { %3216 = shalt.err (!%p3213_p6)
}
  0x50   :  { %s3217_s30 = scalar_lea.vmem %s80_s26, 4096  ;;  %p3222_p8 = scmp.lt.s32.totalorder %s80_s26, %s80_s26 }
  0x51   :  { %p3218_p7 = scmp.ne.s32.totalorder %s80_s26, %s3217_s30  ;;  %p3223_p9 = scmp.lt.s32.totalorder %s3217_s30, %s3217_s30 }
  0x53   :  { %p3224_p10 = por %p3223_p9, %p3222_p8 }
  0x55   :  { %p3225_p11 = pnand %p3224_p10, %p3218_p7 }
  0x57   :  { %3228 = shalt.err (!%p3225_p11)
}
  0x58   :  { %85 = dma.hbm_to_vmem [thread:$0]  %s4201_s5, 4096, %s80_s26, [#allocation9], %s3358_s18, %s3358_s18, %s3359_s24  }
  0x59   :  { %s3364_s12 = smov [#allocation11]   ;;  %s3229_s19 = scalar_lea.hbm %s4203_s7, 2048 }
  0x5a   :  { %s93_s14 = sshll.u32 %s3364_s12, 4  ;;  %p3230_p12 = scmp.ne.s32.totalorder %s4203_s7, %s3229_s19  ;;  %s94_s14 = int_to_ptr.vmem [resolvable:$true] %s93_s14 }
  0x5b   :  { %p3233_p13 = scmp.lt.u32.totalorder %s3229_s19, %s4203_s7 }
  0x5d   :  { %p3235_p0 = pnand %p3233_p13, %p3230_p12 }
  0x5f   :  { %3238 = shalt.err (!%p3235_p0)
}
  0x60   :  { %s3239_s13 = scalar_lea.vmem %s94_s14, 2048  ;;  %p3244_p2 = scmp.lt.s32.totalorder %s94_s14, %s94_s14 }
  0x61   :  { %p3240_p1 = scmp.ne.s32.totalorder %s94_s14, %s3239_s13  ;;  %p3245_p3 = scmp.lt.s32.totalorder %s3239_s13, %s3239_s13 }
  0x63   :  { %p3246_p4 = por %p3245_p3, %p3244_p2 }
  0x65   :  { %p3247_p5 = pnand %p3246_p4, %p3240_p1 }
  0x67   :  { %3250 = shalt.err (!%p3247_p5)
}
  0x68   :  { %99 = dma.hbm_to_vmem [thread:$0]  %s4203_s7, 2048, %s94_s14, [#allocation12], %s3358_s18, %s3358_s18, %s3359_s24  }
  0x69   :  { %3339 = dma.done.wait [#allocation3], 256  }
  0x6a   :  { %3340 = vsyncadd [#allocation3], 4294967040 }
  0x6b   :  { %3341 = dma.done.wait [#allocation6], 2304  }
  0x6c   :  { %3342 = vsyncadd [#allocation6], 4294964992 }
  0x6d   :  { %3343 = dma.done.wait [#allocation9], 6144  }
  0x6e   :  { %3344 = vsyncadd [#allocation9], 4294961152 }
  0x6f   :  { %3345 = dma.done.wait [#allocation12], 2048  }
  0x70   :  { %3346 = vsyncadd [#allocation12], 4294965248  ;;  %v3365_v0 = vmov 0.0   ;;  %v144_v1 = vld [vmem:[#allocation7 + $0x8] sm:$0xff]  ;;  %v146_v2 = vld [vmem:[#allocation7 + $0x18] sm:$0xff]  ;;  %vm171_vm0 = vcmask 523264   ;;  %v161_v50 = vlaneseq }
  0x71   :  { %242 = vmatprep.mubr.f32.mxu0 %v3365_v0  ;;  %338 = vmatprep.mubr.f32.mxu1 %v3365_v0  ;;  %v143_v3 = vld [vmem:[#allocation7] sm:$0xff]  ;;  %v2605_v4 = vpack.c.bf16 %v146_v2, %v144_v1  ;;  %v145_v5 = vld [vmem:[#allocation7 + $0x10] sm:$0xff]  ;;  %v256_v6 = vld [vmem:[#allocation8 + $0x8] sm:$0xff]  ;;  %s3366_s24 = smov 64   ;;  %vm1262_vm6 = vcmask 261120   ;;  %vm1271_vm7 = vcmask 517120  }
  0x72   :  { %v258_v7 = vld [vmem:[#allocation8 + $0x18] sm:$0xff]  ;;  %v2607_v8 = vpack.c.bf16 %v145_v5, %v143_v3  ;;  %v255_v10 = vld [vmem:[#allocation8] sm:$0xff]  ;;  %v257_v11 = vld [vmem:[#allocation8 + $0x10] sm:$0xff]  ;;  %v3566_v51 = vshrl.u32 %v161_v50, 7  ;;  %vm1306_vm10 = vcmask 1041408   ;;  %vm1308_vm11 = vcmask 1043456  }
  0x73   :  { %v3520_v9 = vpack.c.bf16 %v258_v7, %v256_v6  ;;  %v148_v12 = vld [vmem:[#allocation7 + $0x28] sm:$0xff]  ;;  %2606 = vmatprep.subr.bf16.mxu0 %v2605_v4  ;;  %v3522_v13 = vpack.c.bf16 %v257_v11, %v255_v10  ;;  %v150_v14 = vld [vmem:[#allocation7 + $0x38] sm:$0xff]  ;;  %v147_v15 = vld [vmem:[#allocation7 + $0x20] sm:$0xff]  ;;  %vm1310_vm13 = vcmask 1045504   ;;  %s3368_s23 = smov [#allocation13]  }
  0x74   :  { %v149_v16 = vld [vmem:[#allocation7 + $0x30] sm:$0xff]  ;;  %2608 = vmatpush1.bf16.msra.mxu0 %v2607_v8  ;;  %v2609_v17 = vpack.c.bf16 %v150_v14, %v148_v12  ;;  %v260_v19 = vld [vmem:[#allocation8 + $0x28] sm:$0xff]  ;;  %v262_v20 = vld [vmem:[#allocation8 + $0x38] sm:$0xff]  ;;  %v167_v52 = vsub.s32 1, %v3566_v51  ;;  %v163_v62 = vsub.s32 0, %v3566_v51  ;;  %s2499_s25 = sshll.u32 %s3368_s23, 4  ;;  %s2500_s25 = int_to_ptr.vmem [resolvable:$true] %s2499_s25 }
  0x75   :  { %2622 = vmatprep.subr.bf16.mxu1 %v3520_v9  ;;  %v2611_v18 = vpack.c.bf16 %v149_v16, %v147_v15  ;;  %v259_v21 = vld [vmem:[#allocation8 + $0x20] sm:$0xff]  ;;  %v3526_v22 = vpack.c.bf16 %v262_v20, %v260_v19  ;;  %v261_v23 = vld [vmem:[#allocation8 + $0x30] sm:$0xff]  ;;  %v152_v24 = vld [vmem:[#allocation7 + $0x48] sm:$0xff] }
  0x76   :  { %2624 = vmatpush1.bf16.msra.mxu1 %v3522_v13  ;;  %v154_v25 = vld [vmem:[#allocation7 + $0x58] sm:$0xff]  ;;  %2610 = vmatprep.subr.bf16.mxu0 %v2609_v17  ;;  %v3528_v26 = vpack.c.bf16 %v261_v23, %v259_v21  ;;  %v151_v28 = vld [vmem:[#allocation7 + $0x40] sm:$0xff]  ;;  %v153_v29 = vld [vmem:[#allocation7 + $0x50] sm:$0xff] }
  0x77   :  { %v2613_v27 = vpack.c.bf16 %v154_v25, %v152_v24  ;;  %v264_v30 = vld [vmem:[#allocation8 + $0x48] sm:$0xff]  ;;  %2626 = vmatprep.subr.bf16.mxu1 %v3526_v22  ;;  %v266_v31 = vld [vmem:[#allocation8 + $0x58] sm:$0xff]  ;;  %v263_v32 = vld [vmem:[#allocation8 + $0x40] sm:$0xff]  ;;  %v2615_v34 = vpack.c.bf16 %v153_v29, %v151_v28 }
  0x78   :  { %v265_v33 = vld [vmem:[#allocation8 + $0x50] sm:$0xff]  ;;  %2612 = vmatpush1.bf16.msra.mxu0 %v2611_v18  ;;  %v3531_v35 = vpack.c.bf16 %v266_v31, %v264_v30  ;;  %v156_v36 = vld [vmem:[#allocation7 + $0x68] sm:$0xff]  ;;  %v158_v37 = vld [vmem:[#allocation7 + $0x78] sm:$0xff] }
  0x79   :  { %v155_v38 = vld [vmem:[#allocation7 + $0x60] sm:$0xff]  ;;  %2614 = vmatprep.subr.bf16.mxu0 %v2613_v27  ;;  %v3534_v39 = vpack.c.bf16 %v265_v33, %v263_v32  ;;  %v2617_v40 = vpack.c.bf16 %v158_v37, %v156_v36  ;;  %v157_v41 = vld [vmem:[#allocation7 + $0x70] sm:$0xff]  ;;  %v268_v42 = vld [vmem:[#allocation8 + $0x68] sm:$0xff] }
  0x7a   :  { %2628 = vmatpush1.bf16.msra.mxu1 %v3528_v26  ;;  %v270_v43 = vld [vmem:[#allocation8 + $0x78] sm:$0xff]  ;;  %v267_v45 = vld [vmem:[#allocation8 + $0x60] sm:$0xff]  ;;  %v269_v46 = vld [vmem:[#allocation8 + $0x70] sm:$0xff]  ;;  %v2619_v47 = vpack.c.bf16 %v157_v41, %v155_v38 }
  0x7b   :  { %2630 = vmatprep.subr.bf16.mxu1 %v3531_v35  ;;  %v3537_v44 = vpack.c.bf16 %v270_v43, %v268_v42  ;;  %v3540_v48 = vpack.c.bf16 %v269_v46, %v267_v45  ;;  %v141_v49 = vld [vmem:[#allocation2] sm:$0xff]  ;;  %v142_v10 = vld [vmem:[#allocation2 + $0x8] sm:$0xff]  ;;  %v3599_v21 = vld [vmem:[#allocation5] sm:$0x3] }
  0x7c   :  { %2616 = vmatpush1.bf16.msra.mxu0 %v2615_v34  ;;  %v159_v53 = vld [vmem:[%s4199_s3] sm:$0x3]  ;;  %vm119_vm1 = vcmp.gt.f32.partialorder %v3599_v21, 0.0 }
  0x7d   :  { %2618 = vmatprep.subr.bf16.mxu0 %v2617_v40  ;;  %v3574_v54 = vrot.slane %v159_v53, %v167_v52  ;;  %v3584_v63 = vrot.slane %v159_v53, %v163_v62 }
  0x7e   :  { %2632 = vmatpush1.bf16.msra.mxu1 %v3534_v39 }
  0x7f   :  { %2634 = vmatprep.subr.bf16.mxu1 %v3537_v44 }
  0x80   :  { %2620 = vmatpush1.bf16.msra.mxu0 %v2619_v47 }
  0x81   :  { %2638 = vmatprep.subr.bf16.mxu0 %v3520_v9 }
  0x82   :  { %2636 = vmatpush1.bf16.msra.mxu1 %v3540_v48 }
  0x83   :  { %2654 = vmatprep.subr.bf16.mxu1 %v3520_v9  ;;  %2557 = vmatmul.mubr.msk.f32.vlgmr.msra.gmra.mrb[0].mxu0 %vm171_vm0, %v141_v49 }
  0x84   :  { %2640 = vmatpush1.bf16.msra.mxu0 %v3522_v13  ;;  %248 = vmatprep.mubr.f32.mxu0 %v3365_v0 }
  0x85   :  { %339 = vmatmul.mubr.f32.vlgmr.msra.gmra.mrb[0].mxu1 %v3365_v0  ;;  %2642 = vmatprep.subr.bf16.mxu0 %v3526_v22 }
  0x86   :  { %2656 = vmatpush1.bf16.msra.mxu1 %v3522_v13  ;;  %578 = vmatprep.mubr.f32.mxu1 %v3365_v0 }
  0x87   :  { %2658 = vmatprep.subr.bf16.mxu1 %v3526_v22  ;;  %2558 = vmatmul.mubr.msk.f32.gmra.mrb[2].mxu0 %vm171_vm0, %v142_v10 }
  0x88   :  { %2644 = vmatpush1.bf16.msra.mxu0 %v3528_v26  ;;  %450 = vmatprep.mubr.f32.mxu0 %v3365_v0 }
  0x89   :  { %2646 = vmatprep.subr.bf16.mxu0 %v3531_v35 }
  0x8a   :  { %2660 = vmatpush1.bf16.msra.mxu1 %v3528_v26 }
  0x8b   :  { %2662 = vmatprep.subr.bf16.mxu1 %v3531_v35 }
  0x8c   :  { %2648 = vmatpush1.bf16.msra.mxu0 %v3534_v39 }
  0x8d   :  { %2650 = vmatprep.subr.bf16.mxu0 %v3537_v44 }
  0x8e   :  { %2664 = vmatpush1.bf16.msra.mxu1 %v3534_v39 }
  0x8f   :  { %2666 = vmatprep.subr.bf16.mxu1 %v3537_v44 }
  0x90   :  { %2652 = vmatpush1.bf16.msra.mxu0 %v3540_v48 }
  0x91   :  { %2670 = vmatprep.subr.bf16.mxu0 %v3520_v9 }
  0x92   :  { %2668 = vmatpush1.bf16.msra.mxu1 %v3540_v48 }
  0x93   :  { %2686 = vmatprep.subr.bf16.mxu1 %v3520_v9 }
 0x156   :  { %v244_v55 = vpop.f32.mrb[0].mxu0 }
 0x157   :  { %v246_v56 = vpop.f32.mrb[1].mxu0  ;;  %v3587_v1 = vadd.f32 %v244_v55, %v3584_v63 }
 0x158   :  { %v340_v57 = vpop.f32.mrb[0].mxu1  ;;  %v3577_v58 = vadd.f32 %v246_v56, %v3574_v54 }
 0x159   :  { %v342_v59 = vpop.f32.mrb[1].mxu1  ;;  %v345_v2 = vadd.f32 %v340_v57, %v3587_v1 }
 0x15a   :  { %v346_v60 = vadd.f32 %v342_v59, %v3577_v58  ;;  %v3595_v19 = vpop.f32.mrb[2].mxu0 }
 0x15b   :  { %v2559_v3 = vmul.f32 -1.442695, %v345_v2  ;;  %v3597_v20 = vpop.f32.mrb[3].mxu0 }
 0x15c   :  { %2927 = vtanh.f32 %v346_v60  ;;  %v2560_v16 = vmul.f32 -1.442695, %v346_v60 }
 0x15d   :  { %2929 = vpow2.f32 %v2559_v3 }
 0x166   :  { %v2928_v61 = vpop.eup %2927 }
 0x167   :  { %362 = vrot.lane.b32.xlu0 %v2928_v61, %s3366_s24  ;;  %v2930_v4 = vpop.eup %2929  ;;  %v3626_v61 = vld [vmem:[#allocation5 + $0x2] sm:$0x3] }
 0x168   :  { %v353_v5 = vadd.f32 1.0, %v2930_v4  ;;  %vm122_vm2 = vcmp.gt.f32.partialorder %v3626_v61, 0.0 }
 0x16a   :  { %2931 = vrcp.f32 %v353_v5 }
 0x174   :  { %v2932_v6 = vpop.eup %2931 }
 0x175   :  { %v360_v11 = vmul.f32 0.0, %v2932_v6 }
 0x1d9   :  { %v363_v7 = vpop.permute.xlu0 %362 }
 0x1da   :  { %v365_v8 = vmul.f32 %v2932_v6, %v363_v7 }
 0x1dc   :  { %367 = vrot.lane.b32.xlu0 %v365_v8, %s3366_s24 }
 0x24e   :  { %v368_v12 = vpop.permute.xlu0 %367 }
 0x24f   :  { %v370_v14 = vadd.f32 %v368_v12, %v360_v11 }
 0x251   :  { %2933 = vtanh.f32 %v370_v14 }
 0x252   :  { %2935 = vpow2.f32 %v2560_v16 }
 0x25b   :  { %v2934_v15 = vpop.eup %2933 }
 0x25c   :  { %373 = vrot.lane.b32.xlu1 %v2934_v15, %s3366_s24  ;;  %v2936_v17 = vpop.eup %2935 }
 0x25d   :  { %v354_v18 = vadd.f32 1.0, %v2936_v17 }
 0x25f   :  { %2937 = vrcp.f32 %v354_v18 }
 0x260   :  { %379 = vrot.lane.b32.xlu1 %v370_v14, %s3366_s24 }
 0x269   :  { %v2938_v23 = vpop.eup %2937 }
 0x2ce   :  { %v374_v24 = vpop.permute.xlu1 %373 }
 0x2cf   :  { %v376_v25 = vmul.f32 %v2938_v23, %v374_v24 }
 0x2d1   :  { %v3604_v27 = vsel %vm119_vm1, %v376_v25, 0.0 }
 0x2d2   :  { %v380_v28 = vpop.permute.xlu1 %379  ;;  %2561 = vmatmul.mubr.msk.f32.vlgmr.msra.gmra.mrb[4].mxu0 %vm171_vm0, %v3604_v27 }
 0x2d3   :  { %v382_v29 = vsel %vm119_vm1, %v380_v28, 0.0  ;;  %2672 = vmatpush1.bf16.msra.mxu0 %v3522_v13  ;;  %706 = vmatprep.mubr.f32.mxu0 %v3365_v0 }
 0x2d4   :  { %v479_v30 = vrot.slane %v382_v29, 6  ;;  %2674 = vmatprep.subr.bf16.mxu0 %v3526_v22 }
 0x2d6   :  { %480 = vrot.lane.b32.xlu1 %v479_v30, %s3366_s24 }
 0x2d7   :  { %2676 = vmatpush1.bf16.msra.mxu0 %v3528_v26 }
 0x2d8   :  { %2678 = vmatprep.subr.bf16.mxu0 %v3531_v35 }
 0x2db   :  { %2680 = vmatpush1.bf16.msra.mxu0 %v3534_v39 }
 0x2dc   :  { %2682 = vmatprep.subr.bf16.mxu0 %v3537_v44 }
 0x2df   :  { %2684 = vmatpush1.bf16.msra.mxu0 %v3540_v48 }
 0x2e0   :  { %2702 = vmatprep.subr.bf16.mxu0 %v3520_v9 }
 0x348   :  { %v481_v47 = vpop.permute.xlu1 %480 }
 0x3a5   :  { %v452_v31 = vpop.f32.mrb[4].mxu0 }
 0x3a6   :  { %v454_v32 = vpop.f32.mrb[5].mxu0  ;;  %v459_v37 = vrot.slane %v452_v31, 6 }
 0x3a7   :  { %v460_v33 = vrot.slane %v454_v32, 6 }
 0x3a8   :  { %v463_v38 = vadd.f32 %v459_v37, %v3587_v1 }
 0x3a9   :  { %v464_v34 = vadd.f32 %v460_v33, %v3577_v58 }
 0x3aa   :  { %v2562_v40 = vmul.f32 -1.442695, %v463_v38 }
 0x3ab   :  { %2939 = vtanh.f32 %v464_v34  ;;  %v2563_v57 = vmul.f32 -1.442695, %v464_v34 }
 0x3ac   :  { %2941 = vpow2.f32 %v2562_v40 }
 0x3b5   :  { %v2940_v36 = vpop.eup %2939 }
 0x3b6   :  { %485 = vrot.lane.b32.xlu0 %v2940_v36, %s3366_s24  ;;  %v2942_v41 = vpop.eup %2941 }
 0x3b7   :  { %v471_v42 = vadd.f32 1.0, %v2942_v41 }
 0x3b9   :  { %2943 = vrcp.f32 %v471_v42  ;;  %v3656_v42 = vld [vmem:[#allocation5 + $0x4] sm:$0x3] }
 0x3ba   :  { %vm125_vm3 = vcmp.gt.f32.partialorder %v3656_v42, 0.0 }
 0x3c3   :  { %v2944_v43 = vpop.eup %2943 }
 0x3c4   :  { %v483_v49 = vmul.f32 %v2944_v43, %v481_v47 }
 0x428   :  { %v486_v45 = vpop.permute.xlu0 %485 }
 0x429   :  { %v488_v46 = vmul.f32 %v2944_v43, %v486_v45 }
 0x42b   :  { %490 = vrot.lane.b32.xlu0 %v488_v46, %s3366_s24 }
 0x49d   :  { %v491_v50 = vpop.permute.xlu0 %490 }
 0x49e   :  { %v493_v53 = vadd.f32 %v491_v50, %v483_v49 }
 0x4a0   :  { %2945 = vtanh.f32 %v493_v53  ;;  %v505_v55 = vrot.slane %v493_v53, 2 }
 0x4a1   :  { %2947 = vpow2.f32 %v2563_v57 }
 0x4a2   :  { %506 = vrot.lane.b32.xlu0 %v505_v55, %s3366_s24 }
 0x4aa   :  { %v2946_v56 = vpop.eup %2945 }
 0x4ab   :  { %496 = vrot.lane.b32.xlu1 %v2946_v56, %s3366_s24  ;;  %v2948_v59 = vpop.eup %2947 }
 0x4ac   :  { %v472_v60 = vadd.f32 1.0, %v2948_v59 }
 0x4ae   :  { %2949 = vrcp.f32 %v472_v60 }
 0x4b8   :  { %v2950_v5 = vpop.eup %2949 }
 0x514   :  { %v507_v2 = vpop.permute.xlu0 %506 }
 0x515   :  { %v509_v3 = vsel %vm122_vm2, %v507_v2, %v382_v29 }
 0x516   :  { %v607_v4 = vrot.slane %v509_v3, 4 }
 0x518   :  { %608 = vrot.lane.b32.xlu0 %v607_v4, %s3366_s24 }
 0x51d   :  { %v497_v6 = vpop.permute.xlu1 %496 }
 0x51e   :  { %v3632_v7 = vmul.f32 %v2950_v5, %v497_v6 }
 0x520   :  { %v501_v8 = vrot.slane %v3632_v7, 2 }
 0x522   :  { %v503_v10 = vsel %vm122_vm2, %v501_v8, %v3604_v27 }
 0x523   :  { %2564 = vmatmul.mubr.msk.f32.vlgmr.msra.gmra.mrb[2].mxu1 %vm171_vm0, %v503_v10 }
 0x524   :  { %2688 = vmatpush1.bf16.msra.mxu1 %v3522_v13  ;;  %834 = vmatprep.mubr.f32.mxu1 %v3365_v0 }
 0x525   :  { %2690 = vmatprep.subr.bf16.mxu1 %v3526_v22 }
 0x528   :  { %2692 = vmatpush1.bf16.msra.mxu1 %v3528_v26 }
 0x529   :  { %2694 = vmatprep.subr.bf16.mxu1 %v3531_v35 }
 0x52c   :  { %2696 = vmatpush1.bf16.msra.mxu1 %v3534_v39 }
 0x52d   :  { %2698 = vmatprep.subr.bf16.mxu1 %v3537_v44 }
 0x530   :  { %2700 = vmatpush1.bf16.msra.mxu1 %v3540_v48 }
 0x531   :  { %2718 = vmatprep.subr.bf16.mxu1 %v3520_v9 }
 0x58a   :  { %v609_v31 = vpop.permute.xlu0 %608 }
 0x5f6   :  { %v580_v11 = vpop.f32.mrb[2].mxu1 }
 0x5f7   :  { %v582_v12 = vpop.f32.mrb[3].mxu1  ;;  %v587_v17 = vrot.slane %v580_v11, 4 }
 0x5f8   :  { %v588_v14 = vrot.slane %v582_v12, 4 }
 0x5f9   :  { %v591_v18 = vadd.f32 %v587_v17, %v3587_v1 }
 0x5fa   :  { %v592_v15 = vadd.f32 %v588_v14, %v3577_v58 }
 0x5fb   :  { %v2565_v23 = vmul.f32 -1.442695, %v591_v18 }
 0x5fc   :  { %2951 = vtanh.f32 %v592_v15  ;;  %v2566_v38 = vmul.f32 -1.442695, %v592_v15 }
 0x5fd   :  { %2953 = vpow2.f32 %v2565_v23 }
 0x606   :  { %v2952_v16 = vpop.eup %2951 }
 0x607   :  { %613 = vrot.lane.b32.xlu1 %v2952_v16, %s3366_s24  ;;  %v2954_v24 = vpop.eup %2953 }
 0x608   :  { %v599_v25 = vadd.f32 1.0, %v2954_v24 }
 0x60a   :  { %2955 = vrcp.f32 %v599_v25  ;;  %v3685_v25 = vld [vmem:[#allocation5 + $0x6] sm:$0x3] }
 0x60b   :  { %vm128_vm4 = vcmp.gt.f32.partialorder %v3685_v25, 0.0 }
 0x614   :  { %v2956_v28 = vpop.eup %2955 }
 0x615   :  { %v611_v32 = vmul.f32 %v2956_v28, %v609_v31 }
 0x679   :  { %v614_v29 = vpop.permute.xlu1 %613 }
 0x67a   :  { %v616_v30 = vmul.f32 %v2956_v28, %v614_v29 }
 0x67c   :  { %618 = vrot.lane.b32.xlu1 %v616_v30, %s3366_s24 }
 0x6ee   :  { %v619_v33 = vpop.permute.xlu1 %618 }
 0x6ef   :  { %v621_v34 = vadd.f32 %v619_v33, %v611_v32 }
 0x6f1   :  { %2957 = vtanh.f32 %v621_v34  ;;  %v633_v36 = vrot.slane %v621_v34, 4 }
 0x6f2   :  { %2959 = vpow2.f32 %v2566_v38 }
 0x6f3   :  { %634 = vrot.lane.b32.xlu1 %v633_v36, %s3366_s24  ;;  %v3704_v36 = vadd.f32 %v3597_v20, %v3574_v54 }
 0x6fb   :  { %v2958_v37 = vpop.eup %2957 }
 0x6fc   :  { %624 = vrot.lane.b32.xlu0 %v2958_v37, %s3366_s24  ;;  %v2960_v40 = vpop.eup %2959 }
 0x6fd   :  { %v600_v41 = vadd.f32 1.0, %v2960_v40 }
 0x6ff   :  { %2961 = vrcp.f32 %v600_v41 }
 0x709   :  { %v2962_v47 = vpop.eup %2961 }
 0x765   :  { %v635_v43 = vpop.permute.xlu1 %634 }
 0x766   :  { %v637_v45 = vsel %vm125_vm3, %v635_v43, %v509_v3  ;;  %v3710_v43 = vadd.f32 %v3595_v19, %v3584_v63 }
 0x767   :  { %v735_v46 = vrot.slane %v637_v45, 2 }
 0x769   :  { %736 = vrot.lane.b32.xlu1 %v735_v46, %s3366_s24 }
 0x76e   :  { %v625_v49 = vpop.permute.xlu0 %624 }
 0x76f   :  { %v3662_v50 = vmul.f32 %v2962_v47, %v625_v49 }
 0x771   :  { %v629_v53 = vrot.slane %v3662_v50, 4 }
 0x773   :  { %v631_v55 = vsel %vm125_vm3, %v629_v53, %v503_v10 }
 0x774   :  { %2567 = vmatmul.mubr.msk.f32.vlgmr.msra.gmra.mrb[6].mxu0 %vm171_vm0, %v631_v55 }
 0x775   :  { %2704 = vmatpush1.bf16.msra.mxu0 %v3522_v13  ;;  %951 = vmatprep.mubr.f32.mxu0 %v3365_v0 }
 0x776   :  { %2706 = vmatprep.subr.bf16.mxu0 %v3526_v22 }
 0x779   :  { %2708 = vmatpush1.bf16.msra.mxu0 %v3528_v26 }
 0x77a   :  { %2710 = vmatprep.subr.bf16.mxu0 %v3531_v35 }
 0x77d   :  { %2712 = vmatpush1.bf16.msra.mxu0 %v3534_v39 }
 0x77e   :  { %2714 = vmatprep.subr.bf16.mxu0 %v3537_v44 }
 0x781   :  { %2716 = vmatpush1.bf16.msra.mxu0 %v3540_v48 }
 0x782   :  { %2734 = vmatprep.subr.bf16.mxu0 %v3520_v9 }
 0x7db   :  { %v737_v14 = vpop.permute.xlu1 %736 }
 0x847   :  { %v708_v56 = vpop.f32.mrb[6].mxu0 }
 0x848   :  { %v710_v57 = vpop.f32.mrb[7].mxu0  ;;  %v715_v3 = vrot.slane %v708_v56, 2 }
 0x849   :  { %v716_v59 = vrot.slane %v710_v57, 2 }
 0x84a   :  { %v719_v4 = vadd.f32 %v715_v3, %v3587_v1  ;;  %v3716_v3 = vld [vmem:[#allocation5 + $0x8] sm:$0x3] }
 0x84b   :  { %v720_v60 = vadd.f32 %v716_v59, %v3577_v58  ;;  %vm131_vm5 = vcmp.gt.f32.partialorder %v3716_v3, 0.0 }
 0x84c   :  { %v2568_v5 = vmul.f32 -1.442695, %v719_v4 }
 0x84d   :  { %2963 = vtanh.f32 %v720_v60  ;;  %v2569_v1 = vmul.f32 -1.442695, %v720_v60 }
 0x84e   :  { %2965 = vpow2.f32 %v2568_v5 }
 0x857   :  { %v2964_v2 = vpop.eup %2963 }
 0x858   :  { %741 = vrot.lane.b32.xlu0 %v2964_v2, %s3366_s24  ;;  %v2966_v6 = vpop.eup %2965 }
 0x859   :  { %v727_v10 = vadd.f32 1.0, %v2966_v6 }
 0x85b   :  { %2967 = vrcp.f32 %v727_v10 }
 0x865   :  { %v2968_v11 = vpop.eup %2967 }
 0x866   :  { %v739_v15 = vmul.f32 %v2968_v11, %v737_v14 }
 0x8ca   :  { %v742_v12 = vpop.permute.xlu0 %741 }
 0x8cb   :  { %v744_v9 = vmul.f32 %v2968_v11, %v742_v12 }
 0x8cd   :  { %746 = vrot.lane.b32.xlu0 %v744_v9, %s3366_s24 }
 0x93f   :  { %v747_v58 = vpop.permute.xlu0 %746 }
 0x940   :  { %v749_v16 = vadd.f32 %v747_v58, %v739_v15 }
 0x942   :  { %2969 = vtanh.f32 %v749_v16  ;;  %v761_v17 = vrot.slane %v749_v16, 6 }
 0x943   :  { %2971 = vpow2.f32 %v2569_v1 }
 0x944   :  { %762 = vrot.lane.b32.xlu0 %v761_v17, %s3366_s24 }
 0x94c   :  { %v2970_v18 = vpop.eup %2969 }
 0x94d   :  { %752 = vrot.lane.b32.xlu1 %v2970_v18, %s3366_s24  ;;  %v2972_v23 = vpop.eup %2971 }
 0x94e   :  { %v728_v24 = vadd.f32 1.0, %v2972_v23 }
 0x950   :  { %2973 = vrcp.f32 %v728_v24 }
 0x95a   :  { %v2974_v30 = vpop.eup %2973 }
 0x9b6   :  { %v763_v28 = vpop.permute.xlu0 %762 }
 0x9b7   :  { %v765_v29 = vsel %vm128_vm4, %v763_v28, %v637_v45 }
 0x9b8   :  { %857 = vrot.lane.b32.xlu0 %v765_v29, %s3366_s24 }
 0x9bf   :  { %v753_v31 = vpop.permute.xlu1 %752 }
 0x9c0   :  { %v755_v32 = vmul.f32 %v2974_v30, %v753_v31 }
 0x9c2   :  { %v757_v33 = vrot.slane %v755_v32, 6 }
 0x9c4   :  { %v759_v34 = vsel %vm128_vm4, %v757_v33, %v631_v55  ;;  %v766_v14 = vsel %vm128_vm4, %v757_v33, 0.0 }
 0x9c5   :  { %2570 = vmatmul.mubr.msk.f32.vlgmr.msra.gmra.mrb[4].mxu1 %vm171_vm0, %v759_v34 }
 0x9c6   :  { %2720 = vmatpush1.bf16.msra.mxu1 %v3522_v13  ;;  %1079 = vmatprep.mubr.f32.mxu1 %v3365_v0 }
 0x9c7   :  { %2722 = vmatprep.subr.bf16.mxu1 %v3526_v22 }
 0x9ca   :  { %2724 = vmatpush1.bf16.msra.mxu1 %v3528_v26 }
 0x9cb   :  { %2726 = vmatprep.subr.bf16.mxu1 %v3531_v35 }
 0x9ce   :  { %2728 = vmatpush1.bf16.msra.mxu1 %v3534_v39 }
 0x9cf   :  { %2730 = vmatprep.subr.bf16.mxu1 %v3537_v44 }
 0x9d2   :  { %2732 = vmatpush1.bf16.msra.mxu1 %v3540_v48 }
 0xa2a   :  { %v858_v56 = vpop.permute.xlu0 %857 }
 0xa98   :  { %v836_v37 = vpop.f32.mrb[4].mxu1 }
 0xa99   :  { %v838_v38 = vpop.f32.mrb[5].mxu1  ;;  %v841_v45 = vadd.f32 %v836_v37, %v3710_v43 }
 0xa9a   :  { %v842_v40 = vadd.f32 %v838_v38, %v3704_v36 }
 0xa9b   :  { %v2571_v46 = vmul.f32 -1.442695, %v841_v45  ;;  %v3753_v45 = vld [vmem:[#allocation5 + $0xa] sm:$0x3] }
 0xa9c   :  { %2975 = vtanh.f32 %v842_v40  ;;  %v2572_v19 = vmul.f32 -1.442695, %v842_v40  ;;  %vm134_vm8 = vcmp.gt.f32.partialorder %v3753_v45, 0.0 }
 0xa9d   :  { %2977 = vpow2.f32 %v2571_v46 }
 0xaa6   :  { %v2976_v41 = vpop.eup %2975 }
 0xaa7   :  { %862 = vrot.lane.b32.xlu1 %v2976_v41, %s3366_s24  ;;  %v2978_v47 = vpop.eup %2977 }
 0xaa8   :  { %v849_v49 = vadd.f32 1.0, %v2978_v47 }
 0xaaa   :  { %2979 = vrcp.f32 %v849_v49 }
 0xab4   :  { %v2980_v54 = vpop.eup %2979 }
 0xab5   :  { %v860_v57 = vmul.f32 %v2980_v54, %v858_v56 }
 0xb19   :  { %v863_v20 = vpop.permute.xlu1 %862 }
 0xb1a   :  { %v865_v55 = vmul.f32 %v2980_v54, %v863_v20 }
 0xb1c   :  { %867 = vrot.lane.b32.xlu1 %v865_v55, %s3366_s24 }
 0xb8e   :  { %v868_v59 = vpop.permute.xlu1 %867 }
 0xb8f   :  { %v870_v60 = vadd.f32 %v868_v59, %v860_v57  ;;  %v638_v57 = vsel %vm125_vm3, %v629_v53, 0.0 }
 0xb91   :  { %2981 = vtanh.f32 %v870_v60  ;;  %879 = vrot.lane.b32.xlu1 %v870_v60, %s3366_s24 }
 0xb92   :  { %2983 = vpow2.f32 %v2572_v19 }
 0xb9b   :  { %v2982_v63 = vpop.eup %2981 }
 0xb9c   :  { %873 = vrot.lane.b32.xlu0 %v2982_v63, %s3366_s24  ;;  %v2984_v2 = vpop.eup %2983 }
 0xb9d   :  { %v850_v4 = vadd.f32 1.0, %v2984_v2 }
 0xb9f   :  { %2985 = vrcp.f32 %v850_v4 }
 0xba9   :  { %v2986_v11 = vpop.eup %2985 }
 0xc03   :  { %v880_v5 = vpop.permute.xlu1 %879 }
 0xc04   :  { %v882_v6 = vsel %vm131_vm5, %v880_v5, %v765_v29 }
 0xc05   :  { %v980_v10 = vrot.slane %v882_v6, 6 }
 0xc07   :  { %981 = vrot.lane.b32.xlu1 %v980_v10, %s3366_s24 }
 0xc0e   :  { %v874_v12 = vpop.permute.xlu0 %873 }
 0xc0f   :  { %v876_v9 = vmul.f32 %v2986_v11, %v874_v12 }
 0xc11   :  { %v877_v15 = vsel %vm131_vm5, %v876_v9, %v759_v34  ;;  %v883_v58 = vsel %vm131_vm5, %v876_v9, 0.0 }
 0xc12   :  { %v3729_v16 = vsel %vm1262_vm6, %v766_v14, %v883_v58  ;;  %v3732_v17 = vsel %vm1262_vm6, %v883_v58, %v766_v14  ;;  %2573 = vmatmul.mubr.msk.f32.vlgmr.msra.gmra.mrb[8].mxu0 %vm171_vm0, %v877_v15 }
 0xc13   :  { %1278 = vst.msk [vmem:[#allocation13 + $0x6] sm:$0x3] %vm1271_vm7, %v3729_v16  ;;  %1280 = vst.msk [vmem:[#allocation13 + $0x8] sm:$0x3] %vm1271_vm7, %v3732_v17  ;;  %2736 = vmatpush1.bf16.msra.mxu0 %v3522_v13  ;;  %1207 = vmatprep.mubr.f32.mxu0 %v3365_v0 }
 0xc14   :  { %2738 = vmatprep.subr.bf16.mxu0 %v3526_v22 }
 0xc17   :  { %2740 = vmatpush1.bf16.msra.mxu0 %v3528_v26 }
 0xc18   :  { %2742 = vmatprep.subr.bf16.mxu0 %v3531_v35 }
 0xc1b   :  { %2744 = vmatpush1.bf16.msra.mxu0 %v3534_v39 }
 0xc1c   :  { %2746 = vmatprep.subr.bf16.mxu0 %v3537_v44 }
 0xc1f   :  { %2748 = vmatpush1.bf16.msra.mxu0 %v3540_v48 }
 0xc79   :  { %v982_v30 = vpop.permute.xlu1 %981 }
 0xce5   :  { %v953_v18 = vpop.f32.mrb[8].mxu0 }
 0xce6   :  { %v955_v1 = vpop.f32.mrb[9].mxu0  ;;  %v960_v22 = vrot.slane %v953_v18, 6 }
 0xce7   :  { %v961_v23 = vrot.slane %v955_v1, 6 }
 0xce8   :  { %v964_v26 = vadd.f32 %v960_v22, %v3710_v43 }
 0xce9   :  { %v965_v24 = vadd.f32 %v961_v23, %v3704_v36 }
 0xcea   :  { %v2574_v28 = vmul.f32 -1.442695, %v964_v26 }
 0xceb   :  { %2987 = vtanh.f32 %v965_v24  ;;  %v2575_v38 = vmul.f32 -1.442695, %v965_v24 }
 0xcec   :  { %2989 = vpow2.f32 %v2574_v28 }
 0xcf5   :  { %v2988_v13 = vpop.eup %2987 }
 0xcf6   :  { %986 = vrot.lane.b32.xlu0 %v2988_v13, %s3366_s24  ;;  %v2990_v35 = vpop.eup %2989 }
 0xcf7   :  { %v972_v39 = vadd.f32 1.0, %v2990_v35 }
 0xcf9   :  { %2991 = vrcp.f32 %v972_v39  ;;  %v3785_v39 = vld [vmem:[#allocation5 + $0xc] sm:$0x3] }
 0xcfa   :  { %vm137_vm9 = vcmp.gt.f32.partialorder %v3785_v39, 0.0 }
 0xd03   :  { %v2992_v44 = vpop.eup %2991 }
 0xd04   :  { %v984_v31 = vmul.f32 %v2992_v44, %v982_v30 }
 0xd68   :  { %v987_v29 = vpop.permute.xlu0 %986 }
 0xd69   :  { %v989_v48 = vmul.f32 %v2992_v44, %v987_v29 }
 0xd6b   :  { %991 = vrot.lane.b32.xlu0 %v989_v48, %s3366_s24 }
 0xddd   :  { %v992_v32 = vpop.permute.xlu0 %991 }
 0xdde   :  { %v994_v33 = vadd.f32 %v992_v32, %v984_v31 }
 0xde0   :  { %2993 = vtanh.f32 %v994_v33  ;;  %v1006_v34 = vrot.slane %v994_v33, 2 }
 0xde1   :  { %2995 = vpow2.f32 %v2575_v38  ;;  %v510_v38 = vsel %vm122_vm2, %v501_v8, 0.0 }
 0xde2   :  { %1007 = vrot.lane.b32.xlu0 %v1006_v34, %s3366_s24 }
 0xdea   :  { %v2994_v37 = vpop.eup %2993 }
 0xdeb   :  { %997 = vrot.lane.b32.xlu1 %v2994_v37, %s3366_s24  ;;  %v2996_v40 = vpop.eup %2995 }
 0xdec   :  { %v973_v41 = vadd.f32 1.0, %v2996_v40 }
 0xdee   :  { %2997 = vrcp.f32 %v973_v41 }
 0xdf8   :  { %v2998_v54 = vpop.eup %2997 }
 0xe54   :  { %v1008_v46 = vpop.permute.xlu0 %1007 }
 0xe55   :  { %v1010_v47 = vsel %vm134_vm8, %v1008_v46, %v882_v6 }
 0xe56   :  { %v1108_v49 = vrot.slane %v1010_v47, 4 }
 0xe58   :  { %1109 = vrot.lane.b32.xlu0 %v1108_v49, %s3366_s24 }
 0xe5d   :  { %v998_v20 = vpop.permute.xlu1 %997 }
 0xe5e   :  { %v1000_v55 = vmul.f32 %v2998_v54, %v998_v20 }
 0xe60   :  { %v1002_v56 = vrot.slane %v1000_v55, 2 }
 0xe62   :  { %v1004_v59 = vsel %vm134_vm8, %v1002_v56, %v877_v15  ;;  %v1011_v60 = vsel %vm134_vm8, %v1002_v56, 0.0 }
 0xe63   :  { %v3768_v63 = vsel %vm1262_vm6, %v638_v57, %v1011_v60  ;;  %v3771_v19 = vsel %vm1262_vm6, %v1011_v60, %v638_v57  ;;  %2576 = vmatmul.mubr.msk.f32.vlgmr.msra.gmra.mrb[6].mxu1 %vm171_vm0, %v1004_v59 }
 0xe64   :  { %1276 = vst.msk [vmem:[#allocation13 + $0x4] sm:$0x3] %vm1271_vm7, %v3768_v63  ;;  %1282 = vst.msk [vmem:[#allocation13 + $0xa] sm:$0x3] %vm1271_vm7, %v3771_v19  ;;  %1453 = vmatprep.mubr.f32.mxu1 %v3365_v0  ;;  %v1298_v34 = vrot.slane %v3771_v19, 6  ;;  %v1322_v37 = vrot.slane %v3768_v63, 6 }
 0xe66   :  { %v1332_v49 = vsel %vm1306_vm10, %v3729_v16, %v1322_v37  ;;  %v1312_v54 = vsel %vm1306_vm10, %v3732_v17, %v1298_v34  ;;  %v1358_v34 = vld [vmem:[#allocation10 + $0x68] sm:$0xff]  ;;  %v1360_v37 = vld [vmem:[#allocation10 + $0x78] sm:$0xff] }
 0xeca   :  { %v1110_v18 = vpop.permute.xlu0 %1109 }
 0xf36   :  { %v1081_v50 = vpop.f32.mrb[6].mxu1 }
 0xf37   :  { %v1083_v53 = vpop.f32.mrb[7].mxu1  ;;  %v1088_v6 = vrot.slane %v1081_v50, 4 }
 0xf38   :  { %v1089_v2 = vrot.slane %v1083_v53, 4 }
 0xf39   :  { %v1092_v10 = vadd.f32 %v1088_v6, %v3710_v43 }
 0xf3a   :  { %v1093_v4 = vadd.f32 %v1089_v2, %v3704_v36 }
 0xf3b   :  { %v2577_v11 = vmul.f32 -1.442695, %v1092_v10 }
 0xf3c   :  { %2999 = vtanh.f32 %v1093_v4  ;;  %v2578_v26 = vmul.f32 -1.442695, %v1093_v4 }
 0xf3d   :  { %3001 = vpow2.f32 %v2577_v11 }
 0xf46   :  { %v3000_v5 = vpop.eup %2999 }
 0xf47   :  { %1114 = vrot.lane.b32.xlu1 %v3000_v5, %s3366_s24  ;;  %v3002_v12 = vpop.eup %3001 }
 0xf48   :  { %v1100_v9 = vadd.f32 1.0, %v3002_v12 }
 0xf4a   :  { %3003 = vrcp.f32 %v1100_v9 }
 0xf54   :  { %v3004_v14 = vpop.eup %3003 }
 0xf55   :  { %v1112_v1 = vmul.f32 %v3004_v14, %v1110_v18  ;;  %v1348_v18 = vld [vmem:[#allocation10 + $0x18] sm:$0xff] }
 0xfb9   :  { %v1115_v15 = vpop.permute.xlu1 %1114 }
 0xfba   :  { %v1117_v58 = vmul.f32 %v3004_v14, %v1115_v15 }
 0xfbc   :  { %1119 = vrot.lane.b32.xlu1 %v1117_v58, %s3366_s24  ;;  %v1346_v58 = vld [vmem:[#allocation10 + $0x8] sm:$0xff] }
0x102e   :  { %v1120_v23 = vpop.permute.xlu1 %1119 }
0x102f   :  { %v1122_v24 = vadd.f32 %v1120_v23, %v1112_v1  ;;  %v1345_v1 = vld [vmem:[#allocation10] sm:$0xff]  ;;  %v2749_v23 = vpack.c.bf16 %v1348_v18, %v1346_v58 }
0x1030   :  { %v1361_v18 = vld [vmem:[#allocation10 + $0x80] sm:$0xff] }
0x1031   :  { %3005 = vtanh.f32 %v1122_v24  ;;  %v1134_v13 = vrot.slane %v1122_v24, 4  ;;  %v1350_v24 = vld [vmem:[#allocation10 + $0x28] sm:$0xff]  ;;  %2750 = vmatprep.subr.bf16.mxu1 %v2749_v23 }
0x1032   :  { %3007 = vpow2.f32 %v2578_v26 }
0x1033   :  { %1135 = vrot.lane.b32.xlu1 %v1134_v13, %s3366_s24  ;;  %v1352_v13 = vld [vmem:[#allocation10 + $0x38] sm:$0xff] }
0x1034   :  { %v2753_v26 = vpack.c.bf16 %v1352_v13, %v1350_v24  ;;  %v1366_v24 = vld [vmem:[#allocation10 + $0xa8] sm:$0xff]  ;;  %v1368_v13 = vld [vmem:[#allocation10 + $0xb8] sm:$0xff] }
0x103b   :  { %v3006_v22 = vpop.eup %3005 }
0x103c   :  { %1125 = vrot.lane.b32.xlu0 %v3006_v22, %s3366_s24  ;;  %v3008_v28 = vpop.eup %3007 }
0x103d   :  { %v1101_v35 = vadd.f32 1.0, %v3008_v28  ;;  %v1349_v28 = vld [vmem:[#allocation10 + $0x20] sm:$0xff] }
0x103f   :  { %3009 = vrcp.f32 %v1101_v35  ;;  %v1351_v35 = vld [vmem:[#allocation10 + $0x30] sm:$0xff] }
0x1049   :  { %v3010_v30 = vpop.eup %3009 }
0x10a5   :  { %v1136_v44 = vpop.permute.xlu1 %1135 }
0x10a6   :  { %v1138_v29 = vsel %vm137_vm9, %v1136_v44, %v1010_v47  ;;  %v1354_v44 = vld [vmem:[#allocation10 + $0x48] sm:$0xff] }
0x10a7   :  { %v1236_v48 = vrot.slane %v1138_v29, 2 }
0x10a9   :  { %1237 = vrot.lane.b32.xlu1 %v1236_v48, %s3366_s24  ;;  %v1356_v48 = vld [vmem:[#allocation10 + $0x58] sm:$0xff] }
0x10ae   :  { %v1126_v31 = vpop.permute.xlu0 %1125 }
0x10af   :  { %v1128_v32 = vmul.f32 %v3010_v30, %v1126_v31  ;;  %v2755_v30 = vpack.c.bf16 %v1351_v35, %v1349_v28  ;;  %v2757_v31 = vpack.c.bf16 %v1356_v48, %v1354_v44  ;;  %v1481_v28 = vld [vmem:[#allocation11 + $0x78] sm:$0xff]  ;;  %v1480_v48 = vld [vmem:[#allocation11 + $0x70] sm:$0xff] }
0x10b1   :  { %v1130_v33 = vrot.slane %v1128_v32, 4  ;;  %v1353_v32 = vld [vmem:[#allocation10 + $0x40] sm:$0xff] }
0x10b3   :  { %v3799_v40 = vsel %vm137_vm9, %v1130_v33, %v1004_v59  ;;  %v1139_v41 = vsel %vm137_vm9, %v1130_v33, 0.0  ;;  %v1355_v33 = vld [vmem:[#allocation10 + $0x50] sm:$0xff] }
0x10b4   :  { %v3804_v46 = vsel %vm1262_vm6, %v510_v38, %v1139_v41  ;;  %v3807_v47 = vsel %vm1262_vm6, %v1139_v41, %v510_v38  ;;  %2579 = vmatmul.mubr.msk.f32.vlgmr.msra.gmra.mrb[10].mxu0 %vm171_vm0, %v3799_v40  ;;  %v1467_v38 = vld [vmem:[#allocation11 + $0x8] sm:$0xff]  ;;  %v1469_v41 = vld [vmem:[#allocation11 + $0x18] sm:$0xff] }
0x10b5   :  { %1274 = vst.msk [vmem:[#allocation13 + $0x2] sm:$0x3] %vm1271_vm7, %v3804_v46  ;;  %1284 = vst.msk [vmem:[#allocation13 + $0xc] sm:$0x3] %vm1271_vm7, %v3807_v47  ;;  %v1301_v7 = vrot.slane %v3807_v47, 4  ;;  %v1324_v8 = vrot.slane %v3804_v46, 4  ;;  %1546 = vmatprep.mubr.f32.mxu0 %v3365_v0 }
0x10b7   :  { %v3823_v20 = vsel %vm1308_vm11, %v1332_v49, %v1324_v8  ;;  %v3826_v55 = vsel %vm1308_vm11, %v1312_v54, %v1301_v7  ;;  %v1466_v7 = vld [vmem:[#allocation11] sm:$0xff]  ;;  %v1468_v8 = vld [vmem:[#allocation11 + $0x10] sm:$0xff]  ;;  %v2759_v49 = vpack.c.bf16 %v1355_v33, %v1353_v32  ;;  %v1370_v33 = vld [vmem:[#allocation10 + $0xc8] sm:$0xff] }
0x10b8   :  { %v1357_v54 = vld [vmem:[#allocation10 + $0x60] sm:$0xff]  ;;  %v1367_v32 = vld [vmem:[#allocation10 + $0xb0] sm:$0xff] }
0x1187   :  { %v1209_v56 = vpop.f32.mrb[10].mxu0 }
0x1188   :  { %v1211_v57 = vpop.f32.mrb[11].mxu0  ;;  %v1216_v53 = vrot.slane %v1209_v56, 2  ;;  %v1359_v56 = vld [vmem:[#allocation10 + $0x70] sm:$0xff] }
0x1189   :  { %v1217_v59 = vrot.slane %v1211_v57, 2  ;;  %v3836_v57 = vpack.c.bf16 %v1469_v41, %v1467_v38 }
0x118a   :  { %v1220_v2 = vadd.f32 %v1216_v53, %v3710_v43  ;;  %v1347_v43 = vld [vmem:[#allocation10 + $0x10] sm:$0xff]  ;;  %v1362_v53 = vld [vmem:[#allocation10 + $0x88] sm:$0xff] }
0x118b   :  { %v3829_v60 = vadd.f32 %v1217_v59, %v3704_v36  ;;  %v1238_v36 = vpop.permute.xlu1 %1237  ;;  %v2751_v22 = vpack.c.bf16 %v1347_v43, %v1345_v1  ;;  %v3838_v59 = vpack.c.bf16 %v1468_v8, %v1466_v7  ;;  %2782 = vmatprep.subr.bf16.mxu0 %v3836_v57  ;;  %v1363_v1 = vld [vmem:[#allocation10 + $0x90] sm:$0xff]  ;;  %v1369_v7 = vld [vmem:[#allocation10 + $0xc0] sm:$0xff] }
0x118c   :  { %v2580_v4 = vmul.f32 -1.442695, %v1220_v2  ;;  %v1471_v2 = vld [vmem:[#allocation11 + $0x28] sm:$0xff]  ;;  %v1476_v43 = vld [vmem:[#allocation11 + $0x50] sm:$0xff]  ;;  %v2767_v35 = vpack.c.bf16 %v1363_v1, %v1361_v18  ;;  %v1295_v18 = vrot.slane %v3729_v16, 2  ;;  %v1292_v1 = vrot.slane %v3768_v63, 4 }
0x118d   :  { %3011 = vtanh.f32 %v3829_v60  ;;  %2752 = vmatpush1.bf16.msra.mxu1 %v2751_v22  ;;  %2784 = vmatpush1.bf16.msra.mxu0 %v3838_v59  ;;  %v1479_v22 = vld [vmem:[#allocation11 + $0x68] sm:$0xff]  ;;  %v1371_v8 = vld [vmem:[#allocation10 + $0xd0] sm:$0xff] }
0x118e   :  { %3013 = vpow2.f32 %v2580_v4  ;;  %2754 = vmatprep.subr.bf16.mxu1 %v2753_v26  ;;  %v1473_v4 = vld [vmem:[#allocation11 + $0x38] sm:$0xff]  ;;  %v3853_v44 = vpack.c.bf16 %v1481_v28, %v1479_v22  ;;  %v1317_v28 = vrot.slane %v3771_v19, 4 }
0x1191   :  { %2756 = vmatpush1.bf16.msra.mxu1 %v2755_v30  ;;  %v2769_v30 = vpack.c.bf16 %v1368_v13, %v1366_v24  ;;  %v1315_v24 = vrot.slane %v3807_v47, 6 }
0x1192   :  { %2758 = vmatprep.subr.bf16.mxu1 %v2757_v31  ;;  %v1365_v31 = vld [vmem:[#allocation10 + $0xa0] sm:$0xff] }
0x1193   :  { %v2771_v38 = vpack.c.bf16 %v1367_v32, %v1365_v31 }
0x1195   :  { %2760 = vmatpush1.bf16.msra.mxu1 %v2759_v49  ;;  %v1374_v49 = vld [vmem:[#allocation10 + $0xe8] sm:$0xff] }
0x1197   :  { %v3012_v50 = vpop.eup %3011 }
0x1198   :  { %1242 = vrot.lane.b32.xlu0 %v3012_v50, %s3366_s24  ;;  %v3014_v5 = vpop.eup %3013  ;;  %v2761_v50 = vpack.c.bf16 %v1360_v37, %v1358_v34  ;;  %v1372_v34 = vld [vmem:[#allocation10 + $0xd8] sm:$0xff] }
0x1199   :  { %v1228_v6 = vadd.f32 1.0, %v3014_v5  ;;  %v1364_v5 = vld [vmem:[#allocation10 + $0x98] sm:$0xff]  ;;  %v2773_v41 = vpack.c.bf16 %v1372_v34, %v1370_v33  ;;  %v1377_v33 = vld [vmem:[%s4202_s6] sm:$0x3]  ;;  %s3367_s6 = smov [#allocation14]  }
0x119a   :  { %2762 = vmatprep.subr.bf16.mxu1 %v2761_v50  ;;  %v2765_v58 = vpack.c.bf16 %v1364_v5, %v1362_v53  ;;  %v1373_v53 = vld [vmem:[#allocation10 + $0xe0] sm:$0xff]  ;;  %v2581_v5 = vmul.f32 -1.442695, %v3829_v60  ;;  %v1289_v60 = vrot.slane %v3804_v46, 6  ;;  %v3918_v34 = vrot.slane %v1377_v33, %v167_v52  ;;  %s2512_s22 = sshll.u32 %s3367_s6, 4  ;;  %s2513_s22 = int_to_ptr.vmem [resolvable:$true] %s2512_s22 }
0x119b   :  { %3015 = vrcp.f32 %v1228_v6  ;;  %v3841_v6 = vpack.c.bf16 %v1473_v4, %v1471_v2  ;;  %v1375_v2 = vld [vmem:[#allocation10 + $0xf0] sm:$0xff]  ;;  %s3251_s29 = scalar_lea.vmem %s2513_s22, 32  ;;  %p3256_p7 = scmp.lt.s32.totalorder %s2513_s22, %s2513_s22 }
0x119c   :  { %v2779_v4 = vpack.c.bf16 %v1375_v2, %v1373_v53  ;;  %p3252_p6 = scmp.ne.s32.totalorder %s2513_s22, %s3251_s29  ;;  %p3257_p8 = scmp.lt.s32.totalorder %s3251_s29, %s3251_s29 }
0x119d   :  { %2786 = vmatprep.subr.bf16.mxu0 %v3841_v6 }
0x119e   :  { %p3258_p9 = por %p3257_p8, %p3256_p7 }
0x11a0   :  { %p3259_p10 = pnand %p3258_p9, %p3252_p6 }
0x11a5   :  { %v3016_v10 = vpop.eup %3015 }
0x11a6   :  { %v1240_v9 = vmul.f32 %v3016_v10, %v1238_v36  ;;  %v2763_v36 = vpack.c.bf16 %v1359_v56, %v1357_v54  ;;  %v1376_v54 = vld [vmem:[#allocation10 + $0xf8] sm:$0xff]  ;;  %v2775_v56 = vpack.c.bf16 %v1371_v8, %v1369_v7 }
0x11a7   :  { %v2777_v50 = vpack.c.bf16 %v1376_v54, %v1374_v49  ;;  %v3927_v54 = vrot.slane %v1377_v33, %v163_v62 }
0x11a8   :  { %2764 = vmatpush1.bf16.msra.mxu1 %v2763_v36  ;;  %v3873_v36 = vld [vmem:[#allocation5 + $0xe] sm:$0x3] }
0x11a9   :  { %2766 = vmatprep.subr.bf16.mxu1 %v2765_v58  ;;  %vm140_vm12 = vcmp.gt.f32.partialorder %v3873_v36, 0.0 }
0x11ac   :  { %2768 = vmatpush1.bf16.msra.mxu1 %v2767_v35 }
0x11ad   :  { %2770 = vmatprep.subr.bf16.mxu1 %v2769_v30 }
0x11b0   :  { %2772 = vmatpush1.bf16.msra.mxu1 %v2771_v38 }
0x11b1   :  { %2774 = vmatprep.subr.bf16.mxu1 %v2773_v41 }
0x11b4   :  { %2776 = vmatpush1.bf16.msra.mxu1 %v2775_v56 }
0x11b5   :  { %2778 = vmatprep.subr.bf16.mxu1 %v2777_v50 }
0x11b8   :  { %2780 = vmatpush1.bf16.msra.mxu1 %v2779_v4 }
0x11b9   :  { %2814 = vmatprep.subr.bf16.mxu1 %v3836_v57 }
0x120a   :  { %v1243_v11 = vpop.permute.xlu0 %1242 }
0x120b   :  { %v1245_v12 = vmul.f32 %v3016_v10, %v1243_v11  ;;  %v1470_v10 = vld [vmem:[#allocation11 + $0x20] sm:$0xff]  ;;  %v1472_v11 = vld [vmem:[#allocation11 + $0x30] sm:$0xff] }
0x120d   :  { %1247 = vrot.lane.b32.xlu0 %v1245_v12, %s3366_s24  ;;  %v3844_v12 = vpack.c.bf16 %v1472_v11, %v1470_v10 }
0x120f   :  { %2788 = vmatpush1.bf16.msra.mxu0 %v3844_v12 }
0x127f   :  { %v1248_v14 = vpop.permute.xlu0 %1247 }
0x1280   :  { %v1250_v15 = vadd.f32 %v1248_v14, %v1240_v9  ;;  %v1475_v9 = vld [vmem:[#allocation11 + $0x48] sm:$0xff]  ;;  %v1477_v14 = vld [vmem:[#allocation11 + $0x58] sm:$0xff] }
0x1281   :  { %v3847_v23 = vpack.c.bf16 %v1477_v14, %v1475_v9 }
0x1282   :  { %3017 = vtanh.f32 %v1250_v15  ;;  %v1474_v15 = vld [vmem:[#allocation11 + $0x40] sm:$0xff] }
0x1283   :  { %v3850_v26 = vpack.c.bf16 %v1476_v43, %v1474_v15  ;;  %2790 = vmatprep.subr.bf16.mxu0 %v3847_v23  ;;  %3019 = vpow2.f32 %v2581_v5  ;;  %v1320_v43 = vrot.slane %v3732_v17, 2 }
0x1285   :  { %2792 = vmatpush1.bf16.msra.mxu0 %v3850_v26 }
0x1286   :  { %2794 = vmatprep.subr.bf16.mxu0 %v3853_v44 }
0x128c   :  { %v3018_v29 = vpop.eup %3017 }
0x128d   :  { %1253 = vrot.lane.b32.xlu1 %v3018_v29, %s3366_s24  ;;  %v1478_v29 = vld [vmem:[#allocation11 + $0x60] sm:$0xff]  ;;  %v3020_v10 = vpop.eup %3019 }
0x128e   :  { %v3856_v37 = vpack.c.bf16 %v1480_v48, %v1478_v29  ;;  %v1229_v11 = vadd.f32 1.0, %v3020_v10 }
0x1290   :  { %2796 = vmatpush1.bf16.msra.mxu0 %v3856_v37  ;;  %3021 = vrcp.f32 %v1229_v11 }
0x1291   :  { %2798 = vmatprep.subr.bf16.mxu0 %v3836_v57 }
0x1293   :  { %1547 = vmatmul.mubr.f32.vlgmr.msra.gmra.mrb[12].mxu0 %v3365_v0 }
0x1294   :  { %2800 = vmatpush1.bf16.msra.mxu0 %v3838_v59  ;;  %1658 = vmatprep.mubr.f32.mxu0 %v3365_v0 }
0x1295   :  { %2802 = vmatprep.subr.bf16.mxu0 %v3841_v6 }
0x1298   :  { %2804 = vmatpush1.bf16.msra.mxu0 %v3844_v12 }
0x1299   :  { %2806 = vmatprep.subr.bf16.mxu0 %v3847_v23 }
0x129a   :  { %v3022_v9 = vpop.eup %3021 }
0x129c   :  { %2808 = vmatpush1.bf16.msra.mxu0 %v3850_v26 }
0x129d   :  { %2810 = vmatprep.subr.bf16.mxu0 %v3853_v44 }
0x12a0   :  { %2812 = vmatpush1.bf16.msra.mxu0 %v3856_v37 }
0x12a1   :  { %2830 = vmatprep.subr.bf16.mxu0 %v3836_v57 }
0x12ff   :  { %v1254_v14 = vpop.permute.xlu1 %1253 }
0x1300   :  { %v1256_v15 = vmul.f32 %v3022_v9, %v1254_v14 }
0x1302   :  { %v1258_v58 = vrot.slane %v1256_v15, 6 }
0x1304   :  { %v1261_v13 = vsel %vm140_vm12, %v1258_v58, 0.0  ;;  %v1260_v22 = vsel %vm140_vm12, %v1258_v58, %v3799_v40 }
0x1305   :  { %v1263_v16 = vsel %vm1262_vm6, %v3604_v27, %v1261_v13  ;;  %v1270_v63 = vsel %vm1262_vm6, %v1261_v13, %v3604_v27  ;;  %1287 = vst.msk [vmem:[#allocation14] sm:$0x3] %vm1271_vm7, %v1260_v22 }
0x1306   :  { %1272 = vst.msk [vmem:[#allocation13] sm:$0x3] %vm1271_vm7, %v1263_v16  ;;  %1286 = vst.msk [vmem:[#allocation13 + $0xe] sm:$0x3] %vm1271_vm7, %v1270_v63  ;;  %v1304_v17 = vrot.slane %v1270_v63, 2  ;;  %v1307_v46 = vsel %vm1306_vm10, %v1263_v16, %v1289_v60  ;;  %v1329_v40 = vsel %vm1306_vm10, %v1270_v63, %v1315_v24  ;;  %v1327_v47 = vrot.slane %v1263_v16, 2 }
0x1307   :  { %v1330_v19 = vsel %vm1308_vm11, %v1329_v40, %v1317_v28  ;;  %v1309_v35 = vsel %vm1308_vm11, %v1307_v46, %v1292_v1 }
0x1308   :  { %v1331_v29 = vsel %vm1310_vm13, %v1330_v19, %v1320_v43  ;;  %v1311_v48 = vsel %vm1310_vm13, %v1309_v35, %v1295_v18  ;;  %v1334_v27 = vsel %vm1310_vm13, %v3823_v20, %v1327_v47  ;;  %v3900_v30 = vsel %vm1310_vm13, %v3826_v55, %v1304_v17 }
0x1309   :  { %1337 = vrot.lane.b32.xlu0 %v1331_v29, %s3366_s24 }
0x1366   :  { %v1548_v20 = vpop.f32.mrb[12].mxu0 }
0x1367   :  { %v1550_v55 = vpop.f32.mrb[13].mxu0 }
0x137b   :  { %v1338_v31 = vpop.permute.xlu0 %1337 }
0x137c   :  { %v1343_v32 = vsel %vm171_vm0, %v1311_v48, %v1338_v31 }
0x137d   :  { %1454 = vmatmul.mubr.f32.vlgmr.msra.gmra.mrb[8].mxu1 %v1343_v32 }
0x137e   :  { %1459 = vmatprep.mubr.f32.mxu1 %v3365_v0  ;;  %2816 = vmatpush1.bf16.msra.mxu1 %v3838_v59 }
0x137f   :  { %2818 = vmatprep.subr.bf16.mxu1 %v3841_v6 }
0x1382   :  { %2820 = vmatpush1.bf16.msra.mxu1 %v3844_v12 }
0x1383   :  { %2822 = vmatprep.subr.bf16.mxu1 %v3847_v23 }
0x1386   :  { %2824 = vmatpush1.bf16.msra.mxu1 %v3850_v26 }
0x1387   :  { %2826 = vmatprep.subr.bf16.mxu1 %v3853_v44 }
0x138a   :  { %2828 = vmatpush1.bf16.msra.mxu1 %v3856_v37 }
0x138b   :  { %2846 = vmatprep.subr.bf16.mxu1 %v3836_v57 }
0x1450   :  { %v1455_v38 = vpop.f32.mrb[8].mxu1 }
0x1451   :  { %v1457_v41 = vpop.f32.mrb[9].mxu1  ;;  %v3930_v56 = vadd.f32 %v1455_v38, %v3927_v54 }
0x1452   :  { %v3921_v7 = vadd.f32 %v1457_v41, %v3918_v34 }
0x1453   :  { %v1553_v52 = vadd.f32 %v1548_v20, %v3930_v56 }
0x1454   :  { %v1554_v8 = vadd.f32 %v1550_v55, %v3921_v7 }
0x1455   :  { %v2582_v50 = vmul.f32 -1.442695, %v1553_v52 }
0x1456   :  { %3023 = vtanh.f32 %v1554_v8  ;;  %v2583_v14 = vmul.f32 -1.442695, %v1554_v8 }
0x1457   :  { %3025 = vpow2.f32 %v2582_v50 }
0x1460   :  { %v3024_v49 = vpop.eup %3023 }
0x1461   :  { %1570 = vrot.lane.b32.xlu1 %v3024_v49, %s3366_s24  ;;  %v3026_v53 = vpop.eup %3025 }
0x1462   :  { %v1561_v2 = vadd.f32 1.0, %v3026_v53 }
0x1464   :  { %3027 = vrcp.f32 %v1561_v2 }
0x146e   :  { %v3028_v4 = vpop.eup %3027 }
0x146f   :  { %v1568_v11 = vmul.f32 0.0, %v3028_v4 }
0x14d3   :  { %v1571_v5 = vpop.permute.xlu1 %1570 }
0x14d4   :  { %v1573_v10 = vmul.f32 %v3028_v4, %v1571_v5 }
0x14d6   :  { %1575 = vrot.lane.b32.xlu0 %v1573_v10, %s3366_s24 }
0x1548   :  { %v1576_v9 = vpop.permute.xlu0 %1575 }
0x1549   :  { %v1578_v51 = vadd.f32 %v1576_v9, %v1568_v11 }
0x154b   :  { %3029 = vtanh.f32 %v1578_v51  ;;  %1587 = vrot.lane.b32.xlu0 %v1578_v51, %s3366_s24 }
0x154c   :  { %3031 = vpow2.f32 %v2583_v14 }
0x1555   :  { %v3030_v62 = vpop.eup %3029 }
0x1556   :  { %1581 = vrot.lane.b32.xlu1 %v3030_v62, %s3366_s24  ;;  %v3032_v15 = vpop.eup %3031 }
0x1557   :  { %v1562_v58 = vadd.f32 1.0, %v3032_v15 }
0x1559   :  { %3033 = vrcp.f32 %v1562_v58 }
0x1563   :  { %v3034_v60 = vpop.eup %3033 }
0x15bd   :  { %v1588_v18 = vpop.permute.xlu0 %1587 }
0x15be   :  { %v1590_v1 = vsel %vm119_vm1, %v1588_v18, 0.0 }
0x15bf   :  { %v1687_v43 = vrot.slane %v1590_v1, 6 }
0x15c1   :  { %1688 = vrot.lane.b32.xlu0 %v1687_v43, %s3366_s24 }
0x15c5   :  { %1339 = vrot.lane.b32.xlu0 %v1334_v27, %s3366_s24 }
0x15c8   :  { %v1582_v24 = vpop.permute.xlu1 %1581 }
0x15c9   :  { %v1584_v13 = vmul.f32 %v3034_v60, %v1582_v24 }
0x15cb   :  { %v3942_v22 = vsel %vm119_vm1, %v1584_v13, 0.0 }
0x15cc   :  { %2584 = vmatmul.mubr.msk.f32.vlgmr.msra.gmra.mrb[14].mxu0 %vm171_vm0, %v3942_v22 }
0x15cd   :  { %2832 = vmatpush1.bf16.msra.mxu0 %v3838_v59  ;;  %1914 = vmatprep.mubr.f32.mxu0 %v3365_v0 }
0x15ce   :  { %2834 = vmatprep.subr.bf16.mxu0 %v3841_v6 }
0x15d1   :  { %2836 = vmatpush1.bf16.msra.mxu0 %v3844_v12 }
0x15d2   :  { %2838 = vmatprep.subr.bf16.mxu0 %v3847_v23 }
0x15d5   :  { %2840 = vmatpush1.bf16.msra.mxu0 %v3850_v26 }
0x15d6   :  { %2842 = vmatprep.subr.bf16.mxu0 %v3853_v44 }
0x15d9   :  { %2844 = vmatpush1.bf16.msra.mxu0 %v3856_v37 }
0x15da   :  { %2862 = vmatprep.subr.bf16.mxu0 %v3836_v57 }
0x1633   :  { %v1689_v21 = vpop.permute.xlu0 %1688 }
0x1637   :  { %v1340_v28 = vpop.permute.xlu0 %1339 }
0x1638   :  { %v1344_v16 = vsel %vm171_vm0, %v3900_v30, %v1340_v28 }
0x1639   :  { %1460 = vmatmul.mubr.f32.gmra.mrb[10].mxu1 %v1344_v16 }
0x163a   :  { %1786 = vmatprep.mubr.f32.mxu1 %v3365_v0 }
0x169f   :  { %v1660_v63 = vpop.f32.mrb[14].mxu0 }
0x16a0   :  { %v1662_v17 = vpop.f32.mrb[15].mxu0  ;;  %v1667_v19 = vrot.slane %v1660_v63, 6 }
0x16a1   :  { %v1668_v46 = vrot.slane %v1662_v17, 6 }
0x16a2   :  { %v1671_v35 = vadd.f32 %v1667_v19, %v3930_v56 }
0x16a3   :  { %v1672_v40 = vadd.f32 %v1668_v46, %v3921_v7 }
0x16a4   :  { %v2585_v29 = vmul.f32 -1.442695, %v1671_v35 }
0x16a5   :  { %3035 = vtanh.f32 %v1672_v40  ;;  %v2586_v52 = vmul.f32 -1.442695, %v1672_v40 }
0x16a6   :  { %3037 = vpow2.f32 %v2585_v29 }
0x16af   :  { %v3036_v47 = vpop.eup %3035 }
0x16b0   :  { %1693 = vrot.lane.b32.xlu1 %v3036_v47, %s3366_s24  ;;  %v3038_v30 = vpop.eup %3037 }
0x16b1   :  { %v1679_v31 = vadd.f32 1.0, %v3038_v30 }
0x16b3   :  { %3039 = vrcp.f32 %v1679_v31 }
0x16bd   :  { %v3040_v32 = vpop.eup %3039 }
0x16be   :  { %v1691_v33 = vmul.f32 %v3040_v32, %v1689_v21 }
0x170c   :  { %v3961_v48 = vpop.f32.mrb[10].mxu1 }
0x170d   :  { %v3963_v27 = vpop.f32.mrb[11].mxu1 }
0x1722   :  { %v1694_v20 = vpop.permute.xlu1 %1693 }
0x1723   :  { %v1696_v55 = vmul.f32 %v3040_v32, %v1694_v20 }
0x1725   :  { %1698 = vrot.lane.b32.xlu1 %v1696_v55, %s3366_s24 }
0x1797   :  { %v1699_v38 = vpop.permute.xlu1 %1698 }
0x1798   :  { %v1701_v41 = vadd.f32 %v1699_v38, %v1691_v33 }
0x179a   :  { %3041 = vtanh.f32 %v1701_v41  ;;  %v1713_v8 = vrot.slane %v1701_v41, 2 }
0x179b   :  { %3043 = vpow2.f32 %v2586_v52 }
0x179c   :  { %1714 = vrot.lane.b32.xlu0 %v1713_v8, %s3366_s24 }
0x17a4   :  { %v3042_v49 = vpop.eup %3041 }
0x17a5   :  { %1704 = vrot.lane.b32.xlu1 %v3042_v49, %s3366_s24  ;;  %v3044_v50 = vpop.eup %3043 }
0x17a6   :  { %v1680_v53 = vadd.f32 1.0, %v3044_v50 }
0x17a8   :  { %3045 = vrcp.f32 %v1680_v53 }
0x17b2   :  { %v3046_v10 = vpop.eup %3045 }
0x180e   :  { %v1715_v2 = vpop.permute.xlu0 %1714 }
0x180f   :  { %v1717_v4 = vsel %vm122_vm2, %v1715_v2, %v1590_v1 }
0x1810   :  { %v1815_v5 = vrot.slane %v1717_v4, 4 }
0x1812   :  { %1816 = vrot.lane.b32.xlu0 %v1815_v5, %s3366_s24 }
0x1817   :  { %v1705_v11 = vpop.permute.xlu1 %1704 }
0x1818   :  { %v3971_v9 = vmul.f32 %v3046_v10, %v1705_v11 }
0x181a   :  { %v1709_v51 = vrot.slane %v3971_v9, 2 }
0x181c   :  { %v1711_v62 = vsel %vm122_vm2, %v1709_v51, %v3942_v22 }
0x181d   :  { %2587 = vmatmul.mubr.msk.f32.vlgmr.msra.gmra.mrb[12].mxu1 %vm171_vm0, %v1711_v62 }
0x181e   :  { %2848 = vmatpush1.bf16.msra.mxu1 %v3838_v59  ;;  %2042 = vmatprep.mubr.f32.mxu1 %v3365_v0 }
0x181f   :  { %2850 = vmatprep.subr.bf16.mxu1 %v3841_v6 }
0x1822   :  { %2852 = vmatpush1.bf16.msra.mxu1 %v3844_v12 }
0x1823   :  { %2854 = vmatprep.subr.bf16.mxu1 %v3847_v23 }
0x1826   :  { %2856 = vmatpush1.bf16.msra.mxu1 %v3850_v26 }
0x1827   :  { %2858 = vmatprep.subr.bf16.mxu1 %v3853_v44 }
0x182a   :  { %2860 = vmatpush1.bf16.msra.mxu1 %v3856_v37 }
0x182b   :  { %2878 = vmatprep.subr.bf16.mxu1 %v3836_v57 }
0x1884   :  { %v1817_v17 = vpop.permute.xlu0 %1816 }
0x18f0   :  { %v1788_v14 = vpop.f32.mrb[12].mxu1 }
0x18f1   :  { %v1790_v15 = vpop.f32.mrb[13].mxu1  ;;  %v1795_v43 = vrot.slane %v1788_v14, 4 }
0x18f2   :  { %v1796_v58 = vrot.slane %v1790_v15, 4 }
0x18f3   :  { %v1799_v60 = vadd.f32 %v1795_v43, %v3930_v56 }
0x18f4   :  { %v1800_v18 = vadd.f32 %v1796_v58, %v3921_v7 }
0x18f5   :  { %v2588_v24 = vmul.f32 -1.442695, %v1799_v60 }
0x18f6   :  { %3047 = vtanh.f32 %v1800_v18  ;;  %v2589_v29 = vmul.f32 -1.442695, %v1800_v18 }
0x18f7   :  { %3049 = vpow2.f32 %v2588_v24 }
0x1900   :  { %v3048_v1 = vpop.eup %3047 }
0x1901   :  { %1821 = vrot.lane.b32.xlu1 %v3048_v1, %s3366_s24  ;;  %v3050_v13 = vpop.eup %3049 }
0x1902   :  { %v1807_v21 = vadd.f32 1.0, %v3050_v13 }
0x1904   :  { %3051 = vrcp.f32 %v1807_v21 }
0x190e   :  { %v3052_v28 = vpop.eup %3051 }
0x190f   :  { %v1819_v46 = vmul.f32 %v3052_v28, %v1817_v17 }
0x1973   :  { %v1822_v16 = vpop.permute.xlu1 %1821 }
0x1974   :  { %v1824_v63 = vmul.f32 %v3052_v28, %v1822_v16 }
0x1976   :  { %1826 = vrot.lane.b32.xlu1 %v1824_v63, %s3366_s24 }
0x19e8   :  { %v1827_v40 = vpop.permute.xlu1 %1826 }
0x19e9   :  { %v1829_v47 = vadd.f32 %v1827_v40, %v1819_v46 }
0x19eb   :  { %3053 = vtanh.f32 %v1829_v47  ;;  %v1841_v19 = vrot.slane %v1829_v47, 4 }
0x19ec   :  { %3055 = vpow2.f32 %v2589_v29 }
0x19ed   :  { %1842 = vrot.lane.b32.xlu1 %v1841_v19, %s3366_s24  ;;  %v4037_v19 = vadd.f32 %v3963_v27, %v3918_v34 }
0x19f5   :  { %v3054_v35 = vpop.eup %3053 }
0x19f6   :  { %1832 = vrot.lane.b32.xlu0 %v3054_v35, %s3366_s24  ;;  %v3056_v30 = vpop.eup %3055 }
0x19f7   :  { %v1808_v31 = vadd.f32 1.0, %v3056_v30 }
0x19f9   :  { %3057 = vrcp.f32 %v1808_v31 }
0x1a03   :  { %v3058_v33 = vpop.eup %3057 }
0x1a5f   :  { %v1843_v32 = vpop.permute.xlu1 %1842 }
0x1a60   :  { %v1845_v20 = vsel %vm125_vm3, %v1843_v32, %v1717_v4  ;;  %v4043_v32 = vadd.f32 %v3961_v48, %v3927_v54 }
0x1a61   :  { %v1943_v55 = vrot.slane %v1845_v20, 2 }
0x1a63   :  { %1944 = vrot.lane.b32.xlu1 %v1943_v55, %s3366_s24 }
0x1a68   :  { %v1833_v38 = vpop.permute.xlu0 %1832 }
0x1a69   :  { %v3998_v41 = vmul.f32 %v3058_v33, %v1833_v38 }
0x1a6b   :  { %v1837_v8 = vrot.slane %v3998_v41, 4 }
0x1a6d   :  { %v1839_v49 = vsel %vm125_vm3, %v1837_v8, %v1711_v62 }
0x1a6e   :  { %2590 = vmatmul.mubr.msk.f32.vlgmr.msra.gmra.mrb[16].mxu0 %vm171_vm0, %v1839_v49 }
0x1a6f   :  { %2864 = vmatpush1.bf16.msra.mxu0 %v3838_v59  ;;  %2159 = vmatprep.mubr.f32.mxu0 %v3365_v0 }
0x1a70   :  { %2866 = vmatprep.subr.bf16.mxu0 %v3841_v6 }
0x1a73   :  { %2868 = vmatpush1.bf16.msra.mxu0 %v3844_v12 }
0x1a74   :  { %2870 = vmatprep.subr.bf16.mxu0 %v3847_v23 }
0x1a77   :  { %2872 = vmatpush1.bf16.msra.mxu0 %v3850_v26 }
0x1a78   :  { %2874 = vmatprep.subr.bf16.mxu0 %v3853_v44 }
0x1a7b   :  { %2876 = vmatpush1.bf16.msra.mxu0 %v3856_v37 }
0x1a7c   :  { %2894 = vmatprep.subr.bf16.mxu0 %v3836_v57 }
0x1ad5   :  { %v1945_v18 = vpop.permute.xlu1 %1944 }
0x1b41   :  { %v1916_v52 = vpop.f32.mrb[16].mxu0 }
0x1b42   :  { %v1918_v50 = vpop.f32.mrb[17].mxu0  ;;  %v1923_v5 = vrot.slane %v1916_v52, 2 }
0x1b43   :  { %v1924_v53 = vrot.slane %v1918_v50, 2 }
0x1b44   :  { %v1927_v10 = vadd.f32 %v1923_v5, %v3930_v56 }
0x1b45   :  { %v1928_v2 = vadd.f32 %v1924_v53, %v3921_v7 }
0x1b46   :  { %v2591_v11 = vmul.f32 -1.442695, %v1927_v10 }
0x1b47   :  { %3059 = vtanh.f32 %v1928_v2  ;;  %v2592_v56 = vmul.f32 -1.442695, %v1928_v2 }
0x1b48   :  { %3061 = vpow2.f32 %v2591_v11 }
0x1b51   :  { %v3060_v4 = vpop.eup %3059 }
0x1b52   :  { %1949 = vrot.lane.b32.xlu0 %v3060_v4, %s3366_s24  ;;  %v3062_v62 = vpop.eup %3061 }
0x1b53   :  { %v1935_v14 = vadd.f32 1.0, %v3062_v62 }
0x1b55   :  { %3063 = vrcp.f32 %v1935_v14 }
0x1b5f   :  { %v3064_v15 = vpop.eup %3063 }
0x1b60   :  { %v1947_v1 = vmul.f32 %v3064_v15, %v1945_v18 }
0x1bc4   :  { %v1950_v58 = vpop.permute.xlu0 %1949 }
0x1bc5   :  { %v1952_v57 = vmul.f32 %v3064_v15, %v1950_v58 }
0x1bc7   :  { %1954 = vrot.lane.b32.xlu0 %v1952_v57, %s3366_s24 }
0x1c39   :  { %v1955_v7 = vpop.permute.xlu0 %1954 }
0x1c3a   :  { %v1957_v43 = vadd.f32 %v1955_v7, %v1947_v1 }
0x1c3c   :  { %3065 = vtanh.f32 %v1957_v43  ;;  %v1969_v60 = vrot.slane %v1957_v43, 6 }
0x1c3d   :  { %3067 = vpow2.f32 %v2592_v56 }
0x1c3e   :  { %1970 = vrot.lane.b32.xlu0 %v1969_v60, %s3366_s24 }
0x1c46   :  { %v3066_v24 = vpop.eup %3065 }
0x1c47   :  { %1960 = vrot.lane.b32.xlu1 %v3066_v24, %s3366_s24  ;;  %v3068_v13 = vpop.eup %3067 }
0x1c48   :  { %v1936_v21 = vadd.f32 1.0, %v3068_v13 }
0x1c4a   :  { %3069 = vrcp.f32 %v1936_v21 }
0x1c54   :  { %v3070_v63 = vpop.eup %3069 }
0x1cb0   :  { %v1971_v28 = vpop.permute.xlu0 %1970 }
0x1cb1   :  { %v1973_v16 = vsel %vm128_vm4, %v1971_v28, %v1845_v20 }
0x1cb2   :  { %2065 = vrot.lane.b32.xlu0 %v1973_v16, %s3366_s24 }
0x1cb9   :  { %v1961_v17 = vpop.permute.xlu1 %1960 }
0x1cba   :  { %v1963_v46 = vmul.f32 %v3070_v63, %v1961_v17 }
0x1cbc   :  { %v1965_v40 = vrot.slane %v1963_v46, 6 }
0x1cbe   :  { %v1967_v47 = vsel %vm128_vm4, %v1965_v40, %v1839_v49  ;;  %v1974_v57 = vsel %vm128_vm4, %v1965_v40, 0.0 }
0x1cbf   :  { %2593 = vmatmul.mubr.msk.f32.vlgmr.msra.gmra.mrb[14].mxu1 %vm171_vm0, %v1967_v47 }
0x1cc0   :  { %2880 = vmatpush1.bf16.msra.mxu1 %v3838_v59  ;;  %2287 = vmatprep.mubr.f32.mxu1 %v3365_v0 }
0x1cc1   :  { %2882 = vmatprep.subr.bf16.mxu1 %v3841_v6 }
0x1cc4   :  { %2884 = vmatpush1.bf16.msra.mxu1 %v3844_v12 }
0x1cc5   :  { %2886 = vmatprep.subr.bf16.mxu1 %v3847_v23 }
0x1cc8   :  { %2888 = vmatpush1.bf16.msra.mxu1 %v3850_v26 }
0x1cc9   :  { %2890 = vmatprep.subr.bf16.mxu1 %v3853_v44 }
0x1ccc   :  { %2892 = vmatpush1.bf16.msra.mxu1 %v3856_v37 }
0x1d24   :  { %v2066_v52 = vpop.permute.xlu0 %2065 }
0x1d92   :  { %v2044_v35 = vpop.f32.mrb[14].mxu1 }
0x1d93   :  { %v2046_v29 = vpop.f32.mrb[15].mxu1  ;;  %v2049_v20 = vadd.f32 %v2044_v35, %v4043_v32 }
0x1d94   :  { %v2050_v30 = vadd.f32 %v2046_v29, %v4037_v19 }
0x1d95   :  { %v2594_v55 = vmul.f32 -1.442695, %v2049_v20 }
0x1d96   :  { %3071 = vtanh.f32 %v2050_v30  ;;  %v2595_v48 = vmul.f32 -1.442695, %v2050_v30 }
0x1d97   :  { %3073 = vpow2.f32 %v2594_v55 }
0x1da0   :  { %v3072_v31 = vpop.eup %3071 }
0x1da1   :  { %2070 = vrot.lane.b32.xlu1 %v3072_v31, %s3366_s24  ;;  %v3074_v33 = vpop.eup %3073 }
0x1da2   :  { %v2057_v38 = vadd.f32 1.0, %v3074_v33 }
0x1da4   :  { %3075 = vrcp.f32 %v2057_v38  ;;  %v1846_v38 = vsel %vm125_vm3, %v1837_v8, 0.0 }
0x1dae   :  { %v3076_v34 = vpop.eup %3075 }
0x1daf   :  { %v2068_v50 = vmul.f32 %v3076_v34, %v2066_v52 }
0x1e13   :  { %v2071_v27 = vpop.permute.xlu1 %2070 }
0x1e14   :  { %v2073_v49 = vmul.f32 %v3076_v34, %v2071_v27 }
0x1e16   :  { %2075 = vrot.lane.b32.xlu1 %v2073_v49, %s3366_s24 }
0x1e88   :  { %v2076_v53 = vpop.permute.xlu1 %2075 }
0x1e89   :  { %v2078_v2 = vadd.f32 %v2076_v53, %v2068_v50 }
0x1e8b   :  { %3077 = vtanh.f32 %v2078_v2  ;;  %2087 = vrot.lane.b32.xlu1 %v2078_v2, %s3366_s24 }
0x1e8c   :  { %3079 = vpow2.f32 %v2595_v48 }
0x1e95   :  { %v3078_v54 = vpop.eup %3077 }
0x1e96   :  { %2081 = vrot.lane.b32.xlu0 %v3078_v54, %s3366_s24  ;;  %v3080_v4 = vpop.eup %3079 }
0x1e97   :  { %v2058_v5 = vadd.f32 1.0, %v3080_v4 }
0x1e99   :  { %3081 = vrcp.f32 %v2058_v5 }
0x1ea3   :  { %v3082_v14 = vpop.eup %3081 }
0x1efd   :  { %v2088_v10 = vpop.permute.xlu1 %2087 }
0x1efe   :  { %v2090_v11 = vsel %vm131_vm5, %v2088_v10, %v1973_v16 }
0x1eff   :  { %v2188_v62 = vrot.slane %v2090_v11, 6 }
0x1f01   :  { %2189 = vrot.lane.b32.xlu1 %v2188_v62, %s3366_s24 }
0x1f08   :  { %v2082_v15 = vpop.permute.xlu0 %2081 }
0x1f09   :  { %v2084_v58 = vmul.f32 %v3082_v14, %v2082_v15 }
0x1f0b   :  { %v2085_v18 = vsel %vm131_vm5, %v2084_v58, %v1967_v47  ;;  %v2091_v1 = vsel %vm131_vm5, %v2084_v58, 0.0 }
0x1f0c   :  { %v2473_v7 = vsel %vm1262_vm6, %v1974_v57, %v2091_v1  ;;  %v2474_v43 = vsel %vm1262_vm6, %v2091_v1, %v1974_v57  ;;  %2596 = vmatmul.mubr.msk.f32.vlgmr.msra.gmra.mrb[18].mxu0 %vm171_vm0, %v2085_v18 }
0x1f0d   :  { %2484 = vst.msk [vmem:[#allocation16 + $0x6] sm:$0x3] %vm1271_vm7, %v2473_v7  ;;  %2486 = vst.msk [vmem:[#allocation16 + $0x8] sm:$0x3] %vm1271_vm7, %v2474_v43  ;;  %2896 = vmatpush1.bf16.msra.mxu0 %v3838_v59  ;;  %2415 = vmatprep.mubr.f32.mxu0 %v3365_v0 }
0x1f0e   :  { %2898 = vmatprep.subr.bf16.mxu0 %v3841_v6 }
0x1f11   :  { %2900 = vmatpush1.bf16.msra.mxu0 %v3844_v12 }
0x1f12   :  { %2902 = vmatprep.subr.bf16.mxu0 %v3847_v23 }
0x1f15   :  { %2904 = vmatpush1.bf16.msra.mxu0 %v3850_v26 }
0x1f16   :  { %2906 = vmatprep.subr.bf16.mxu0 %v3853_v44 }
0x1f19   :  { %2908 = vmatpush1.bf16.msra.mxu0 %v3856_v37 }
0x1f73   :  { %v2190_v13 = vpop.permute.xlu1 %2189 }
0x1fdf   :  { %v2161_v25 = vpop.f32.mrb[18].mxu0 }
0x1fe0   :  { %v2163_v3 = vpop.f32.mrb[19].mxu0  ;;  %v2168_v0 = vrot.slane %v2161_v25, 6 }
0x1fe1   :  { %v2169_v60 = vrot.slane %v2163_v3, 6 }
0x1fe2   :  { %v2172_v6 = vadd.f32 %v2168_v0, %v4043_v32 }
0x1fe3   :  { %v2173_v24 = vadd.f32 %v2169_v60, %v4037_v19 }
0x1fe4   :  { %v2597_v12 = vmul.f32 -1.442695, %v2172_v6 }
0x1fe5   :  { %3083 = vtanh.f32 %v2173_v24  ;;  %v2598_v46 = vmul.f32 -1.442695, %v2173_v24 }
0x1fe6   :  { %3085 = vpow2.f32 %v2597_v12  ;;  %v1718_v12 = vsel %vm122_vm2, %v1709_v51, 0.0 }
0x1fef   :  { %v3084_v59 = vpop.eup %3083 }
0x1ff0   :  { %2194 = vrot.lane.b32.xlu0 %v3084_v59, %s3366_s24  ;;  %v3086_v23 = vpop.eup %3085 }
0x1ff1   :  { %v2180_v26 = vadd.f32 1.0, %v3086_v23 }
0x1ff3   :  { %3087 = vrcp.f32 %v2180_v26 }
0x1ffd   :  { %v3088_v44 = vpop.eup %3087 }
0x1ffe   :  { %v2192_v21 = vmul.f32 %v3088_v44, %v2190_v13 }
0x2062   :  { %v2195_v56 = vpop.permute.xlu0 %2194 }
0x2063   :  { %v2197_v37 = vmul.f32 %v3088_v44, %v2195_v56 }
0x2065   :  { %2199 = vrot.lane.b32.xlu0 %v2197_v37, %s3366_s24 }
0x20d7   :  { %v2200_v28 = vpop.permute.xlu0 %2199 }
0x20d8   :  { %v2202_v16 = vadd.f32 %v2200_v28, %v2192_v21 }
0x20da   :  { %3089 = vtanh.f32 %v2202_v16  ;;  %v2214_v63 = vrot.slane %v2202_v16, 2 }
0x20db   :  { %3091 = vpow2.f32 %v2598_v46 }
0x20dc   :  { %2215 = vrot.lane.b32.xlu0 %v2214_v63, %s3366_s24 }
0x20e4   :  { %v3090_v17 = vpop.eup %3089 }
0x20e5   :  { %2205 = vrot.lane.b32.xlu1 %v3090_v17, %s3366_s24  ;;  %v3092_v40 = vpop.eup %3091 }
0x20e6   :  { %v2181_v47 = vadd.f32 1.0, %v3092_v40 }
0x20e8   :  { %3093 = vrcp.f32 %v2181_v47 }
0x20f2   :  { %v3094_v31 = vpop.eup %3093 }
0x214e   :  { %v2216_v35 = vpop.permute.xlu0 %2215 }
0x214f   :  { %v2218_v29 = vsel %vm134_vm8, %v2216_v35, %v2090_v11 }
0x2150   :  { %v2316_v30 = vrot.slane %v2218_v29, 4 }
0x2152   :  { %2317 = vrot.lane.b32.xlu0 %v2316_v30, %s3366_s24 }
0x2157   :  { %v2206_v20 = vpop.permute.xlu1 %2205 }
0x2158   :  { %v2208_v55 = vmul.f32 %v3094_v31, %v2206_v20 }
0x215a   :  { %v2210_v33 = vrot.slane %v2208_v55, 2 }
0x215c   :  { %v2212_v34 = vsel %vm134_vm8, %v2210_v33, %v2085_v18  ;;  %v2219_v27 = vsel %vm134_vm8, %v2210_v33, 0.0 }
0x215d   :  { %v2472_v49 = vsel %vm1262_vm6, %v1846_v38, %v2219_v27  ;;  %v2475_v52 = vsel %vm1262_vm6, %v2219_v27, %v1846_v38  ;;  %2599 = vmatmul.mubr.msk.f32.vlgmr.msra.gmra.mrb[16].mxu1 %vm171_vm0, %v2212_v34 }
0x215e   :  { %2482 = vst.msk [vmem:[#allocation16 + $0x4] sm:$0x3] %vm1271_vm7, %v2472_v49  ;;  %2488 = vst.msk [vmem:[#allocation16 + $0xa] sm:$0x3] %vm1271_vm7, %v2475_v52 }
0x21c4   :  { %v2318_v62 = vpop.permute.xlu0 %2317 }
0x2230   :  { %v2289_v41 = vpop.f32.mrb[16].mxu1 }
0x2231   :  { %v2291_v50 = vpop.f32.mrb[17].mxu1  ;;  %v2296_v45 = vrot.slane %v2289_v41, 4 }
0x2232   :  { %v2297_v42 = vrot.slane %v2291_v50, 4 }
0x2233   :  { %v2300_v2 = vadd.f32 %v2296_v45, %v4043_v32 }
0x2234   :  { %v2301_v8 = vadd.f32 %v2297_v42, %v4037_v19 }
0x2235   :  { %v2600_v54 = vmul.f32 -1.442695, %v2300_v2 }
0x2236   :  { %3095 = vtanh.f32 %v2301_v8  ;;  %v2601_v1 = vmul.f32 -1.442695, %v2301_v8 }
0x2237   :  { %3097 = vpow2.f32 %v2600_v54 }
0x2240   :  { %v3096_v53 = vpop.eup %3095 }
0x2241   :  { %2322 = vrot.lane.b32.xlu1 %v3096_v53, %s3366_s24  ;;  %v3098_v48 = vpop.eup %3097 }
0x2242   :  { %v2308_v4 = vadd.f32 1.0, %v3098_v48 }
0x2244   :  { %3099 = vrcp.f32 %v2308_v4 }
0x224e   :  { %v3100_v5 = vpop.eup %3099 }
0x224f   :  { %v2320_v14 = vmul.f32 %v3100_v5, %v2318_v62 }
0x22b3   :  { %v2323_v10 = vpop.permute.xlu1 %2322 }
0x22b4   :  { %v2325_v11 = vmul.f32 %v3100_v5, %v2323_v10 }
0x22b6   :  { %2327 = vrot.lane.b32.xlu1 %v2325_v11, %s3366_s24 }
0x2328   :  { %v2328_v15 = vpop.permute.xlu1 %2327 }
0x2329   :  { %v2330_v58 = vadd.f32 %v2328_v15, %v2320_v14 }
0x232b   :  { %3101 = vtanh.f32 %v2330_v58  ;;  %v2342_v57 = vrot.slane %v2330_v58, 4 }
0x232c   :  { %3103 = vpow2.f32 %v2601_v1 }
0x232d   :  { %2343 = vrot.lane.b32.xlu1 %v2342_v57, %s3366_s24 }
0x2335   :  { %v3102_v18 = vpop.eup %3101 }
0x2336   :  { %2333 = vrot.lane.b32.xlu0 %v3102_v18, %s3366_s24  ;;  %v3104_v7 = vpop.eup %3103 }
0x2337   :  { %v2309_v43 = vadd.f32 1.0, %v3104_v7 }
0x2339   :  { %3105 = vrcp.f32 %v2309_v43 }
0x2343   :  { %v3106_v24 = vpop.eup %3105 }
0x239f   :  { %v2344_v25 = vpop.permute.xlu1 %2343 }
0x23a0   :  { %v2346_v3 = vsel %vm137_vm9, %v2344_v25, %v2218_v29 }
0x23a1   :  { %v2444_v60 = vrot.slane %v2346_v3, 2 }
0x23a3   :  { %2445 = vrot.lane.b32.xlu1 %v2444_v60, %s3366_s24 }
0x23a8   :  { %v2334_v59 = vpop.permute.xlu0 %2333 }
0x23a9   :  { %v2336_v0 = vmul.f32 %v3106_v24, %v2334_v59 }
0x23ab   :  { %v2338_v6 = vrot.slane %v2336_v0, 4 }
0x23ad   :  { %v4108_v23 = vsel %vm137_vm9, %v2338_v6, %v2212_v34  ;;  %v2347_v26 = vsel %vm137_vm9, %v2338_v6, 0.0 }
0x23ae   :  { %v2471_v44 = vsel %vm1262_vm6, %v1718_v12, %v2347_v26  ;;  %v2476_v56 = vsel %vm1262_vm6, %v2347_v26, %v1718_v12  ;;  %2602 = vmatmul.mubr.msk.f32.vlgmr.msra.gmra.mrb[20].mxu0 %vm171_vm0, %v4108_v23 }
0x23af   :  { %2480 = vst.msk [vmem:[#allocation16 + $0x2] sm:$0x3] %vm1271_vm7, %v2471_v44  ;;  %2490 = vst.msk [vmem:[#allocation16 + $0xc] sm:$0x3] %vm1271_vm7, %v2476_v56 }
0x2415   :  { %v2446_v47 = vpop.permute.xlu1 %2445 }
0x2481   :  { %v2417_v61 = vpop.f32.mrb[20].mxu0 }
0x2482   :  { %v2419_v9 = vpop.f32.mrb[21].mxu0  ;;  %v2424_v39 = vrot.slane %v2417_v61, 2 }
0x2483   :  { %v2425_v51 = vrot.slane %v2419_v9, 2 }
0x2484   :  { %v2428_v21 = vadd.f32 %v2424_v39, %v4043_v32 }
0x2485   :  { %v2429_v37 = vadd.f32 %v2425_v51, %v4037_v19 }
0x2486   :  { %v2603_v28 = vmul.f32 -1.442695, %v2428_v21 }
0x2487   :  { %3107 = vtanh.f32 %v2429_v37 }
0x2488   :  { %3109 = vpow2.f32 %v2603_v28 }
0x2491   :  { %v3108_v13 = vpop.eup %3107 }
0x2492   :  { %2450 = vrot.lane.b32.xlu0 %v3108_v13, %s3366_s24  ;;  %v3110_v16 = vpop.eup %3109 }
0x2493   :  { %v2436_v63 = vadd.f32 1.0, %v3110_v16 }
0x2495   :  { %3111 = vrcp.f32 %v2436_v63 }
0x249f   :  { %v3112_v17 = vpop.eup %3111 }
0x24a0   :  { %v2448_v35 = vmul.f32 %v3112_v17, %v2446_v47 }
0x2504   :  { %v2451_v46 = vpop.permute.xlu0 %2450 }
0x2505   :  { %v2453_v40 = vmul.f32 %v3112_v17, %v2451_v46 }
0x2507   :  { %2455 = vrot.lane.b32.xlu0 %v2453_v40, %s3366_s24 }
0x2579   :  { %v2456_v19 = vpop.permute.xlu0 %2455 }
0x257a   :  { %v2458_v29 = vadd.f32 %v2456_v19, %v2448_v35 }
0x257c   :  { %3113 = vtanh.f32 %v2458_v29 }
0x257d   :  { %3262 = shalt.err (!%p3259_p10)
}
0x257e   :  { %s3263_s1 = scalar_lea.hbm %s4205_s9, 32 }
0x257f   :  { %p3264_p11 = scmp.ne.s32.totalorder %s4205_s9, %s3263_s1  ;;  %p3267_p12 = scmp.lt.u32.totalorder %s3263_s1, %s4205_s9 }
0x2581   :  { %p3269_p13 = pnand %p3267_p12, %p3264_p11 }
0x2583   :  { %3272 = shalt.err (!%p3269_p13)
}
0x2584   :  { %2515 = dma.vmem_to_hbm [thread:$0]  %s2513_s22, 32, %s4205_s9, [#allocation15]  }
0x2585   :  { %s3273_s15 = scalar_lea.vmem %s2500_s25, 256  ;;  %p3278_p1 = scmp.lt.s32.totalorder %s2500_s25, %s2500_s25 }
0x2586   :  { %p3274_p0 = scmp.ne.s32.totalorder %s2500_s25, %s3273_s15  ;;  %p3279_p2 = scmp.lt.s32.totalorder %s3273_s15, %s3273_s15 }
0x2588   :  { %p3280_p3 = por %p3279_p2, %p3278_p1 }
0x258a   :  { %p3281_p4 = pnand %p3280_p3, %p3274_p0 }
0x258c   :  { %3284 = shalt.err (!%p3281_p4)
}
0x258d   :  { %s3285_s13 = scalar_lea.hbm %s4204_s8, 256 }
0x258e   :  { %p3286_p5 = scmp.ne.s32.totalorder %s4204_s8, %s3285_s13  ;;  %p3289_p6 = scmp.lt.u32.totalorder %s3285_s13, %s4204_s8 }
0x2590   :  { %p3291_p7 = pnand %p3289_p6, %p3286_p5 }
0x2592   :  { %3294 = shalt.err (!%p3291_p7)
}
0x2593   :  { %2505 = dma.vmem_to_hbm [thread:$0]  %s2500_s25, 256, %s4204_s8, [#allocation4], %s3354_s27, %s3354_s27, %s3355_s28   ;;  %v3114_v32 = vpop.eup %3113  ;;  %v2604_v30 = vmul.f32 -1.442695, %v2429_v37 }
0x2594   :  { %2461 = vrot.lane.b32.xlu1 %v3114_v32, %s3366_s24  ;;  %s3369_s21 = smov [#allocation17]   ;;  %s3370_s22 = smov [#allocation16]  }
0x2595   :  { %3115 = vpow2.f32 %v2604_v30  ;;  %s2534_s6 = sshll.u32 %s3369_s21, 4  ;;  %s2521_s23 = sshll.u32 %s3370_s22, 4  ;;  %s2535_s6 = int_to_ptr.vmem [resolvable:$true] %s2534_s6  ;;  %s4152_s23 = int_to_ptr.vmem [resolvable:$true] %s2521_s23 }
0x2596   :  { %s3295_s8 = scalar_lea.vmem %s2535_s6, 32  ;;  %p3300_p9 = scmp.lt.s32.totalorder %s2535_s6, %s2535_s6 }
0x2597   :  { %p3296_p8 = scmp.ne.s32.totalorder %s2535_s6, %s3295_s8  ;;  %p3301_p10 = scmp.lt.s32.totalorder %s3295_s8, %s3295_s8 }
0x2599   :  { %p3302_p11 = por %p3301_p10, %p3300_p9 }
0x259b   :  { %p3303_p12 = pnand %p3302_p11, %p3296_p8 }
0x259f   :  { %v3116_v31 = vpop.eup %3115 }
0x25a0   :  { %v2437_v20 = vadd.f32 1.0, %v3116_v31 }
0x25a2   :  { %3117 = vrcp.f32 %v2437_v20 }
0x25ac   :  { %v3118_v55 = vpop.eup %3117 }
0x2606   :  { %v2462_v33 = vpop.permute.xlu1 %2461 }
0x2607   :  { %v2464_v38 = vmul.f32 %v3118_v55, %v2462_v33 }
0x2609   :  { %v2466_v34 = vrot.slane %v2464_v38, 6 }
0x260b   :  { %v2469_v27 = vsel %vm140_vm12, %v2466_v34, 0.0  ;;  %v2468_v49 = vsel %vm140_vm12, %v2466_v34, %v4108_v23 }
0x260c   :  { %v2470_v52 = vsel %vm1262_vm6, %v3942_v22, %v2469_v27  ;;  %v2477_v41 = vsel %vm1262_vm6, %v2469_v27, %v3942_v22  ;;  %2493 = vst.msk [vmem:[#allocation17] sm:$0x3] %vm1271_vm7, %v2468_v49 }
0x260d   :  { %2478 = vst.msk [vmem:[#allocation16] sm:$0x3] %vm1271_vm7, %v2470_v52  ;;  %2492 = vst.msk [vmem:[#allocation16 + $0xe] sm:$0x3] %vm1271_vm7, %v2477_v41 }
0x260e   :  { %3306 = shalt.err (!%p3303_p12)
}
0x260f   :  { %s3307_s29 = scalar_lea.hbm %s4207_s11, 32 }
0x2610   :  { %p3308_p13 = scmp.ne.s32.totalorder %s4207_s11, %s3307_s29  ;;  %p3311_p0 = scmp.lt.u32.totalorder %s3307_s29, %s4207_s11 }
0x2612   :  { %p3313_p1 = pnand %p3311_p0, %p3308_p13 }
0x2614   :  { %3316 = shalt.err (!%p3313_p1)
}
0x2615   :  { %2537 = dma.vmem_to_hbm [thread:$0]  %s2535_s6, 32, %s4207_s11, [#allocation18]  }
0x2616   :  { %s3317_s17 = scalar_lea.vmem %s4152_s23, 256  ;;  %p3322_p3 = scmp.lt.s32.totalorder %s4152_s23, %s4152_s23 }
0x2617   :  { %p3318_p2 = scmp.ne.s32.totalorder %s4152_s23, %s3317_s17  ;;  %p3323_p4 = scmp.lt.s32.totalorder %s3317_s17, %s3317_s17 }
0x2619   :  { %p3324_p5 = por %p3323_p4, %p3322_p3 }
0x261b   :  { %p3325_p6 = pnand %p3324_p5, %p3318_p2 }
0x261d   :  { %3328 = shalt.err (!%p3325_p6)
}
0x261e   :  { %s3329_s15 = scalar_lea.hbm %s4206_s10, 256 }
0x261f   :  { %p3330_p7 = scmp.ne.s32.totalorder %s4206_s10, %s3329_s15  ;;  %p3333_p8 = scmp.lt.u32.totalorder %s3329_s15, %s4206_s10 }
0x2621   :  { %p3335_p9 = pnand %p3333_p8, %p3330_p7 }
0x2623   :  { %3338 = shalt.err (!%p3335_p9)
}
0x2624   :  { %2527 = dma.vmem_to_hbm [thread:$0]  %s4152_s23, 256, %s4206_s10, [#allocation15], %s3354_s27, %s3354_s27, %s3355_s28  }
0x2625   :  { %3347 = dma.done.wait [#allocation4], 256  }
0x2626   :  { %3348 = vsyncadd [#allocation4], 4294967040 }
0x2627   :  { %3349 = dma.done.wait [#allocation15], 288  }
0x2628   :  { %3350 = vsyncadd [#allocation15], 4294967008 }
0x2629   :  { %3351 = dma.done.wait [#allocation18], 32  }
0x262a   :  { %3352 = vsyncadd [#allocation18], 4294967264 }
0x262b   :  { %2550 = vsyncpa [#allocation3], 1 }
0x262c   :  { %2551 = vsyncpa [#allocation6], 1 }
0x262d   :  { %2552 = vsyncpa [#allocation9], 1 }
0x262e   :  { %2553 = vsyncpa [#allocation12], 1 }
0x262f   :  { %2554 = vsyncpa [#allocation4], 1 }
0x2630   :  { %2555 = vsyncpa [#allocation15], 1 }
0x2631   :  { %2556 = vsyncpa [#allocation18], 1 }

</bundles_post_ra>
